<compile_context>
chip_gen: v7x
topology: tpu7x:2x2x1
jax: 0.10.0
libtpu: 0.0.40
codegen_flags: <defaults>
</compile_context>

<pallas_src>
import jax
import jax.numpy as jnp
from jax.experimental import pallas as pl
from jax.experimental.pallas import tpu as pltpu

NB_FILTERS = 32
KERNEL_SIZE = 3
N_CLASSES = 13
FC_OUT_PAD = 128          # lane-dense padded FC output width
EPS = 1e-5


# ----------------------------- static parameter layout -----------------------------

def _conv_layout(emb_dims):
    """Ordered conv layers and their (row_offset, cout, K*cin) inside the packed weight slab."""
    c1, c2 = NB_FILTERS, 2 * NB_FILTERS
    layers = [("conv0", c1, emb_dims),
              ("b1c1", c1, c1), ("b1c2", c1, c1),
              ("b2c1", c1, c1), ("b2c2", c1, c1),
              ("b3c1", c2, c1), ("b3c2", c2, c2), ("b3id", c2, c1),
              ("b4c1", c2, c2), ("b4c2", c2, c2)]
    offs, r = {}, 0
    for name, cout, cin in layers:
        offs[name] = (r, cout, KERNEL_SIZE * cin)
        r += cout
    return layers, offs, r


# columns of the packed per-channel vector slab (64, 18)
#   0: conv0 bias   1: block3 identity-conv bias
#   2..5:  block1 bn1 gamma/beta, bn2 gamma/beta
#   6..9:  block2   10..13: block3   14..17: block4


# ----------------------------- trace-time constant helpers -----------------------------

def _halo_mask(bsz, ln):
    """(1, bsz*(ln+2)) f32 mask: 1 on real columns, 0 on per-batch halo columns."""
    seg = jnp.concatenate([jnp.zeros((1, 1), jnp.float32),
                           jnp.ones((1, ln), jnp.float32),
                           jnp.zeros((1, 1), jnp.float32)], axis=1)
    return jnp.concatenate([seg] * bsz, axis=1)


def _pool_sel(bsz, lp_in, lp_out, lout):
    """0/1 selection matrix (bsz*lp_in - 2, bsz*lp_out): stride-2 downsample of the running
    window-max AND re-embedding into the next padded layout (zero halos), in one matmul."""
    w = bsz * lp_in - 2
    blocks = []
    for b in range(bsz):
        i = jax.lax.broadcasted_iota(jnp.int32, (w, lp_out), 0)
        q = jax.lax.broadcasted_iota(jnp.int32, (w, lp_out), 1)
        valid = (q >= 1) & (q <= lout)
        hit = i == (b * lp_in + 2 * (q - 1))
        blocks.append(jnp.where(valid & hit, 1.0, 0.0))
    return jnp.concatenate(blocks, axis=1).astype(jnp.float32)


# --------------------------------- fused kernel ---------------------------------

def _make_vdcnn_kernel(emb_dims, bsz, seq_len):
    _, offs, _ = _conv_layout(emb_dims)
    c2 = 2 * NB_FILTERS
    lpool = (seq_len + 2 - 3) // 2 + 1
    lp1, lp2 = seq_len + 2, lpool + 2
    nw1, nw2 = bsz * lp1, bsz * lp2
    n1, n2 = float(bsz * seq_len), float(bsz * lpool)

    def conv(a, w_ref, name, mask):
        """'same' Conv1d as one im2col matmul.  a: (Cin, Nw) f32, zero halos.  Output masked."""
        r0, cout, kcin = offs[name]
        w = w_ref[r0:r0 + cout, 0:kcin]                                   # bf16 (Cout, K*Cin)
        width = a.shape[1] - 2
        cols = jnp.concatenate([a[:, t:t + width] for t in range(KERNEL_SIZE)], axis=0)
        y = jnp.dot(w, cols.astype(jnp.bfloat16), preferred_element_type=jnp.float32)
        z = jnp.zeros((cout, 1), jnp.float32)
        return jnp.concatenate([z, y, z], axis=1) * mask                  # (Cout, Nw)

    def bn(y, v_ref, gcol, bcol, cout, n_valid):
        """Training-mode BatchNorm1d: one-pass batch stats over the real (masked) columns."""
        gamma = v_ref[0:cout, gcol:gcol + 1]
        beta = v_ref[0:cout, bcol:bcol + 1]
        s = jnp.sum(y, axis=1, keepdims=True)
        ss = jnp.sum(y * y, axis=1, keepdims=True)
        mean = s / n_valid
        var = jnp.maximum(ss / n_valid - mean * mean, 0.0)
        inv = jax.lax.rsqrt(var + EPS)
        return (y - mean) * (inv * gamma) + beta

    def conv_block(x, c1n, c2n, g1c, b1c, g2c, b2c, v_ref, w_ref, mask, n_valid,
                   id_name=None, id_bias_col=None):
        cout = offs[c2n][1]
        h1 = conv(x, w_ref, c1n, mask)
        a1 = jnp.maximum(bn(h1, v_ref, g1c, b1c, cout, n_valid), 0.0) * mask
        h2 = conv(a1, w_ref, c2n, mask)
        if id_name is None:
            res = x
        else:
            idb = v_ref[0:cout, id_bias_col:id_bias_col + 1]
            res = conv(x, w_ref, id_name, mask) + idb
        return jnp.maximum(bn(h2, v_ref, g2c, b2c, cout, n_valid) + res, 0.0) * mask

    def kernel(x_ref, w_ref, v_ref, fcw_ref, fcb_ref, out_ref):
        # TODO(synk): for realistic seq_len, tile over L with a halo'd BlockSpec grid
        # (parallel over batch/L for the 2 v7x TensorCores); at this toy size a single
        # gridless invocation keeps everything resident in a few KiB of VMEM.
        mask1 = _halo_mask(bsz, seq_len)                                  # (1, nw1) const
        mask2 = _halo_mask(bsz, lpool)                                    # (1, nw2) const
        sel = _pool_sel(bsz, lp1, lp2, lpool)                             # (nw1-2, nw2) const

        x = x_ref[...]                                                    # (emb_dims, nw1) f32

        # conv0 (bias kept: not followed by BN)
        b0 = v_ref[0:NB_FILTERS, 0:1]
        h0 = (conv(x, w_ref, "conv0", mask1) + b0) * mask1

        # conv1 / conv2 blocks (32 -> 32)
        c1 = conv_block(h0, "b1c1", "b1c2", 2, 3, 4, 5, v_ref, w_ref, mask1, n1)
        c2b = conv_block(c1, "b2c1", "b2c2", 6, 7, 8, 9, v_ref, w_ref, mask1, n1)

        # max_pool1d(3, stride=2, padding=1): 3 shifted maxes + one selection matmul.
        # (inputs are post-ReLU >= 0, so the zero halo columns act as the pool padding)
        w1 = nw1 - 2
        m = jnp.maximum(jnp.maximum(c2b[:, 0:w1], c2b[:, 1:w1 + 1]), c2b[:, 2:w1 + 2])
        pooled = jnp.dot(m, sel, preferred_element_type=jnp.float32)      # (32, nw2)

        # conv3 (32 -> 64, projected residual) / conv4 (64 -> 64)
        c3 = conv_block(pooled, "b3c1", "b3c2", 10, 11, 12, 13, v_ref, w_ref, mask2, n2,
                        id_name="b3id", id_bias_col=1)
        c4 = conv_block(c3, "b4c1", "b4c2", 14, 15, 16, 17, v_ref, w_ref, mask2, n2)

        # k-max pooling (k=8) is the identity for pooled length == 8.
        # Flatten + Linear + ReLU fused: im2col-style stacking over the 8 positions and one
        # matmul against the host-reordered FC weight; pick each batch's column, transpose
        # to a lane-dense (B, 128) output.
        wd = nw2 - lpool
        stacked = jnp.concatenate([c4[:, l:l + wd] for l in range(lpool)], axis=0)  # (8*64, wd)
        logits_all = jnp.dot(fcw_ref[...], stacked.astype(jnp.bfloat16),
                             preferred_element_type=jnp.float32)                     # (128, wd)
        cols = [logits_all[:, b * lp2 + 1:b * lp2 + 2] for b in range(bsz)]
        out_t = jnp.concatenate(cols, axis=1)                                        # (128, B)
        out = jnp.transpose(out_t) + fcb_ref[...]                                    # (B, 128)
        out_ref[...] = jnp.maximum(out, 0.0)

    return kernel


# --------------------------------- host-side params ---------------------------------

def init_params(key, emb_dims, n_blocks):
    assert n_blocks == 2, "fc_in = 8*32*len(blocks) only matches this conv stack for len(blocks)==2"
    layers, offs, total_rows = _conv_layout(emb_dims)
    c2 = 2 * NB_FILTERS
    keys = jax.random.split(key, 2 * len(layers) + 2)
    kit = iter(keys)

    w_slab = jnp.zeros((total_rows, KERNEL_SIZE * c2), jnp.float32)       # width 192
    biases = {}
    for name, cout, cin in layers:
        std = (2.0 / (KERNEL_SIZE * cout)) ** 0.5                          # normal_(0, sqrt(2/(k*out)))
        w = jax.random.normal(next(kit), (cout, cin, KERNEL_SIZE), jnp.float32) * std
        w_im2col = jnp.transpose(w, (0, 2, 1)).reshape(cout, KERNEL_SIZE * cin)
        r0 = offs[name][0]
        w_slab = w_slab.at[r0:r0 + cout, :KERNEL_SIZE * cin].set(w_im2col)
        bound = 1.0 / float(cin * KERNEL_SIZE) ** 0.5                      # torch default bias init
        biases[name] = jax.random.uniform(next(kit), (cout,), jnp.float32, -bound, bound)
    w_slab = w_slab.astype(jnp.bfloat16)

    # packed per-channel vectors: conv0 bias, identity bias, BN gammas(=1)/betas(=0)
    vec = jnp.zeros((c2, 18), jnp.float32)
    vec = vec.at[:NB_FILTERS, 0].set(biases["conv0"])
    vec = vec.at[:, 1].set(biases["b3id"])
    for col, ch in ((2, NB_FILTERS), (4, NB_FILTERS), (6, NB_FILTERS), (8, NB_FILTERS),
                    (10, c2), (12, c2), (14, c2), (16, c2)):
        vec = vec.at[:ch, col].set(1.0)
    # NOTE: conv1/conv2 biases inside each block are omitted: the training-mode BatchNorm
    # right after subtracts the batch mean, which cancels a per-channel bias exactly.

    # FC: weight ~ normal(0, 0.5), reordered from torch's (c*8 + l) flatten order to the
    # kernel's (l*C2 + c) stacking order, output dim padded to 128 lanes.
    lpool = 8
    fc_in = 8 * NB_FILTERS * n_blocks                                      # 512 == c2 * lpool
    fc_w = jax.random.normal(next(kit), (N_CLASSES, fc_in), jnp.float32) * 0.5
    w3 = fc_w.reshape(N_CLASSES, c2, lpool)
    w2 = jnp.transpose(w3, (0, 2, 1)).reshape(N_CLASSES, lpool * c2)
    fc_w_pad = jnp.zeros((FC_OUT_PAD, lpool * c2), jnp.float32).at[:N_CLASSES].set(w2)
    fc_w_pad = fc_w_pad.astype(jnp.bfloat16)
    fb = 1.0 / float(fc_in) ** 0.5
    fc_b = jax.random.uniform(next(kit), (N_CLASSES,), jnp.float32, -fb, fb)
    fc_b_pad = jnp.zeros((1, FC_OUT_PAD), jnp.float32).at[0, :N_CLASSES].set(fc_b)

    return w_slab, vec, fc_w_pad, fc_b_pad


# --------------------------------- forward wrapper ---------------------------------

def vdcnn_forward(text, embedding, params):
    w_slab, vec, fc_w, fc_b = params
    L, B = text.shape
    D = embedding.shape[1]
    lpool = (L + 2 - 3) // 2 + 1
    # TODO(synk): general k-max pooling (top-k + index sort + gather) for lpool > 8 has no clean
    # Pallas primitive here; only the lpool == 8 identity case (this config) is implemented.
    assert lpool == 8, "kmax_pooling(k=8) is only the identity when the pooled length is 8"

    # TODO(synk): embedding row-gather stays in plain JAX glue (data-dependent gather).
    emb = jnp.take(embedding, text, axis=0)                               # (L, B, D)
    # bug-for-bug replication of torch's `emb.view(-1, emb_dims, len(text))`
    # (raw row-major reshape of the (L, B, D) tensor, NOT a transpose).
    x = emb.reshape(-1, D, L).astype(jnp.float32)                         # (B, D, L)

    # re-layout to the kernel's channel-major padded form: (D, B*(L+2)) with zero halo columns
    xt = jnp.transpose(x, (1, 0, 2))
    xp = jnp.pad(xt, ((0, 0), (0, 0), (1, 1)))
    x2 = xp.reshape(D, B * (L + 2))

    kernel = _make_vdcnn_kernel(D, B, L)
    out_pad = pl.pallas_call(
        kernel,
        out_shape=jax.ShapeDtypeStruct((B, FC_OUT_PAD), jnp.float32),
        in_specs=[pl.BlockSpec(memory_space=pltpu.MemorySpace.VMEM)] * 5,
        out_specs=pl.BlockSpec(memory_space=pltpu.MemorySpace.VMEM),
    )(x2, w_slab, vec, fc_w, fc_b)
    return out_pad[:, :N_CLASSES]


if __name__ == "__main__":
    key = jax.random.PRNGKey(0)
    k_emb, k_text, k_par = jax.random.split(key, 3)

    vocab_size, emb_dims = 50, 16
    seq_len, batch = 16, 2
    blocks = (1, 2)                                                       # only len(blocks)=2 matters

    embedding = jax.random.normal(k_emb, (vocab_size, emb_dims), jnp.float32)
    text = jax.random.randint(k_text, (seq_len, batch), 0, vocab_size, jnp.int32)

    params = init_params(k_par, emb_dims, len(blocks))

    out = vdcnn_forward(text, embedding, params)
    out = jax.block_until_ready(out)
    assert out.shape == (batch, N_CLASSES)
    assert bool(jnp.all(jnp.isfinite(out)))
    print("KERNEL_OK")
</pallas_src>

<mosaic_0001>
module attributes {stable_mosaic.version = 11 : i64} {
  func.func @kernel(%arg0: memref<16x36xf32, #tpu.memory_space<vmem>>, %arg1: memref<480x192xbf16, #tpu.memory_space<vmem>>, %arg2: memref<64x18xf32, #tpu.memory_space<vmem>>, %arg3: memref<128x512xbf16, #tpu.memory_space<vmem>>, %arg4: memref<1x128xf32, #tpu.memory_space<vmem>>, %arg5: memref<2x128xf32, #tpu.memory_space<vmem>>) attributes {dimension_semantics = [], scalar_prefetch = 0 : i64, scratch_operands = 0 : i64, tpu.core_type = #tpu.core_type<tc>} {
    %cst = arith.constant 0.000000e+00 : f32
    %0 = vector.broadcast %cst : f32 to vector<1x1xf32>
    %cst_0 = arith.constant 1.000000e+00 : f32
    %1 = vector.broadcast %cst_0 : f32 to vector<1x16xf32>
    %cst_1 = arith.constant 0.000000e+00 : f32
    %2 = vector.broadcast %cst_1 : f32 to vector<1x1xf32>
    %3 = tpu.concatenate %0, %1, %2 in 1 : vector<1x1xf32>, vector<1x16xf32>, vector<1x1xf32> -> vector<1x18xf32>
    %4 = tpu.concatenate %3, %3 in 1 : vector<1x18xf32>, vector<1x18xf32> -> vector<1x36xf32>
    %cst_2 = arith.constant 0.000000e+00 : f32
    %5 = vector.broadcast %cst_2 : f32 to vector<1x1xf32>
    %cst_3 = arith.constant 1.000000e+00 : f32
    %6 = vector.broadcast %cst_3 : f32 to vector<1x8xf32>
    %cst_4 = arith.constant 0.000000e+00 : f32
    %7 = vector.broadcast %cst_4 : f32 to vector<1x1xf32>
    %8 = tpu.concatenate %5, %6, %7 in 1 : vector<1x1xf32>, vector<1x8xf32>, vector<1x1xf32> -> vector<1x10xf32>
    %9 = tpu.concatenate %8, %8 in 1 : vector<1x10xf32>, vector<1x10xf32> -> vector<1x20xf32>
    %10 = tpu.iota {dimensions = array<i32: 0>} : vector<34x10xi32>
    %11 = tpu.iota {dimensions = array<i32: 1>} : vector<34x10xi32>
    %c1_i32 = arith.constant 1 : i32
    %12 = vector.broadcast %c1_i32 : i32 to vector<34x10xi32>
    %13 = arith.cmpi sge, %11, %12 : vector<34x10xi32>
    %c8_i32 = arith.constant 8 : i32
    %14 = vector.broadcast %c8_i32 : i32 to vector<34x10xi32>
    %15 = arith.cmpi sle, %11, %14 : vector<34x10xi32>
    %16 = arith.andi %13, %15 : vector<34x10xi1>
    %c1_i32_5 = arith.constant 1 : i32
    %17 = vector.broadcast %c1_i32_5 : i32 to vector<34x10xi32>
    %18 = arith.subi %11, %17 : vector<34x10xi32>
    %c2_i32 = arith.constant 2 : i32
    %19 = vector.broadcast %c2_i32 : i32 to vector<34x10xi32>
    %20 = arith.muli %19, %18 : vector<34x10xi32>
    %c0_i32 = arith.constant 0 : i32
    %21 = vector.broadcast %c0_i32 : i32 to vector<34x10xi32>
    %22 = arith.addi %21, %20 : vector<34x10xi32>
    %23 = arith.cmpi eq, %10, %22 : vector<34x10xi32>
    %24 = arith.andi %16, %23 : vector<34x10xi1>
    %cst_6 = arith.constant 1.000000e+00 : f32
    %cst_7 = arith.constant 0.000000e+00 : f32
    %25 = vector.broadcast %cst_6 : f32 to vector<34x10xf32>
    %26 = vector.broadcast %cst_7 : f32 to vector<34x10xf32>
    %27 = arith.select %24, %25, %26 : vector<34x10xi1>, vector<34x10xf32>
    %28 = tpu.iota {dimensions = array<i32: 0>} : vector<34x10xi32>
    %29 = tpu.iota {dimensions = array<i32: 1>} : vector<34x10xi32>
    %c1_i32_8 = arith.constant 1 : i32
    %30 = vector.broadcast %c1_i32_8 : i32 to vector<34x10xi32>
    %31 = arith.cmpi sge, %29, %30 : vector<34x10xi32>
    %c8_i32_9 = arith.constant 8 : i32
    %32 = vector.broadcast %c8_i32_9 : i32 to vector<34x10xi32>
    %33 = arith.cmpi sle, %29, %32 : vector<34x10xi32>
    %34 = arith.andi %31, %33 : vector<34x10xi1>
    %c1_i32_10 = arith.constant 1 : i32
    %35 = vector.broadcast %c1_i32_10 : i32 to vector<34x10xi32>
    %36 = arith.subi %29, %35 : vector<34x10xi32>
    %c2_i32_11 = arith.constant 2 : i32
    %37 = vector.broadcast %c2_i32_11 : i32 to vector<34x10xi32>
    %38 = arith.muli %37, %36 : vector<34x10xi32>
    %c18_i32 = arith.constant 18 : i32
    %39 = vector.broadcast %c18_i32 : i32 to vector<34x10xi32>
    %40 = arith.addi %39, %38 : vector<34x10xi32>
    %41 = arith.cmpi eq, %28, %40 : vector<34x10xi32>
    %42 = arith.andi %34, %41 : vector<34x10xi1>
    %cst_12 = arith.constant 1.000000e+00 : f32
    %cst_13 = arith.constant 0.000000e+00 : f32
    %43 = vector.broadcast %cst_12 : f32 to vector<34x10xf32>
    %44 = vector.broadcast %cst_13 : f32 to vector<34x10xf32>
    %45 = arith.select %42, %43, %44 : vector<34x10xi1>, vector<34x10xf32>
    %46 = tpu.concatenate %27, %45 in 1 : vector<34x10xf32>, vector<34x10xf32> -> vector<34x20xf32>
    %c0 = arith.constant 0 : index
    %c0_14 = arith.constant 0 : index
    %47 = vector.load %arg0[%c0, %c0_14] : memref<16x36xf32, #tpu.memory_space<vmem>>, vector<16x36xf32>
    %c0_15 = arith.constant 0 : index
    %c0_16 = arith.constant 0 : index
    %48 = vector.load %arg2[%c0_15, %c0_16] : memref<64x18xf32, #tpu.memory_space<vmem>>, vector<32x1xf32>
    %c0_17 = arith.constant 0 : index
    %c0_18 = arith.constant 0 : index
    %49 = vector.load %arg1[%c0_17, %c0_18] : memref<480x192xbf16, #tpu.memory_space<vmem>>, vector<32x48xbf16>
    %50 = vector.extract_strided_slice %47 {offsets = [0, 0], sizes = [16, 34], strides = [1, 1]} : vector<16x36xf32> to vector<16x34xf32>
    %51 = vector.extract_strided_slice %47 {offsets = [0, 1], sizes = [16, 34], strides = [1, 1]} : vector<16x36xf32> to vector<16x34xf32>
    %52 = vector.extract_strided_slice %47 {offsets = [0, 2], sizes = [16, 34], strides = [1, 1]} : vector<16x36xf32> to vector<16x34xf32>
    %53 = tpu.concatenate %50, %51, %52 in 0 : vector<16x34xf32>, vector<16x34xf32>, vector<16x34xf32> -> vector<48x34xf32>
    %54 = arith.truncf %53 : vector<48x34xf32> to vector<48x34xbf16>
    %cst_19 = arith.constant dense<0.000000e+00> : vector<32x34xf32>
    %55 = tpu.matmul %49, %54, %cst_19 {dimension_numbers = #tpu.dot_dimension_numbers<[1], [0], [0], [1], [0, 0, 1, 1], [], []>} : vector<32x48xbf16>, vector<48x34xbf16>, vector<32x34xf32> -> vector<32x34xf32>
    %cst_20 = arith.constant 0.000000e+00 : f32
    %56 = vector.broadcast %cst_20 : f32 to vector<32x1xf32>
    %57 = tpu.concatenate %56, %55, %56 in 1 : vector<32x1xf32>, vector<32x34xf32>, vector<32x1xf32> -> vector<32x36xf32>
    %58 = vector.broadcast %4 : vector<1x36xf32> to vector<32x36xf32>
    %59 = arith.mulf %57, %58 : vector<32x36xf32>
    %60 = vector.broadcast %48 : vector<32x1xf32> to vector<32x36xf32>
    %61 = arith.addf %59, %60 : vector<32x36xf32>
    %62 = vector.broadcast %4 : vector<1x36xf32> to vector<32x36xf32>
    %63 = arith.mulf %61, %62 : vector<32x36xf32>
    %c32 = arith.constant 32 : index
    %c0_21 = arith.constant 0 : index
    %64 = vector.load %arg1[%c32, %c0_21] : memref<480x192xbf16, #tpu.memory_space<vmem>>, vector<32x96xbf16>
    %65 = vector.extract_strided_slice %63 {offsets = [0, 0], sizes = [32, 34], strides = [1, 1]} : vector<32x36xf32> to vector<32x34xf32>
    %66 = vector.extract_strided_slice %63 {offsets = [0, 1], sizes = [32, 34], strides = [1, 1]} : vector<32x36xf32> to vector<32x34xf32>
    %67 = vector.extract_strided_slice %63 {offsets = [0, 2], sizes = [32, 34], strides = [1, 1]} : vector<32x36xf32> to vector<32x34xf32>
    %68 = tpu.concatenate %65, %66, %67 in 0 : vector<32x34xf32>, vector<32x34xf32>, vector<32x34xf32> -> vector<96x34xf32>
    %69 = arith.truncf %68 : vector<96x34xf32> to vector<96x34xbf16>
    %cst_22 = arith.constant dense<0.000000e+00> : vector<32x34xf32>
    %70 = tpu.matmul %64, %69, %cst_22 {dimension_numbers = #tpu.dot_dimension_numbers<[1], [0], [0], [1], [0, 0, 1, 1], [], []>} : vector<32x96xbf16>, vector<96x34xbf16>, vector<32x34xf32> -> vector<32x34xf32>
    %cst_23 = arith.constant 0.000000e+00 : f32
    %71 = vector.broadcast %cst_23 : f32 to vector<32x1xf32>
    %72 = tpu.concatenate %71, %70, %71 in 1 : vector<32x1xf32>, vector<32x34xf32>, vector<32x1xf32> -> vector<32x36xf32>
    %73 = vector.broadcast %4 : vector<1x36xf32> to vector<32x36xf32>
    %74 = arith.mulf %72, %73 : vector<32x36xf32>
    %c0_24 = arith.constant 0 : index
    %c2 = arith.constant 2 : index
    %75 = vector.load %arg2[%c0_24, %c2] : memref<64x18xf32, #tpu.memory_space<vmem>>, vector<32x1xf32>
    %c0_25 = arith.constant 0 : index
    %c3 = arith.constant 3 : index
    %76 = vector.load %arg2[%c0_25, %c3] : memref<64x18xf32, #tpu.memory_space<vmem>>, vector<32x1xf32>
    %cst_26 = arith.constant dense<0.000000e+00> : vector<32xf32>
    %77 = vector.multi_reduction <add>, %74, %cst_26 [1] : vector<32x36xf32> to vector<32xf32>
    %78 = vector.shape_cast %77 : vector<32xf32> to vector<32x1xf32>
    %79 = arith.mulf %74, %74 : vector<32x36xf32>
    %cst_27 = arith.constant dense<0.000000e+00> : vector<32xf32>
    %80 = vector.multi_reduction <add>, %79, %cst_27 [1] : vector<32x36xf32> to vector<32xf32>
    %81 = vector.shape_cast %80 : vector<32xf32> to vector<32x1xf32>
    %cst_28 = arith.constant 3.200000e+01 : f32
    %82 = vector.broadcast %cst_28 : f32 to vector<32x1xf32>
    %83 = arith.divf %78, %82 : vector<32x1xf32>
    %cst_29 = arith.constant 3.200000e+01 : f32
    %84 = vector.broadcast %cst_29 : f32 to vector<32x1xf32>
    %85 = arith.divf %81, %84 : vector<32x1xf32>
    %86 = arith.mulf %83, %83 : vector<32x1xf32>
    %87 = arith.subf %85, %86 : vector<32x1xf32>
    %cst_30 = arith.constant 0.000000e+00 : f32
    %88 = vector.broadcast %cst_30 : f32 to vector<32x1xf32>
    %89 = arith.maximumf %87, %88 : vector<32x1xf32>
    %cst_31 = arith.constant 9.99999974E-6 : f32
    %90 = vector.broadcast %cst_31 : f32 to vector<32x1xf32>
    %91 = arith.addf %89, %90 : vector<32x1xf32>
    %92 = math.rsqrt %91 : vector<32x1xf32>
    %93 = vector.broadcast %83 : vector<32x1xf32> to vector<32x36xf32>
    %94 = arith.subf %74, %93 : vector<32x36xf32>
    %95 = arith.mulf %92, %75 : vector<32x1xf32>
    %96 = vector.broadcast %95 : vector<32x1xf32> to vector<32x36xf32>
    %97 = arith.mulf %94, %96 : vector<32x36xf32>
    %98 = vector.broadcast %76 : vector<32x1xf32> to vector<32x36xf32>
    %99 = arith.addf %97, %98 : vector<32x36xf32>
    %cst_32 = arith.constant 0.000000e+00 : f32
    %100 = vector.broadcast %cst_32 : f32 to vector<32x36xf32>
    %101 = arith.maximumf %99, %100 : vector<32x36xf32>
    %102 = vector.broadcast %4 : vector<1x36xf32> to vector<32x36xf32>
    %103 = arith.mulf %101, %102 : vector<32x36xf32>
    %c64 = arith.constant 64 : index
    %c0_33 = arith.constant 0 : index
    %104 = vector.load %arg1[%c64, %c0_33] : memref<480x192xbf16, #tpu.memory_space<vmem>>, vector<32x96xbf16>
    %105 = vector.extract_strided_slice %103 {offsets = [0, 0], sizes = [32, 34], strides = [1, 1]} : vector<32x36xf32> to vector<32x34xf32>
    %106 = vector.extract_strided_slice %103 {offsets = [0, 1], sizes = [32, 34], strides = [1, 1]} : vector<32x36xf32> to vector<32x34xf32>
    %107 = vector.extract_strided_slice %103 {offsets = [0, 2], sizes = [32, 34], strides = [1, 1]} : vector<32x36xf32> to vector<32x34xf32>
    %108 = tpu.concatenate %105, %106, %107 in 0 : vector<32x34xf32>, vector<32x34xf32>, vector<32x34xf32> -> vector<96x34xf32>
    %109 = arith.truncf %108 : vector<96x34xf32> to vector<96x34xbf16>
    %cst_34 = arith.constant dense<0.000000e+00> : vector<32x34xf32>
    %110 = tpu.matmul %104, %109, %cst_34 {dimension_numbers = #tpu.dot_dimension_numbers<[1], [0], [0], [1], [0, 0, 1, 1], [], []>} : vector<32x96xbf16>, vector<96x34xbf16>, vector<32x34xf32> -> vector<32x34xf32>
    %cst_35 = arith.constant 0.000000e+00 : f32
    %111 = vector.broadcast %cst_35 : f32 to vector<32x1xf32>
    %112 = tpu.concatenate %111, %110, %111 in 1 : vector<32x1xf32>, vector<32x34xf32>, vector<32x1xf32> -> vector<32x36xf32>
    %113 = vector.broadcast %4 : vector<1x36xf32> to vector<32x36xf32>
    %114 = arith.mulf %112, %113 : vector<32x36xf32>
    %c0_36 = arith.constant 0 : index
    %c4 = arith.constant 4 : index
    %115 = vector.load %arg2[%c0_36, %c4] : memref<64x18xf32, #tpu.memory_space<vmem>>, vector<32x1xf32>
    %c0_37 = arith.constant 0 : index
    %c5 = arith.constant 5 : index
    %116 = vector.load %arg2[%c0_37, %c5] : memref<64x18xf32, #tpu.memory_space<vmem>>, vector<32x1xf32>
    %cst_38 = arith.constant dense<0.000000e+00> : vector<32xf32>
    %117 = vector.multi_reduction <add>, %114, %cst_38 [1] : vector<32x36xf32> to vector<32xf32>
    %118 = vector.shape_cast %117 : vector<32xf32> to vector<32x1xf32>
    %119 = arith.mulf %114, %114 : vector<32x36xf32>
    %cst_39 = arith.constant dense<0.000000e+00> : vector<32xf32>
    %120 = vector.multi_reduction <add>, %119, %cst_39 [1] : vector<32x36xf32> to vector<32xf32>
    %121 = vector.shape_cast %120 : vector<32xf32> to vector<32x1xf32>
    %cst_40 = arith.constant 3.200000e+01 : f32
    %122 = vector.broadcast %cst_40 : f32 to vector<32x1xf32>
    %123 = arith.divf %118, %122 : vector<32x1xf32>
    %cst_41 = arith.constant 3.200000e+01 : f32
    %124 = vector.broadcast %cst_41 : f32 to vector<32x1xf32>
    %125 = arith.divf %121, %124 : vector<32x1xf32>
    %126 = arith.mulf %123, %123 : vector<32x1xf32>
    %127 = arith.subf %125, %126 : vector<32x1xf32>
    %cst_42 = arith.constant 0.000000e+00 : f32
    %128 = vector.broadcast %cst_42 : f32 to vector<32x1xf32>
    %129 = arith.maximumf %127, %128 : vector<32x1xf32>
    %cst_43 = arith.constant 9.99999974E-6 : f32
    %130 = vector.broadcast %cst_43 : f32 to vector<32x1xf32>
    %131 = arith.addf %129, %130 : vector<32x1xf32>
    %132 = math.rsqrt %131 : vector<32x1xf32>
    %133 = vector.broadcast %123 : vector<32x1xf32> to vector<32x36xf32>
    %134 = arith.subf %114, %133 : vector<32x36xf32>
    %135 = arith.mulf %132, %115 : vector<32x1xf32>
    %136 = vector.broadcast %135 : vector<32x1xf32> to vector<32x36xf32>
    %137 = arith.mulf %134, %136 : vector<32x36xf32>
    %138 = vector.broadcast %116 : vector<32x1xf32> to vector<32x36xf32>
    %139 = arith.addf %137, %138 : vector<32x36xf32>
    %140 = arith.addf %139, %63 : vector<32x36xf32>
    %cst_44 = arith.constant 0.000000e+00 : f32
    %141 = vector.broadcast %cst_44 : f32 to vector<32x36xf32>
    %142 = arith.maximumf %140, %141 : vector<32x36xf32>
    %143 = vector.broadcast %4 : vector<1x36xf32> to vector<32x36xf32>
    %144 = arith.mulf %142, %143 : vector<32x36xf32>
    %c96 = arith.constant 96 : index
    %c0_45 = arith.constant 0 : index
    %145 = vector.load %arg1[%c96, %c0_45] : memref<480x192xbf16, #tpu.memory_space<vmem>>, vector<32x96xbf16>
    %146 = vector.extract_strided_slice %144 {offsets = [0, 0], sizes = [32, 34], strides = [1, 1]} : vector<32x36xf32> to vector<32x34xf32>
    %147 = vector.extract_strided_slice %144 {offsets = [0, 1], sizes = [32, 34], strides = [1, 1]} : vector<32x36xf32> to vector<32x34xf32>
    %148 = vector.extract_strided_slice %144 {offsets = [0, 2], sizes = [32, 34], strides = [1, 1]} : vector<32x36xf32> to vector<32x34xf32>
    %149 = tpu.concatenate %146, %147, %148 in 0 : vector<32x34xf32>, vector<32x34xf32>, vector<32x34xf32> -> vector<96x34xf32>
    %150 = arith.truncf %149 : vector<96x34xf32> to vector<96x34xbf16>
    %cst_46 = arith.constant dense<0.000000e+00> : vector<32x34xf32>
    %151 = tpu.matmul %145, %150, %cst_46 {dimension_numbers = #tpu.dot_dimension_numbers<[1], [0], [0], [1], [0, 0, 1, 1], [], []>} : vector<32x96xbf16>, vector<96x34xbf16>, vector<32x34xf32> -> vector<32x34xf32>
    %cst_47 = arith.constant 0.000000e+00 : f32
    %152 = vector.broadcast %cst_47 : f32 to vector<32x1xf32>
    %153 = tpu.concatenate %152, %151, %152 in 1 : vector<32x1xf32>, vector<32x34xf32>, vector<32x1xf32> -> vector<32x36xf32>
    %154 = vector.broadcast %4 : vector<1x36xf32> to vector<32x36xf32>
    %155 = arith.mulf %153, %154 : vector<32x36xf32>
    %c0_48 = arith.constant 0 : index
    %c6 = arith.constant 6 : index
    %156 = vector.load %arg2[%c0_48, %c6] : memref<64x18xf32, #tpu.memory_space<vmem>>, vector<32x1xf32>
    %c0_49 = arith.constant 0 : index
    %c7 = arith.constant 7 : index
    %157 = vector.load %arg2[%c0_49, %c7] : memref<64x18xf32, #tpu.memory_space<vmem>>, vector<32x1xf32>
    %cst_50 = arith.constant dense<0.000000e+00> : vector<32xf32>
    %158 = vector.multi_reduction <add>, %155, %cst_50 [1] : vector<32x36xf32> to vector<32xf32>
    %159 = vector.shape_cast %158 : vector<32xf32> to vector<32x1xf32>
    %160 = arith.mulf %155, %155 : vector<32x36xf32>
    %cst_51 = arith.constant dense<0.000000e+00> : vector<32xf32>
    %161 = vector.multi_reduction <add>, %160, %cst_51 [1] : vector<32x36xf32> to vector<32xf32>
    %162 = vector.shape_cast %161 : vector<32xf32> to vector<32x1xf32>
    %cst_52 = arith.constant 3.200000e+01 : f32
    %163 = vector.broadcast %cst_52 : f32 to vector<32x1xf32>
    %164 = arith.divf %159, %163 : vector<32x1xf32>
    %cst_53 = arith.constant 3.200000e+01 : f32
    %165 = vector.broadcast %cst_53 : f32 to vector<32x1xf32>
    %166 = arith.divf %162, %165 : vector<32x1xf32>
    %167 = arith.mulf %164, %164 : vector<32x1xf32>
    %168 = arith.subf %166, %167 : vector<32x1xf32>
    %cst_54 = arith.constant 0.000000e+00 : f32
    %169 = vector.broadcast %cst_54 : f32 to vector<32x1xf32>
    %170 = arith.maximumf %168, %169 : vector<32x1xf32>
    %cst_55 = arith.constant 9.99999974E-6 : f32
    %171 = vector.broadcast %cst_55 : f32 to vector<32x1xf32>
    %172 = arith.addf %170, %171 : vector<32x1xf32>
    %173 = math.rsqrt %172 : vector<32x1xf32>
    %174 = vector.broadcast %164 : vector<32x1xf32> to vector<32x36xf32>
    %175 = arith.subf %155, %174 : vector<32x36xf32>
    %176 = arith.mulf %173, %156 : vector<32x1xf32>
    %177 = vector.broadcast %176 : vector<32x1xf32> to vector<32x36xf32>
    %178 = arith.mulf %175, %177 : vector<32x36xf32>
    %179 = vector.broadcast %157 : vector<32x1xf32> to vector<32x36xf32>
    %180 = arith.addf %178, %179 : vector<32x36xf32>
    %cst_56 = arith.constant 0.000000e+00 : f32
    %181 = vector.broadcast %cst_56 : f32 to vector<32x36xf32>
    %182 = arith.maximumf %180, %181 : vector<32x36xf32>
    %183 = vector.broadcast %4 : vector<1x36xf32> to vector<32x36xf32>
    %184 = arith.mulf %182, %183 : vector<32x36xf32>
    %c128 = arith.constant 128 : index
    %c0_57 = arith.constant 0 : index
    %185 = vector.load %arg1[%c128, %c0_57] : memref<480x192xbf16, #tpu.memory_space<vmem>>, vector<32x96xbf16>
    %186 = vector.extract_strided_slice %184 {offsets = [0, 0], sizes = [32, 34], strides = [1, 1]} : vector<32x36xf32> to vector<32x34xf32>
    %187 = vector.extract_strided_slice %184 {offsets = [0, 1], sizes = [32, 34], strides = [1, 1]} : vector<32x36xf32> to vector<32x34xf32>
    %188 = vector.extract_strided_slice %184 {offsets = [0, 2], sizes = [32, 34], strides = [1, 1]} : vector<32x36xf32> to vector<32x34xf32>
    %189 = tpu.concatenate %186, %187, %188 in 0 : vector<32x34xf32>, vector<32x34xf32>, vector<32x34xf32> -> vector<96x34xf32>
    %190 = arith.truncf %189 : vector<96x34xf32> to vector<96x34xbf16>
    %cst_58 = arith.constant dense<0.000000e+00> : vector<32x34xf32>
    %191 = tpu.matmul %185, %190, %cst_58 {dimension_numbers = #tpu.dot_dimension_numbers<[1], [0], [0], [1], [0, 0, 1, 1], [], []>} : vector<32x96xbf16>, vector<96x34xbf16>, vector<32x34xf32> -> vector<32x34xf32>
    %cst_59 = arith.constant 0.000000e+00 : f32
    %192 = vector.broadcast %cst_59 : f32 to vector<32x1xf32>
    %193 = tpu.concatenate %192, %191, %192 in 1 : vector<32x1xf32>, vector<32x34xf32>, vector<32x1xf32> -> vector<32x36xf32>
    %194 = vector.broadcast %4 : vector<1x36xf32> to vector<32x36xf32>
    %195 = arith.mulf %193, %194 : vector<32x36xf32>
    %c0_60 = arith.constant 0 : index
    %c8 = arith.constant 8 : index
    %196 = vector.load %arg2[%c0_60, %c8] : memref<64x18xf32, #tpu.memory_space<vmem>>, vector<32x1xf32>
    %c0_61 = arith.constant 0 : index
    %c9 = arith.constant 9 : index
    %197 = vector.load %arg2[%c0_61, %c9] : memref<64x18xf32, #tpu.memory_space<vmem>>, vector<32x1xf32>
    %cst_62 = arith.constant dense<0.000000e+00> : vector<32xf32>
    %198 = vector.multi_reduction <add>, %195, %cst_62 [1] : vector<32x36xf32> to vector<32xf32>
    %199 = vector.shape_cast %198 : vector<32xf32> to vector<32x1xf32>
    %200 = arith.mulf %195, %195 : vector<32x36xf32>
    %cst_63 = arith.constant dense<0.000000e+00> : vector<32xf32>
    %201 = vector.multi_reduction <add>, %200, %cst_63 [1] : vector<32x36xf32> to vector<32xf32>
    %202 = vector.shape_cast %201 : vector<32xf32> to vector<32x1xf32>
    %cst_64 = arith.constant 3.200000e+01 : f32
    %203 = vector.broadcast %cst_64 : f32 to vector<32x1xf32>
    %204 = arith.divf %199, %203 : vector<32x1xf32>
    %cst_65 = arith.constant 3.200000e+01 : f32
    %205 = vector.broadcast %cst_65 : f32 to vector<32x1xf32>
    %206 = arith.divf %202, %205 : vector<32x1xf32>
    %207 = arith.mulf %204, %204 : vector<32x1xf32>
    %208 = arith.subf %206, %207 : vector<32x1xf32>
    %cst_66 = arith.constant 0.000000e+00 : f32
    %209 = vector.broadcast %cst_66 : f32 to vector<32x1xf32>
    %210 = arith.maximumf %208, %209 : vector<32x1xf32>
    %cst_67 = arith.constant 9.99999974E-6 : f32
    %211 = vector.broadcast %cst_67 : f32 to vector<32x1xf32>
    %212 = arith.addf %210, %211 : vector<32x1xf32>
    %213 = math.rsqrt %212 : vector<32x1xf32>
    %214 = vector.broadcast %204 : vector<32x1xf32> to vector<32x36xf32>
    %215 = arith.subf %195, %214 : vector<32x36xf32>
    %216 = arith.mulf %213, %196 : vector<32x1xf32>
    %217 = vector.broadcast %216 : vector<32x1xf32> to vector<32x36xf32>
    %218 = arith.mulf %215, %217 : vector<32x36xf32>
    %219 = vector.broadcast %197 : vector<32x1xf32> to vector<32x36xf32>
    %220 = arith.addf %218, %219 : vector<32x36xf32>
    %221 = arith.addf %220, %144 : vector<32x36xf32>
    %cst_68 = arith.constant 0.000000e+00 : f32
    %222 = vector.broadcast %cst_68 : f32 to vector<32x36xf32>
    %223 = arith.maximumf %221, %222 : vector<32x36xf32>
    %224 = vector.broadcast %4 : vector<1x36xf32> to vector<32x36xf32>
    %225 = arith.mulf %223, %224 : vector<32x36xf32>
    %226 = vector.extract_strided_slice %225 {offsets = [0, 0], sizes = [32, 34], strides = [1, 1]} : vector<32x36xf32> to vector<32x34xf32>
    %227 = vector.extract_strided_slice %225 {offsets = [0, 1], sizes = [32, 34], strides = [1, 1]} : vector<32x36xf32> to vector<32x34xf32>
    %228 = arith.maximumf %226, %227 : vector<32x34xf32>
    %229 = vector.extract_strided_slice %225 {offsets = [0, 2], sizes = [32, 34], strides = [1, 1]} : vector<32x36xf32> to vector<32x34xf32>
    %230 = arith.maximumf %228, %229 : vector<32x34xf32>
    %cst_69 = arith.constant dense<0.000000e+00> : vector<32x20xf32>
    %231 = tpu.matmul %230, %46, %cst_69 {dimension_numbers = #tpu.dot_dimension_numbers<[1], [0], [0], [1], [0, 0, 1, 1], [], []>} : vector<32x34xf32>, vector<34x20xf32>, vector<32x20xf32> -> vector<32x20xf32>
    %c160 = arith.constant 160 : index
    %c0_70 = arith.constant 0 : index
    %232 = vector.load %arg1[%c160, %c0_70] : memref<480x192xbf16, #tpu.memory_space<vmem>>, vector<64x96xbf16>
    %233 = vector.extract_strided_slice %231 {offsets = [0, 0], sizes = [32, 18], strides = [1, 1]} : vector<32x20xf32> to vector<32x18xf32>
    %234 = vector.extract_strided_slice %231 {offsets = [0, 1], sizes = [32, 18], strides = [1, 1]} : vector<32x20xf32> to vector<32x18xf32>
    %235 = vector.extract_strided_slice %231 {offsets = [0, 2], sizes = [32, 18], strides = [1, 1]} : vector<32x20xf32> to vector<32x18xf32>
    %236 = tpu.concatenate %233, %234, %235 in 0 : vector<32x18xf32>, vector<32x18xf32>, vector<32x18xf32> -> vector<96x18xf32>
    %237 = arith.truncf %236 : vector<96x18xf32> to vector<96x18xbf16>
    %cst_71 = arith.constant dense<0.000000e+00> : vector<64x18xf32>
    %238 = tpu.matmul %232, %237, %cst_71 {dimension_numbers = #tpu.dot_dimension_numbers<[1], [0], [0], [1], [0, 0, 1, 1], [], []>} : vector<64x96xbf16>, vector<96x18xbf16>, vector<64x18xf32> -> vector<64x18xf32>
    %cst_72 = arith.constant 0.000000e+00 : f32
    %239 = vector.broadcast %cst_72 : f32 to vector<64x1xf32>
    %240 = tpu.concatenate %239, %238, %239 in 1 : vector<64x1xf32>, vector<64x18xf32>, vector<64x1xf32> -> vector<64x20xf32>
    %241 = vector.broadcast %9 : vector<1x20xf32> to vector<64x20xf32>
    %242 = arith.mulf %240, %241 : vector<64x20xf32>
    %c0_73 = arith.constant 0 : index
    %c10 = arith.constant 10 : index
    %243 = vector.load %arg2[%c0_73, %c10] : memref<64x18xf32, #tpu.memory_space<vmem>>, vector<64x1xf32>
    %c0_74 = arith.constant 0 : index
    %c11 = arith.constant 11 : index
    %244 = vector.load %arg2[%c0_74, %c11] : memref<64x18xf32, #tpu.memory_space<vmem>>, vector<64x1xf32>
    %cst_75 = arith.constant dense<0.000000e+00> : vector<64xf32>
    %245 = vector.multi_reduction <add>, %242, %cst_75 [1] : vector<64x20xf32> to vector<64xf32>
    %246 = vector.shape_cast %245 : vector<64xf32> to vector<64x1xf32>
    %247 = arith.mulf %242, %242 : vector<64x20xf32>
    %cst_76 = arith.constant dense<0.000000e+00> : vector<64xf32>
    %248 = vector.multi_reduction <add>, %247, %cst_76 [1] : vector<64x20xf32> to vector<64xf32>
    %249 = vector.shape_cast %248 : vector<64xf32> to vector<64x1xf32>
    %cst_77 = arith.constant 1.600000e+01 : f32
    %250 = vector.broadcast %cst_77 : f32 to vector<64x1xf32>
    %251 = arith.divf %246, %250 : vector<64x1xf32>
    %cst_78 = arith.constant 1.600000e+01 : f32
    %252 = vector.broadcast %cst_78 : f32 to vector<64x1xf32>
    %253 = arith.divf %249, %252 : vector<64x1xf32>
    %254 = arith.mulf %251, %251 : vector<64x1xf32>
    %255 = arith.subf %253, %254 : vector<64x1xf32>
    %cst_79 = arith.constant 0.000000e+00 : f32
    %256 = vector.broadcast %cst_79 : f32 to vector<64x1xf32>
    %257 = arith.maximumf %255, %256 : vector<64x1xf32>
    %cst_80 = arith.constant 9.99999974E-6 : f32
    %258 = vector.broadcast %cst_80 : f32 to vector<64x1xf32>
    %259 = arith.addf %257, %258 : vector<64x1xf32>
    %260 = math.rsqrt %259 : vector<64x1xf32>
    %261 = vector.broadcast %251 : vector<64x1xf32> to vector<64x20xf32>
    %262 = arith.subf %242, %261 : vector<64x20xf32>
    %263 = arith.mulf %260, %243 : vector<64x1xf32>
    %264 = vector.broadcast %263 : vector<64x1xf32> to vector<64x20xf32>
    %265 = arith.mulf %262, %264 : vector<64x20xf32>
    %266 = vector.broadcast %244 : vector<64x1xf32> to vector<64x20xf32>
    %267 = arith.addf %265, %266 : vector<64x20xf32>
    %cst_81 = arith.constant 0.000000e+00 : f32
    %268 = vector.broadcast %cst_81 : f32 to vector<64x20xf32>
    %269 = arith.maximumf %267, %268 : vector<64x20xf32>
    %270 = vector.broadcast %9 : vector<1x20xf32> to vector<64x20xf32>
    %271 = arith.mulf %269, %270 : vector<64x20xf32>
    %c224 = arith.constant 224 : index
    %c0_82 = arith.constant 0 : index
    %272 = vector.load %arg1[%c224, %c0_82] : memref<480x192xbf16, #tpu.memory_space<vmem>>, vector<64x192xbf16>
    %273 = vector.extract_strided_slice %271 {offsets = [0, 0], sizes = [64, 18], strides = [1, 1]} : vector<64x20xf32> to vector<64x18xf32>
    %274 = vector.extract_strided_slice %271 {offsets = [0, 1], sizes = [64, 18], strides = [1, 1]} : vector<64x20xf32> to vector<64x18xf32>
    %275 = vector.extract_strided_slice %271 {offsets = [0, 2], sizes = [64, 18], strides = [1, 1]} : vector<64x20xf32> to vector<64x18xf32>
    %276 = tpu.concatenate %273, %274, %275 in 0 : vector<64x18xf32>, vector<64x18xf32>, vector<64x18xf32> -> vector<192x18xf32>
    %277 = arith.truncf %276 : vector<192x18xf32> to vector<192x18xbf16>
    %cst_83 = arith.constant dense<0.000000e+00> : vector<64x18xf32>
    %278 = tpu.matmul %272, %277, %cst_83 {dimension_numbers = #tpu.dot_dimension_numbers<[1], [0], [0], [1], [0, 0, 1, 1], [], []>} : vector<64x192xbf16>, vector<192x18xbf16>, vector<64x18xf32> -> vector<64x18xf32>
    %cst_84 = arith.constant 0.000000e+00 : f32
    %279 = vector.broadcast %cst_84 : f32 to vector<64x1xf32>
    %280 = tpu.concatenate %279, %278, %279 in 1 : vector<64x1xf32>, vector<64x18xf32>, vector<64x1xf32> -> vector<64x20xf32>
    %281 = vector.broadcast %9 : vector<1x20xf32> to vector<64x20xf32>
    %282 = arith.mulf %280, %281 : vector<64x20xf32>
    %c0_85 = arith.constant 0 : index
    %c1 = arith.constant 1 : index
    %283 = vector.load %arg2[%c0_85, %c1] : memref<64x18xf32, #tpu.memory_space<vmem>>, vector<64x1xf32>
    %c288 = arith.constant 288 : index
    %c0_86 = arith.constant 0 : index
    %284 = vector.load %arg1[%c288, %c0_86] : memref<480x192xbf16, #tpu.memory_space<vmem>>, vector<64x96xbf16>
    %285 = vector.extract_strided_slice %231 {offsets = [0, 0], sizes = [32, 18], strides = [1, 1]} : vector<32x20xf32> to vector<32x18xf32>
    %286 = vector.extract_strided_slice %231 {offsets = [0, 1], sizes = [32, 18], strides = [1, 1]} : vector<32x20xf32> to vector<32x18xf32>
    %287 = vector.extract_strided_slice %231 {offsets = [0, 2], sizes = [32, 18], strides = [1, 1]} : vector<32x20xf32> to vector<32x18xf32>
    %288 = tpu.concatenate %285, %286, %287 in 0 : vector<32x18xf32>, vector<32x18xf32>, vector<32x18xf32> -> vector<96x18xf32>
    %289 = arith.truncf %288 : vector<96x18xf32> to vector<96x18xbf16>
    %cst_87 = arith.constant dense<0.000000e+00> : vector<64x18xf32>
    %290 = tpu.matmul %284, %289, %cst_87 {dimension_numbers = #tpu.dot_dimension_numbers<[1], [0], [0], [1], [0, 0, 1, 1], [], []>} : vector<64x96xbf16>, vector<96x18xbf16>, vector<64x18xf32> -> vector<64x18xf32>
    %cst_88 = arith.constant 0.000000e+00 : f32
    %291 = vector.broadcast %cst_88 : f32 to vector<64x1xf32>
    %292 = tpu.concatenate %291, %290, %291 in 1 : vector<64x1xf32>, vector<64x18xf32>, vector<64x1xf32> -> vector<64x20xf32>
    %293 = vector.broadcast %9 : vector<1x20xf32> to vector<64x20xf32>
    %294 = arith.mulf %292, %293 : vector<64x20xf32>
    %295 = vector.broadcast %283 : vector<64x1xf32> to vector<64x20xf32>
    %296 = arith.addf %294, %295 : vector<64x20xf32>
    %c0_89 = arith.constant 0 : index
    %c12 = arith.constant 12 : index
    %297 = vector.load %arg2[%c0_89, %c12] : memref<64x18xf32, #tpu.memory_space<vmem>>, vector<64x1xf32>
    %c0_90 = arith.constant 0 : index
    %c13 = arith.constant 13 : index
    %298 = vector.load %arg2[%c0_90, %c13] : memref<64x18xf32, #tpu.memory_space<vmem>>, vector<64x1xf32>
    %cst_91 = arith.constant dense<0.000000e+00> : vector<64xf32>
    %299 = vector.multi_reduction <add>, %282, %cst_91 [1] : vector<64x20xf32> to vector<64xf32>
    %300 = vector.shape_cast %299 : vector<64xf32> to vector<64x1xf32>
    %301 = arith.mulf %282, %282 : vector<64x20xf32>
    %cst_92 = arith.constant dense<0.000000e+00> : vector<64xf32>
    %302 = vector.multi_reduction <add>, %301, %cst_92 [1] : vector<64x20xf32> to vector<64xf32>
    %303 = vector.shape_cast %302 : vector<64xf32> to vector<64x1xf32>
    %cst_93 = arith.constant 1.600000e+01 : f32
    %304 = vector.broadcast %cst_93 : f32 to vector<64x1xf32>
    %305 = arith.divf %300, %304 : vector<64x1xf32>
    %cst_94 = arith.constant 1.600000e+01 : f32
    %306 = vector.broadcast %cst_94 : f32 to vector<64x1xf32>
    %307 = arith.divf %303, %306 : vector<64x1xf32>
    %308 = arith.mulf %305, %305 : vector<64x1xf32>
    %309 = arith.subf %307, %308 : vector<64x1xf32>
    %cst_95 = arith.constant 0.000000e+00 : f32
    %310 = vector.broadcast %cst_95 : f32 to vector<64x1xf32>
    %311 = arith.maximumf %309, %310 : vector<64x1xf32>
    %cst_96 = arith.constant 9.99999974E-6 : f32
    %312 = vector.broadcast %cst_96 : f32 to vector<64x1xf32>
    %313 = arith.addf %311, %312 : vector<64x1xf32>
    %314 = math.rsqrt %313 : vector<64x1xf32>
    %315 = vector.broadcast %305 : vector<64x1xf32> to vector<64x20xf32>
    %316 = arith.subf %282, %315 : vector<64x20xf32>
    %317 = arith.mulf %314, %297 : vector<64x1xf32>
    %318 = vector.broadcast %317 : vector<64x1xf32> to vector<64x20xf32>
    %319 = arith.mulf %316, %318 : vector<64x20xf32>
    %320 = vector.broadcast %298 : vector<64x1xf32> to vector<64x20xf32>
    %321 = arith.addf %319, %320 : vector<64x20xf32>
    %322 = arith.addf %321, %296 : vector<64x20xf32>
    %cst_97 = arith.constant 0.000000e+00 : f32
    %323 = vector.broadcast %cst_97 : f32 to vector<64x20xf32>
    %324 = arith.maximumf %322, %323 : vector<64x20xf32>
    %325 = vector.broadcast %9 : vector<1x20xf32> to vector<64x20xf32>
    %326 = arith.mulf %324, %325 : vector<64x20xf32>
    %c352 = arith.constant 352 : index
    %c0_98 = arith.constant 0 : index
    %327 = vector.load %arg1[%c352, %c0_98] : memref<480x192xbf16, #tpu.memory_space<vmem>>, vector<64x192xbf16>
    %328 = vector.extract_strided_slice %326 {offsets = [0, 0], sizes = [64, 18], strides = [1, 1]} : vector<64x20xf32> to vector<64x18xf32>
    %329 = vector.extract_strided_slice %326 {offsets = [0, 1], sizes = [64, 18], strides = [1, 1]} : vector<64x20xf32> to vector<64x18xf32>
    %330 = vector.extract_strided_slice %326 {offsets = [0, 2], sizes = [64, 18], strides = [1, 1]} : vector<64x20xf32> to vector<64x18xf32>
    %331 = tpu.concatenate %328, %329, %330 in 0 : vector<64x18xf32>, vector<64x18xf32>, vector<64x18xf32> -> vector<192x18xf32>
    %332 = arith.truncf %331 : vector<192x18xf32> to vector<192x18xbf16>
    %cst_99 = arith.constant dense<0.000000e+00> : vector<64x18xf32>
    %333 = tpu.matmul %327, %332, %cst_99 {dimension_numbers = #tpu.dot_dimension_numbers<[1], [0], [0], [1], [0, 0, 1, 1], [], []>} : vector<64x192xbf16>, vector<192x18xbf16>, vector<64x18xf32> -> vector<64x18xf32>
    %cst_100 = arith.constant 0.000000e+00 : f32
    %334 = vector.broadcast %cst_100 : f32 to vector<64x1xf32>
    %335 = tpu.concatenate %334, %333, %334 in 1 : vector<64x1xf32>, vector<64x18xf32>, vector<64x1xf32> -> vector<64x20xf32>
    %336 = vector.broadcast %9 : vector<1x20xf32> to vector<64x20xf32>
    %337 = arith.mulf %335, %336 : vector<64x20xf32>
    %c0_101 = arith.constant 0 : index
    %c14 = arith.constant 14 : index
    %338 = vector.load %arg2[%c0_101, %c14] : memref<64x18xf32, #tpu.memory_space<vmem>>, vector<64x1xf32>
    %c0_102 = arith.constant 0 : index
    %c15 = arith.constant 15 : index
    %339 = vector.load %arg2[%c0_102, %c15] : memref<64x18xf32, #tpu.memory_space<vmem>>, vector<64x1xf32>
    %cst_103 = arith.constant dense<0.000000e+00> : vector<64xf32>
    %340 = vector.multi_reduction <add>, %337, %cst_103 [1] : vector<64x20xf32> to vector<64xf32>
    %341 = vector.shape_cast %340 : vector<64xf32> to vector<64x1xf32>
    %342 = arith.mulf %337, %337 : vector<64x20xf32>
    %cst_104 = arith.constant dense<0.000000e+00> : vector<64xf32>
    %343 = vector.multi_reduction <add>, %342, %cst_104 [1] : vector<64x20xf32> to vector<64xf32>
    %344 = vector.shape_cast %343 : vector<64xf32> to vector<64x1xf32>
    %cst_105 = arith.constant 1.600000e+01 : f32
    %345 = vector.broadcast %cst_105 : f32 to vector<64x1xf32>
    %346 = arith.divf %341, %345 : vector<64x1xf32>
    %cst_106 = arith.constant 1.600000e+01 : f32
    %347 = vector.broadcast %cst_106 : f32 to vector<64x1xf32>
    %348 = arith.divf %344, %347 : vector<64x1xf32>
    %349 = arith.mulf %346, %346 : vector<64x1xf32>
    %350 = arith.subf %348, %349 : vector<64x1xf32>
    %cst_107 = arith.constant 0.000000e+00 : f32
    %351 = vector.broadcast %cst_107 : f32 to vector<64x1xf32>
    %352 = arith.maximumf %350, %351 : vector<64x1xf32>
    %cst_108 = arith.constant 9.99999974E-6 : f32
    %353 = vector.broadcast %cst_108 : f32 to vector<64x1xf32>
    %354 = arith.addf %352, %353 : vector<64x1xf32>
    %355 = math.rsqrt %354 : vector<64x1xf32>
    %356 = vector.broadcast %346 : vector<64x1xf32> to vector<64x20xf32>
    %357 = arith.subf %337, %356 : vector<64x20xf32>
    %358 = arith.mulf %355, %338 : vector<64x1xf32>
    %359 = vector.broadcast %358 : vector<64x1xf32> to vector<64x20xf32>
    %360 = arith.mulf %357, %359 : vector<64x20xf32>
    %361 = vector.broadcast %339 : vector<64x1xf32> to vector<64x20xf32>
    %362 = arith.addf %360, %361 : vector<64x20xf32>
    %cst_109 = arith.constant 0.000000e+00 : f32
    %363 = vector.broadcast %cst_109 : f32 to vector<64x20xf32>
    %364 = arith.maximumf %362, %363 : vector<64x20xf32>
    %365 = vector.broadcast %9 : vector<1x20xf32> to vector<64x20xf32>
    %366 = arith.mulf %364, %365 : vector<64x20xf32>
    %c416 = arith.constant 416 : index
    %c0_110 = arith.constant 0 : index
    %367 = vector.load %arg1[%c416, %c0_110] : memref<480x192xbf16, #tpu.memory_space<vmem>>, vector<64x192xbf16>
    %368 = vector.extract_strided_slice %366 {offsets = [0, 0], sizes = [64, 18], strides = [1, 1]} : vector<64x20xf32> to vector<64x18xf32>
    %369 = vector.extract_strided_slice %366 {offsets = [0, 1], sizes = [64, 18], strides = [1, 1]} : vector<64x20xf32> to vector<64x18xf32>
    %370 = vector.extract_strided_slice %366 {offsets = [0, 2], sizes = [64, 18], strides = [1, 1]} : vector<64x20xf32> to vector<64x18xf32>
    %371 = tpu.concatenate %368, %369, %370 in 0 : vector<64x18xf32>, vector<64x18xf32>, vector<64x18xf32> -> vector<192x18xf32>
    %372 = arith.truncf %371 : vector<192x18xf32> to vector<192x18xbf16>
    %cst_111 = arith.constant dense<0.000000e+00> : vector<64x18xf32>
    %373 = tpu.matmul %367, %372, %cst_111 {dimension_numbers = #tpu.dot_dimension_numbers<[1], [0], [0], [1], [0, 0, 1, 1], [], []>} : vector<64x192xbf16>, vector<192x18xbf16>, vector<64x18xf32> -> vector<64x18xf32>
    %cst_112 = arith.constant 0.000000e+00 : f32
    %374 = vector.broadcast %cst_112 : f32 to vector<64x1xf32>
    %375 = tpu.concatenate %374, %373, %374 in 1 : vector<64x1xf32>, vector<64x18xf32>, vector<64x1xf32> -> vector<64x20xf32>
    %376 = vector.broadcast %9 : vector<1x20xf32> to vector<64x20xf32>
    %377 = arith.mulf %375, %376 : vector<64x20xf32>
    %c0_113 = arith.constant 0 : index
    %c16 = arith.constant 16 : index
    %378 = vector.load %arg2[%c0_113, %c16] : memref<64x18xf32, #tpu.memory_space<vmem>>, vector<64x1xf32>
    %c0_114 = arith.constant 0 : index
    %c17 = arith.constant 17 : index
    %379 = vector.load %arg2[%c0_114, %c17] : memref<64x18xf32, #tpu.memory_space<vmem>>, vector<64x1xf32>
    %cst_115 = arith.constant dense<0.000000e+00> : vector<64xf32>
    %380 = vector.multi_reduction <add>, %377, %cst_115 [1] : vector<64x20xf32> to vector<64xf32>
    %381 = vector.shape_cast %380 : vector<64xf32> to vector<64x1xf32>
    %382 = arith.mulf %377, %377 : vector<64x20xf32>
    %cst_116 = arith.constant dense<0.000000e+00> : vector<64xf32>
    %383 = vector.multi_reduction <add>, %382, %cst_116 [1] : vector<64x20xf32> to vector<64xf32>
    %384 = vector.shape_cast %383 : vector<64xf32> to vector<64x1xf32>
    %cst_117 = arith.constant 1.600000e+01 : f32
    %385 = vector.broadcast %cst_117 : f32 to vector<64x1xf32>
    %386 = arith.divf %381, %385 : vector<64x1xf32>
    %cst_118 = arith.constant 1.600000e+01 : f32
    %387 = vector.broadcast %cst_118 : f32 to vector<64x1xf32>
    %388 = arith.divf %384, %387 : vector<64x1xf32>
    %389 = arith.mulf %386, %386 : vector<64x1xf32>
    %390 = arith.subf %388, %389 : vector<64x1xf32>
    %cst_119 = arith.constant 0.000000e+00 : f32
    %391 = vector.broadcast %cst_119 : f32 to vector<64x1xf32>
    %392 = arith.maximumf %390, %391 : vector<64x1xf32>
    %cst_120 = arith.constant 9.99999974E-6 : f32
    %393 = vector.broadcast %cst_120 : f32 to vector<64x1xf32>
    %394 = arith.addf %392, %393 : vector<64x1xf32>
    %395 = math.rsqrt %394 : vector<64x1xf32>
    %396 = vector.broadcast %386 : vector<64x1xf32> to vector<64x20xf32>
    %397 = arith.subf %377, %396 : vector<64x20xf32>
    %398 = arith.mulf %395, %378 : vector<64x1xf32>
    %399 = vector.broadcast %398 : vector<64x1xf32> to vector<64x20xf32>
    %400 = arith.mulf %397, %399 : vector<64x20xf32>
    %401 = vector.broadcast %379 : vector<64x1xf32> to vector<64x20xf32>
    %402 = arith.addf %400, %401 : vector<64x20xf32>
    %403 = arith.addf %402, %326 : vector<64x20xf32>
    %cst_121 = arith.constant 0.000000e+00 : f32
    %404 = vector.broadcast %cst_121 : f32 to vector<64x20xf32>
    %405 = arith.maximumf %403, %404 : vector<64x20xf32>
    %406 = vector.broadcast %9 : vector<1x20xf32> to vector<64x20xf32>
    %407 = arith.mulf %405, %406 : vector<64x20xf32>
    %408 = vector.extract_strided_slice %407 {offsets = [0, 0], sizes = [64, 12], strides = [1, 1]} : vector<64x20xf32> to vector<64x12xf32>
    %409 = vector.extract_strided_slice %407 {offsets = [0, 1], sizes = [64, 12], strides = [1, 1]} : vector<64x20xf32> to vector<64x12xf32>
    %410 = vector.extract_strided_slice %407 {offsets = [0, 2], sizes = [64, 12], strides = [1, 1]} : vector<64x20xf32> to vector<64x12xf32>
    %411 = vector.extract_strided_slice %407 {offsets = [0, 3], sizes = [64, 12], strides = [1, 1]} : vector<64x20xf32> to vector<64x12xf32>
    %412 = vector.extract_strided_slice %407 {offsets = [0, 4], sizes = [64, 12], strides = [1, 1]} : vector<64x20xf32> to vector<64x12xf32>
    %413 = vector.extract_strided_slice %407 {offsets = [0, 5], sizes = [64, 12], strides = [1, 1]} : vector<64x20xf32> to vector<64x12xf32>
    %414 = vector.extract_strided_slice %407 {offsets = [0, 6], sizes = [64, 12], strides = [1, 1]} : vector<64x20xf32> to vector<64x12xf32>
    %415 = vector.extract_strided_slice %407 {offsets = [0, 7], sizes = [64, 12], strides = [1, 1]} : vector<64x20xf32> to vector<64x12xf32>
    %416 = tpu.concatenate %408, %409, %410, %411, %412, %413, %414, %415 in 0 : vector<64x12xf32>, vector<64x12xf32>, vector<64x12xf32>, vector<64x12xf32>, vector<64x12xf32>, vector<64x12xf32>, vector<64x12xf32>, vector<64x12xf32> -> vector<512x12xf32>
    %c0_122 = arith.constant 0 : index
    %c0_123 = arith.constant 0 : index
    %417 = vector.load %arg3[%c0_122, %c0_123] : memref<128x512xbf16, #tpu.memory_space<vmem>>, vector<128x512xbf16>
    %418 = arith.truncf %416 : vector<512x12xf32> to vector<512x12xbf16>
    %cst_124 = arith.constant dense<0.000000e+00> : vector<128x12xf32>
    %419 = tpu.matmul %417, %418, %cst_124 {dimension_numbers = #tpu.dot_dimension_numbers<[1], [0], [0], [1], [0, 0, 1, 1], [], []>} : vector<128x512xbf16>, vector<512x12xbf16>, vector<128x12xf32> -> vector<128x12xf32>
    %420 = vector.extract_strided_slice %419 {offsets = [0, 1], sizes = [128, 1], strides = [1, 1]} : vector<128x12xf32> to vector<128x1xf32>
    %421 = vector.extract_strided_slice %419 {offsets = [0, 11], sizes = [128, 1], strides = [1, 1]} : vector<128x12xf32> to vector<128x1xf32>
    %422 = tpu.concatenate %420, %421 in 1 : vector<128x1xf32>, vector<128x1xf32> -> vector<128x2xf32>
    %423 = tpu.transpose %422, [1, 0] : vector<128x2xf32> -> vector<2x128xf32>
    %c0_125 = arith.constant 0 : index
    %c0_126 = arith.constant 0 : index
    %424 = vector.load %arg4[%c0_125, %c0_126] : memref<1x128xf32, #tpu.memory_space<vmem>>, vector<1x128xf32>
    %425 = vector.broadcast %424 : vector<1x128xf32> to vector<2x128xf32>
    %426 = arith.addf %423, %425 : vector<2x128xf32>
    %cst_127 = arith.constant 0.000000e+00 : f32
    %427 = vector.broadcast %cst_127 : f32 to vector<2x128xf32>
    %428 = arith.maximumf %426, %427 : vector<2x128xf32>
    %c0_128 = arith.constant 0 : index
    %c0_129 = arith.constant 0 : index
    %429 = vector.load %arg5[%c0_128, %c0_129] : memref<2x128xf32, #tpu.memory_space<vmem>>, vector<2x128xf32>
    tpu.vector_store %arg5[%c0_128, %c0_129], %428 {strides = array<i32>} : memref<2x128xf32, #tpu.memory_space<vmem>>, vector<2x128xf32>,
    return
  }
}

</mosaic_0001>

<bundles_post_ra>
// kernel: tpu_custom_call.1
= control target key start
LH: loop header
LB: loop body
LE: loop exit
PB: predicated region body
PF: predicated region fallthrough
CT: control target
= control target key end

     0   :  { %vm146_vm0 = vcmask 392192   ;;  %s5424_s24 = smov 127   ;;  %v5425_v6 = vmov 0   ;;  %s5426_s28 = smov 126   ;;  %s7353_s0 = inlined_call_operand.vmem [shape: f32[16,36], index: 0, kind: input, shape index: {}]   ;;  %s7354_s1 = inlined_call_operand.vmem [shape: bf16[480,192], index: 1, kind: input, shape index: {}]   ;;  %s7355_s2 = inlined_call_operand.vmem [shape: f32[64,18], index: 2, kind: input, shape index: {}]   ;;  %s7356_s3 = inlined_call_operand.vmem [shape: bf16[128,512], index: 3, kind: input, shape index: {}]   ;;  %s7357_s4 = inlined_call_operand.vmem [shape: f32[1,128], index: 4, kind: input, shape index: {}]   ;;  %s7358_s5 = inlined_call_operand.hbm [shape: f32[2,128], index: 5, kind: output, shape index: {}]  }
   0x1   :  { %v109_v0 = vld [vmem:[%s7353_s0] sm:$0xff]  ;;  %v110_v1 = vld [vmem:[%s7353_s0 + $0x8] sm:$0xff]  ;;  %4762 = vset.pattern.permute.xlu1 %v5425_v6  ;;  %4763 = vset.pattern.permute.xlu0 %v5425_v6  ;;  %v5514_v8 = vld [vmem:[%s7355_s2 + $0x10] sm:$0xff] }
   0x2   :  { %v4752_v2 = vpack.i.bf16 %v110_v1, %v109_v0  ;;  %v133_v3 = vpack.c.bf16 %v110_v1, %v109_v0  ;;  %v5190_v4 = vld [vmem:[%s7354_s1] ss:$8 sps:$4 sm:$0xff]  }
   0x3   :  { %v5499_v5 = vld [vmem:[%s7355_s2] sm:$0xff]  ;;  %4588 = vmatprep.mubr.msk.bf16.mxu0 %vm146_vm0, %v5190_v4  ;;  %v5506_v7 = vld [vmem:[%s7355_s2 + $0x8] sm:$0xff] }
   0x4   :  { %4753 = vrot.lane.b32.xlu0 %v4752_v2, %s5424_s24  ;;  %4582 = vmatprep.subr.bf16.mxu0 %v133_v3 }
   0x5   :  { %4583 = vmatpush3.bf16.msra.mxu0 %v133_v3  ;;  %237 = vperm.xlu1 %4762, %v5499_v5  }
   0x8   :  { %4758 = vrot.lane.b32.xlu0 %v4752_v2, %s5426_s28 }
   0x9   :  { %242 = vperm.xlu1 %4762, %v5506_v7  }
   0xd   :  { %247 = vperm.xlu1 %4762, %v5514_v8  }
   0xe   :  { %10 = vsyncpa [#allocation3], 0  ;;  %v5191_v17 = vld [vmem:[%s7354_s1 + $0x10] ss:$8 sps:$4 sm:$0xff]   ;;  %vm22_vm1 = vcmask 7168   ;;  %v5427_v18 = vmov 1.0   ;;  %v40_v27 = vlaneseq }
   0xf   :  { %v5523_v19 = vsel %vm22_vm1, 0.0, %v5427_v18  ;;  %vm24_vm2 = vcmask 138240   ;;  %s5428_s8 = smov 18   ;;  %s5429_s9 = smov 1   ;;  %v5531_v25 = vld [vmem:[%s7355_s2 + $0x18] sm:$0xff]  ;;  %vm30_vm3 = vcmask 146432  }
  0x10   :  { %v25_v20 = vsel %vm24_vm2, %v5523_v19, 0.0  ;;  %v5537_v29 = vshrl.u32 %v40_v27, 7  ;;  %vm222_vm4 = vcmask 285696   ;;  %v5192_v0 = vld [vmem:[%s7354_s1 + $0x20] ss:$8 sps:$4 sm:$0xff]   ;;  %vm311_vm5 = vcmask 785408  }
  0x11   :  { %27 = vrot.lane.b32.xlu0 %v25_v20, %s5428_s8  ;;  %4604 = vmatprep.mubr.msk.bf16.mxu1 %vm311_vm5, %v5192_v0  ;;  %vm395_vm6 = vcmask 293888   ;;  %v5430_v0 = vmov 2   ;;  %s5439_s13 = smov 10   ;;  %s5451_s17 = smov 124  }
  0x12   :  { %v229_v32 = vsub.s32 0, %v5537_v29  ;;  %4784 = vset.pattern.permute.xlu1 %v5430_v0  ;;  %s5452_s18 = smov 123   ;;  %s5453_s19 = smov 125  }
  0x13   :  { %s5454_s29 = smov 118   ;;  %s5455_s30 = smov [#allocation2]  }
  0x14   :  { %s4269_s6 = sshll.u32 %s5455_s30, 4  ;;  %s4270_s6 = int_to_ptr.vmem [resolvable:$true] %s4269_s6 }
  0x15   :  { %s5400_s7 = scalar_lea.vmem %s4270_s6, 32  ;;  %p5405_p1 = scmp.lt.s32.totalorder %s4270_s6, %s4270_s6 }
  0x16   :  { %p5401_p0 = scmp.ne.s32.totalorder %s4270_s6, %s5400_s7  ;;  %p5406_p2 = scmp.lt.s32.totalorder %s5400_s7, %s5400_s7 }
  0x18   :  { %p5407_p3 = por %p5406_p2, %p5405_p1 }
  0x1a   :  { %p5408_p4 = pnand %p5407_p3, %p5401_p0 }
  0x76   :  { %v4754_v9 = vpop.permute.xlu0 %4753 }
  0x77   :  { %v4756_v10 = vunpack.i.h.bf16 %v4754_v9  ;;  %v4755_v11 = vunpack.i.l.bf16 %v4754_v9 }
  0x79   :  { %v134_v12 = vpack.c.bf16 %v4756_v10, %v4755_v11 }
  0x7a   :  { %v4759_v13 = vpop.permute.xlu0 %4758 }
  0x7b   :  { %v4761_v14 = vunpack.i.h.bf16 %v4759_v13  ;;  %v4760_v15 = vunpack.i.l.bf16 %v4759_v13  ;;  %4584 = vmatprep.subr.bf16.mxu0 %v134_v12 }
  0x7c   :  { %4585 = vmatpush3.bf16.msra.mxu0 %v134_v12 }
  0x7d   :  { %v135_v16 = vpack.c.bf16 %v4761_v14, %v4760_v15 }
  0x7f   :  { %4586 = vmatprep.subr.bf16.mxu0 %v135_v16 }
  0x80   :  { %4587 = vmatpush3.bf16.msra.mxu0 %v135_v16 }
  0x83   :  { %4589 = vmatmul.mubr.msk.bf16.vlgmr.msra.gmra.mrb[0].mxu0 %vm146_vm0, %v5191_v17  ;;  %v28_v30 = vpop.permute.xlu0 %27 }
  0x84   :  { %v238_v26 = vpop.permute.xlu1 %237  ;;  %v31_v33 = vsel %vm30_vm3, %v25_v20, %v28_v30 }
  0x85   :  { %v5542_v34 = vrot.slane %v31_v33, %v229_v32 }
  0x88   :  { %v243_v28 = vpop.permute.xlu1 %242 }
  0x8c   :  { %v248_v31 = vpop.permute.xlu1 %247 }
 0x156   :  { %v4590_v21 = vpop.f32.mrb[0].mxu0 }
 0x157   :  { %v187_v22 = vpop.f32.mrb[1].mxu0 }
 0x158   :  { %206 = vrot.lane.b32.xlu1 %v187_v22, %s5429_s9  ;;  %v4591_v23 = vpop.f32.mrb[2].mxu0  ;;  %v5193_v22 = vld [vmem:[%s7354_s1 + $0x30] ss:$8 sps:$4 sm:$0xff]  }
 0x159   :  { %v190_v24 = vpop.f32.mrb[3].mxu0 }
 0x15a   :  { %208 = vrot.lane.b32.xlu0 %v190_v24, %s5429_s9 }
 0x15c   :  { %210 = vrot.lane.b32.xlu1 %v4590_v21, %s5429_s9 }
 0x15e   :  { %252 = vperm.xlu0 %4763, %v5531_v25  }
 0x160   :  { %212 = vrot.lane.b32.xlu1 %v4591_v23, %s5429_s9 }
 0x162   :  { %4785 = vset.pattern.permute.xlu0 %v5430_v0 }
 0x1ca   :  { %v207_v35 = vpop.permute.xlu1 %206 }
 0x1cb   :  { %v218_v36 = vsel %vm22_vm1, 0.0, %v207_v35 }
 0x1cc   :  { %v223_v37 = vsel %vm222_vm4, %v218_v36, 0.0  ;;  %v209_v38 = vpop.permute.xlu0 %208 }
 0x1cd   :  { %v231_v39 = vmul.f32 %v5542_v34, %v223_v37  ;;  %v219_v40 = vsel %vm22_vm1, 0.0, %v209_v38 }
 0x1ce   :  { %v224_v41 = vsel %vm222_vm4, %v219_v40, 0.0  ;;  %v211_v42 = vpop.permute.xlu1 %210 }
 0x1cf   :  { %v255_v43 = vadd.f32 %v238_v26, %v231_v39  ;;  %v232_v44 = vmul.f32 %v5542_v34, %v224_v41  ;;  %v220_v46 = vsel %vm22_vm1, 0.0, %v211_v42 }
 0x1d0   :  { %v225_v50 = vsel %vm222_vm4, %v220_v46, 0.0 }
 0x1d1   :  { %v256_v45 = vadd.f32 %v243_v28, %v232_v44  ;;  %v5552_v47 = vmul.f32 %v255_v43, %v5542_v34  ;;  %v233_v54 = vmul.f32 %v5542_v34, %v225_v50 }
 0x1d2   :  { %v213_v49 = vpop.permute.xlu1 %212 }
 0x1d3   :  { %v5555_v48 = vmul.f32 %v256_v45, %v5542_v34  ;;  %v221_v53 = vsel %vm22_vm1, 0.0, %v213_v49  ;;  %v257_v56 = vadd.f32 %v248_v31, %v233_v54 }
 0x1d4   :  { %v226_v55 = vsel %vm222_vm4, %v221_v53, 0.0 }
 0x1d5   :  { %v4764_v51 = vpack.i.bf16 %v5555_v48, %v5552_v47  ;;  %v295_v52 = vpack.c.bf16 %v5555_v48, %v5552_v47  ;;  %v234_v57 = vmul.f32 %v5542_v34, %v226_v55  ;;  %v5569_v60 = vmul.f32 %v257_v56, %v5542_v34 }
 0x1d7   :  { %4765 = vrot.lane.b32.xlu0 %v4764_v51, %s5424_s24  ;;  %4592 = vmatprep.subr.bf16.mxu1 %v295_v52 }
 0x1d8   :  { %4593 = vmatpush3.bf16.msra.mxu1 %v295_v52 }
 0x1db   :  { %4775 = vrot.lane.b32.xlu0 %v4764_v51, %s5426_s28 }
 0x1dd   :  { %v253_v58 = vpop.permute.xlu0 %252 }
 0x1de   :  { %v258_v59 = vadd.f32 %v253_v58, %v234_v57 }
 0x1e0   :  { %v5572_v61 = vmul.f32 %v258_v59, %v5542_v34 }
 0x1e2   :  { %v4769_v62 = vpack.i.bf16 %v5572_v61, %v5569_v60  ;;  %v296_v63 = vpack.c.bf16 %v5572_v61, %v5569_v60 }
 0x1e4   :  { %4770 = vrot.lane.b32.xlu1 %v4769_v62, %s5424_s24  ;;  %4594 = vmatprep.subr.bf16.mxu1 %v296_v63 }
 0x1e5   :  { %4595 = vmatpush3.bf16.msra.mxu1 %v296_v63 }
 0x1e8   :  { %4780 = vrot.lane.b32.xlu1 %v4769_v62, %s5426_s28 }
 0x249   :  { %v4766_v1 = vpop.permute.xlu0 %4765 }
 0x24a   :  { %v4768_v2 = vunpack.i.h.bf16 %v4766_v1  ;;  %v4767_v3 = vunpack.i.l.bf16 %v4766_v1 }
 0x24c   :  { %v297_v4 = vpack.c.bf16 %v4768_v2, %v4767_v3 }
 0x24d   :  { %v4776_v9 = vpop.permute.xlu0 %4775 }
 0x24e   :  { %4596 = vmatprep.subr.bf16.mxu1 %v297_v4  ;;  %v4778_v11 = vunpack.i.h.bf16 %v4776_v9  ;;  %v4777_v12 = vunpack.i.l.bf16 %v4776_v9 }
 0x24f   :  { %4597 = vmatpush3.bf16.msra.mxu1 %v297_v4 }
 0x250   :  { %v299_v20 = vpack.c.bf16 %v4778_v11, %v4777_v12 }
 0x256   :  { %v4771_v10 = vpop.permute.xlu1 %4770 }
 0x257   :  { %v4773_v13 = vunpack.i.h.bf16 %v4771_v10  ;;  %v4772_v14 = vunpack.i.l.bf16 %v4771_v10 }
 0x259   :  { %v298_v15 = vpack.c.bf16 %v4773_v13, %v4772_v14 }
 0x25a   :  { %v4781_v16 = vpop.permute.xlu1 %4780 }
 0x25b   :  { %v4783_v17 = vunpack.i.h.bf16 %v4781_v16  ;;  %v4782_v18 = vunpack.i.l.bf16 %v4781_v16  ;;  %4598 = vmatprep.subr.bf16.mxu1 %v298_v15 }
 0x25c   :  { %4599 = vmatpush3.bf16.msra.mxu1 %v298_v15 }
 0x25d   :  { %4600 = vmatprep.subr.bf16.mxu1 %v299_v20  ;;  %v300_v21 = vpack.c.bf16 %v4783_v17, %v4782_v18 }
 0x260   :  { %4601 = vmatpush3.bf16.msra.mxu1 %v299_v20 }
 0x261   :  { %4602 = vmatprep.subr.bf16.mxu1 %v300_v21 }
 0x264   :  { %4603 = vmatpush3.bf16.msra.mxu1 %v300_v21 }
 0x267   :  { %4605 = vmatmul.mubr.msk.bf16.vlgmr.msra.gmra.mrb[0].mxu1 %vm311_vm5, %v5193_v22 }
 0x33a   :  { %v4606_v23 = vpop.f32.mrb[0].mxu1 }
 0x33b   :  { %v352_v24 = vpop.f32.mrb[1].mxu1 }
 0x33c   :  { %371 = vrot.lane.b32.xlu0 %v352_v24, %s5429_s9  ;;  %v4607_v26 = vpop.f32.mrb[2].mxu1 }
 0x33d   :  { %v355_v28 = vpop.f32.mrb[3].mxu1 }
 0x33e   :  { %373 = vrot.lane.b32.xlu1 %v355_v28, %s5429_s9 }
 0x340   :  { %375 = vrot.lane.b32.xlu0 %v4606_v23, %s5429_s9 }
 0x342   :  { %377 = vrot.lane.b32.xlu1 %v4607_v26, %s5429_s9 }
 0x3ae   :  { %v372_v30 = vpop.permute.xlu0 %371 }
 0x3af   :  { %v383_v31 = vsel %vm22_vm1, 0.0, %v372_v30 }
 0x3b0   :  { %v387_v33 = vsel %vm222_vm4, %v383_v31, 0.0  ;;  %v374_v35 = vpop.permute.xlu1 %373 }
 0x3b1   :  { %v5595_v36 = vmul.f32 %v387_v33, %v5542_v34  ;;  %v384_v37 = vsel %vm22_vm1, 0.0, %v374_v35 }
 0x3b2   :  { %v388_v38 = vsel %vm222_vm4, %v384_v37, 0.0  ;;  %v376_v39 = vpop.permute.xlu0 %375 }
 0x3b3   :  { %v5600_v40 = vmul.f32 %v388_v38, %v5542_v34  ;;  %v385_v41 = vsel %vm22_vm1, 0.0, %v376_v39  ;;  %v396_v42 = vsel %vm395_vm6, %v5595_v36, 0.0  ;;  %v408_v55 = vmul.f32 %v5595_v36, %v5595_v36 }
 0x3b4   :  { %v389_v43 = vsel %vm222_vm4, %v385_v41, 0.0  ;;  %397 = vadd.xlane.f32.xlu0 %v396_v42  ;;  %v378_v44 = vpop.permute.xlu1 %377 }
 0x3b5   :  { %v5607_v45 = vmul.f32 %v389_v43, %v5542_v34  ;;  %v386_v46 = vsel %vm22_vm1, 0.0, %v378_v44  ;;  %v399_v49 = vsel %vm395_vm6, %v5600_v40, 0.0  ;;  %v412_v57 = vsel %vm395_vm6, %v408_v55, 0.0 }
 0x3b6   :  { %v390_v50 = vsel %vm222_vm4, %v386_v46, 0.0  ;;  %400 = vadd.xlane.f32.xlu1 %v399_v49  ;;  %v409_v58 = vmul.f32 %v5600_v40, %v5600_v40 }
 0x3b7   :  { %v5614_v51 = vmul.f32 %v390_v50, %v5542_v34  ;;  %v402_v52 = vsel %vm395_vm6, %v5607_v45, 0.0  ;;  %v410_v54 = vmul.f32 %v5607_v45, %v5607_v45 }
 0x3b8   :  { %v415_v59 = vsel %vm395_vm6, %v409_v58, 0.0 }
 0x3b9   :  { %v405_v53 = vsel %vm395_vm6, %v5614_v51, 0.0  ;;  %v418_v56 = vsel %vm395_vm6, %v410_v54, 0.0  ;;  %v411_v62 = vmul.f32 %v5614_v51, %v5614_v51 }
 0x3ba   :  { %403 = vadd.xlane.f32.xlu1 %v402_v52  ;;  %406 = vadd.xlane.f32.xlu0 %v405_v53  ;;  %v5431_v53 = vmov 3  }
 0x3bb   :  { %v421_v63 = vsel %vm395_vm6, %v411_v62, 0.0 }
 0x3be   :  { %419 = vadd.xlane.f32.xlu1 %v418_v56  ;;  %413 = vadd.xlane.f32.xlu0 %v412_v57 }
 0x3c2   :  { %416 = vadd.xlane.f32.xlu0 %v415_v59 }
 0x3c6   :  { %422 = vadd.xlane.f32.xlu0 %v421_v63 }
 0x441   :  { %v398_v1 = vpop.xlane.xlu0 %397 }
 0x442   :  { %v425_v9 = vmul.f32 0.03125, %v398_v1 }
 0x443   :  { %v401_v2 = vpop.xlane.xlu1 %400 }
 0x444   :  { %v433_v11 = vmul.f32 %v425_v9, %v425_v9  ;;  %v426_v12 = vmul.f32 0.03125, %v401_v2  ;;  %v453_v59 = vsub.f32 %v5595_v36, %v425_v9 }
 0x446   :  { %v434_v18 = vmul.f32 %v426_v12, %v426_v12  ;;  %v454_v2 = vsub.f32 %v5600_v40, %v426_v12 }
 0x447   :  { %v407_v3 = vpop.xlane.xlu0 %406  ;;  %v404_v4 = vpop.xlane.xlu1 %403 }
 0x448   :  { %v5632_v15 = vmul.f32 0.03125, %v404_v4  ;;  %v5634_v23 = vmul.f32 0.03125, %v407_v3 }
 0x44a   :  { %v435_v24 = vmul.f32 %v5632_v15, %v5632_v15  ;;  %v436_v37 = vmul.f32 %v5634_v23, %v5634_v23  ;;  %v455_v40 = vsub.f32 %v5607_v45, %v5632_v15  ;;  %v5194_v45 = vld [vmem:[%s7354_s1 + $0x40] ss:$8 sps:$4 sm:$0xff]  }
 0x44b   :  { %v414_v10 = vpop.xlane.xlu0 %413  ;;  %v420_v14 = vpop.xlane.xlu1 %419  ;;  %4620 = vmatprep.mubr.msk.bf16.mxu0 %vm311_vm5, %v5194_v45  ;;  %v5432_v45 = vmov 4  }
 0x44c   :  { %v429_v13 = vmul.f32 0.03125, %v414_v10  ;;  %v431_v21 = vmul.f32 0.03125, %v420_v14 }
 0x44e   :  { %v437_v16 = vsub.f32 %v429_v13, %v433_v11  ;;  %v439_v31 = vsub.f32 %v431_v21, %v435_v24  ;;  %v456_v21 = vsub.f32 %v5614_v51, %v5634_v23 }
 0x44f   :  { %v417_v17 = vpop.xlane.xlu0 %416 }
 0x450   :  { %v441_v20 = vmax.f32 %v437_v16, 0.0  ;;  %v430_v22 = vmul.f32 0.03125, %v417_v17  ;;  %v443_v39 = vmax.f32 %v439_v31, 0.0 }
 0x452   :  { %v445_v26 = vadd.f32 1e-05, %v441_v20  ;;  %v438_v28 = vsub.f32 %v430_v22, %v434_v18  ;;  %v447_v42 = vadd.f32 1e-05, %v443_v39 }
 0x453   :  { %v423_v30 = vpop.xlane.xlu0 %422 }
 0x454   :  { %5292 = vrsqrt.f32 %v445_v26  ;;  %v442_v33 = vmax.f32 %v438_v28, 0.0  ;;  %v432_v35 = vmul.f32 0.03125, %v423_v30 }
 0x456   :  { %v446_v38 = vadd.f32 1e-05, %v442_v33  ;;  %v440_v41 = vsub.f32 %v432_v35, %v436_v37 }
 0x458   :  { %5294 = vrsqrt.f32 %v446_v38  ;;  %v444_v43 = vmax.f32 %v440_v41, 0.0 }
 0x459   :  { %5296 = vrsqrt.f32 %v447_v42 }
 0x45a   :  { %v448_v49 = vadd.f32 1e-05, %v444_v43 }
 0x45c   :  { %5298 = vrsqrt.f32 %v448_v49 }
 0x45e   :  { %v5293_v44 = vpop.eup %5292 }
 0x45f   :  { %v457_v46 = vmul.f32 %v5293_v44, %v5499_v5 }
 0x461   :  { %463 = vperm.xlu1 %4784, %v457_v46  }
 0x462   :  { %v5295_v50 = vpop.eup %5294 }
 0x463   :  { %v458_v52 = vmul.f32 %v5295_v50, %v5506_v7  ;;  %v5297_v54 = vpop.eup %5296 }
 0x464   :  { %v459_v55 = vmul.f32 %v5297_v54, %v5514_v8 }
 0x465   :  { %4786 = vset.pattern.permute.xlu1 %v5431_v53  ;;  %468 = vperm.xlu0 %4785, %v458_v52  }
 0x466   :  { %486 = vperm.xlu1 %4786, %v5499_v5   ;;  %v5299_v56 = vpop.eup %5298 }
 0x467   :  { %v460_v57 = vmul.f32 %v5299_v56, %v5531_v25 }
 0x469   :  { %4810 = vset.pattern.permute.xlu0 %v5432_v45 }
 0x46a   :  { %490 = vperm.xlu1 %4786, %v5506_v7  }
 0x46e   :  { %4787 = vset.pattern.permute.xlu1 %v5430_v0 }
 0x46f   :  { %473 = vperm.xlu1 %4787, %v459_v55  }
 0x473   :  { %478 = vperm.xlu1 %4787, %v460_v57   ;;  %v5195_v57 = vld [vmem:[%s7354_s1 + $0x50] ss:$8 sps:$4 sm:$0xff]  }
 0x477   :  { %4788 = vset.pattern.permute.xlu1 %v5431_v53 }
 0x478   :  { %494 = vperm.xlu1 %4788, %v5514_v8  }
 0x47c   :  { %498 = vperm.xlu1 %4788, %v5531_v25  }
 0x480   :  { %4809 = vset.pattern.permute.xlu1 %v5432_v45 }
 0x4e0   :  { %v464_v58 = vpop.permute.xlu1 %463 }
 0x4e1   :  { %v481_v62 = vmul.f32 %v464_v58, %v453_v59 }
 0x4e4   :  { %v469_v63 = vpop.permute.xlu0 %468 }
 0x4e5   :  { %v487_v1 = vpop.permute.xlu1 %486  ;;  %v482_v4 = vmul.f32 %v469_v63, %v454_v2 }
 0x4e6   :  { %v501_v3 = vadd.f32 %v487_v1, %v481_v62 }
 0x4e8   :  { %v505_v10 = vmax.f32 %v501_v3, 0.0 }
 0x4e9   :  { %v491_v0 = vpop.permute.xlu1 %490 }
 0x4ea   :  { %v502_v11 = vadd.f32 %v491_v0, %v482_v4  ;;  %v509_v14 = vmul.f32 %v505_v10, %v5542_v34 }
 0x4ec   :  { %v506_v13 = vmax.f32 %v502_v11, 0.0 }
 0x4ee   :  { %v510_v16 = vmul.f32 %v506_v13, %v5542_v34  ;;  %v474_v17 = vpop.permute.xlu1 %473 }
 0x4ef   :  { %v483_v9 = vmul.f32 %v474_v17, %v455_v40 }
 0x4f0   :  { %v4799_v18 = vpack.i.bf16 %v510_v16, %v509_v14  ;;  %v545_v20 = vpack.c.bf16 %v510_v16, %v509_v14 }
 0x4f2   :  { %4800 = vrot.lane.b32.xlu0 %v4799_v18, %s5426_s28  ;;  %4790 = vrot.lane.b32.xlu1 %v4799_v18, %s5424_s24  ;;  %v479_v36 = vpop.permute.xlu1 %478 }
 0x4f3   :  { %4608 = vmatprep.subr.bf16.mxu0 %v545_v20  ;;  %v484_v24 = vmul.f32 %v479_v36, %v456_v21 }
 0x4f4   :  { %4609 = vmatpush3.bf16.msra.mxu0 %v545_v20 }
 0x4f7   :  { %v495_v12 = vpop.permute.xlu1 %494 }
 0x4f8   :  { %v503_v22 = vadd.f32 %v495_v12, %v483_v9 }
 0x4fa   :  { %v507_v28 = vmax.f32 %v503_v22, 0.0 }
 0x4fb   :  { %v499_v26 = vpop.permute.xlu1 %498 }
 0x4fc   :  { %v504_v30 = vadd.f32 %v499_v26, %v484_v24  ;;  %v511_v33 = vmul.f32 %v507_v28, %v5542_v34 }
 0x4fe   :  { %v508_v31 = vmax.f32 %v504_v30, 0.0 }
 0x500   :  { %v512_v35 = vmul.f32 %v508_v31, %v5542_v34 }
 0x502   :  { %v4794_v37 = vpack.i.bf16 %v512_v35, %v511_v33  ;;  %v546_v38 = vpack.c.bf16 %v512_v35, %v511_v33 }
 0x504   :  { %4795 = vrot.lane.b32.xlu1 %v4794_v37, %s5424_s24  ;;  %4610 = vmatprep.subr.bf16.mxu0 %v546_v38 }
 0x505   :  { %4611 = vmatpush3.bf16.msra.mxu0 %v546_v38 }
 0x508   :  { %4805 = vrot.lane.b32.xlu1 %v4794_v37, %s5426_s28 }
 0x564   :  { %v4791_v51 = vpop.permute.xlu1 %4790  ;;  %v4801_v41 = vpop.permute.xlu0 %4800 }
 0x565   :  { %v4793_v15 = vunpack.i.h.bf16 %v4791_v51  ;;  %v4792_v23 = vunpack.i.l.bf16 %v4791_v51  ;;  %v4803_v43 = vunpack.i.h.bf16 %v4801_v41  ;;  %v4802_v44 = vunpack.i.l.bf16 %v4801_v41 }
 0x567   :  { %v547_v39 = vpack.c.bf16 %v4793_v15, %v4792_v23  ;;  %v549_v55 = vpack.c.bf16 %v4803_v43, %v4802_v44 }
 0x569   :  { %4612 = vmatprep.subr.bf16.mxu0 %v547_v39 }
 0x56a   :  { %4613 = vmatpush3.bf16.msra.mxu0 %v547_v39 }
 0x576   :  { %v4796_v42 = vpop.permute.xlu1 %4795 }
 0x577   :  { %v4798_v46 = vunpack.i.h.bf16 %v4796_v42  ;;  %v4797_v49 = vunpack.i.l.bf16 %v4796_v42 }
 0x579   :  { %v548_v50 = vpack.c.bf16 %v4798_v46, %v4797_v49 }
 0x57a   :  { %v4806_v52 = vpop.permute.xlu1 %4805 }
 0x57b   :  { %v4808_v53 = vunpack.i.h.bf16 %v4806_v52  ;;  %v4807_v54 = vunpack.i.l.bf16 %v4806_v52  ;;  %4614 = vmatprep.subr.bf16.mxu0 %v548_v50 }
 0x57c   :  { %4615 = vmatpush3.bf16.msra.mxu0 %v548_v50 }
 0x57d   :  { %4616 = vmatprep.subr.bf16.mxu0 %v549_v55  ;;  %v550_v56 = vpack.c.bf16 %v4808_v53, %v4807_v54 }
 0x580   :  { %4617 = vmatpush3.bf16.msra.mxu0 %v549_v55 }
 0x581   :  { %4618 = vmatprep.subr.bf16.mxu0 %v550_v56 }
 0x584   :  { %4619 = vmatpush3.bf16.msra.mxu0 %v550_v56 }
 0x587   :  { %4621 = vmatmul.mubr.msk.bf16.vlgmr.msra.gmra.mrb[4].mxu0 %vm311_vm5, %v5195_v57 }
 0x65a   :  { %v4622_v58 = vpop.f32.mrb[4].mxu0 }
 0x65b   :  { %v601_v59 = vpop.f32.mrb[5].mxu0 }
 0x65c   :  { %620 = vrot.lane.b32.xlu0 %v601_v59, %s5429_s9  ;;  %v4623_v62 = vpop.f32.mrb[6].mxu0 }
 0x65d   :  { %v604_v63 = vpop.f32.mrb[7].mxu0 }
 0x65e   :  { %622 = vrot.lane.b32.xlu1 %v604_v63, %s5429_s9 }
 0x660   :  { %624 = vrot.lane.b32.xlu0 %v4622_v58, %s5429_s9 }
 0x662   :  { %626 = vrot.lane.b32.xlu1 %v4623_v62, %s5429_s9 }
 0x6ce   :  { %v621_v1 = vpop.permute.xlu0 %620 }
 0x6cf   :  { %v632_v2 = vsel %vm22_vm1, 0.0, %v621_v1 }
 0x6d0   :  { %v636_v3 = vsel %vm222_vm4, %v632_v2, 0.0  ;;  %v623_v4 = vpop.permute.xlu1 %622 }
 0x6d1   :  { %v5677_v0 = vmul.f32 %v636_v3, %v5542_v34  ;;  %v633_v10 = vsel %vm22_vm1, 0.0, %v623_v4 }
 0x6d2   :  { %v637_v11 = vsel %vm222_vm4, %v633_v10, 0.0  ;;  %v625_v13 = vpop.permute.xlu0 %624 }
 0x6d3   :  { %v5682_v14 = vmul.f32 %v637_v11, %v5542_v34  ;;  %v634_v16 = vsel %vm22_vm1, 0.0, %v625_v13  ;;  %v644_v17 = vsel %vm395_vm6, %v5677_v0, 0.0  ;;  %v656_v28 = vmul.f32 %v5677_v0, %v5677_v0 }
 0x6d4   :  { %v638_v18 = vsel %vm222_vm4, %v634_v16, 0.0  ;;  %645 = vadd.xlane.f32.xlu0 %v644_v17  ;;  %v627_v20 = vpop.permute.xlu1 %626 }
 0x6d5   :  { %v5689_v36 = vmul.f32 %v638_v18, %v5542_v34  ;;  %v635_v40 = vsel %vm22_vm1, 0.0, %v627_v20  ;;  %v647_v9 = vsel %vm395_vm6, %v5682_v14, 0.0  ;;  %v660_v31 = vsel %vm395_vm6, %v656_v28, 0.0 }
 0x6d6   :  { %v639_v12 = vsel %vm222_vm4, %v635_v40, 0.0  ;;  %648 = vadd.xlane.f32.xlu1 %v647_v9  ;;  %v657_v33 = vmul.f32 %v5682_v14, %v5682_v14 }
 0x6d7   :  { %v5696_v21 = vmul.f32 %v639_v12, %v5542_v34  ;;  %v650_v22 = vsel %vm395_vm6, %v5689_v36, 0.0  ;;  %v658_v26 = vmul.f32 %v5689_v36, %v5689_v36 }
 0x6d8   :  { %v663_v35 = vsel %vm395_vm6, %v657_v33, 0.0 }
 0x6d9   :  { %v653_v24 = vsel %vm395_vm6, %v5696_v21, 0.0  ;;  %v666_v30 = vsel %vm395_vm6, %v658_v26, 0.0  ;;  %v659_v37 = vmul.f32 %v5696_v21, %v5696_v21 }
 0x6da   :  { %651 = vadd.xlane.f32.xlu1 %v650_v22  ;;  %654 = vadd.xlane.f32.xlu0 %v653_v24  ;;  %v5433_v24 = vmov 5  }
 0x6db   :  { %v669_v38 = vsel %vm395_vm6, %v659_v37, 0.0 }
 0x6de   :  { %667 = vadd.xlane.f32.xlu1 %v666_v30  ;;  %661 = vadd.xlane.f32.xlu0 %v660_v31 }
 0x6e2   :  { %664 = vadd.xlane.f32.xlu0 %v663_v35 }
 0x6e6   :  { %670 = vadd.xlane.f32.xlu0 %v669_v38 }
 0x761   :  { %v646_v51 = vpop.xlane.xlu0 %645 }
 0x762   :  { %v672_v41 = vmul.f32 0.03125, %v646_v51 }
 0x763   :  { %v649_v15 = vpop.xlane.xlu1 %648 }
 0x764   :  { %v680_v43 = vmul.f32 %v672_v41, %v672_v41  ;;  %v673_v44 = vmul.f32 0.03125, %v649_v15  ;;  %v700_v35 = vsub.f32 %v5677_v0, %v672_v41 }
 0x766   :  { %v681_v54 = vmul.f32 %v673_v44, %v673_v44 }
 0x767   :  { %v655_v23 = vpop.xlane.xlu0 %654  ;;  %v652_v39 = vpop.xlane.xlu1 %651 }
 0x768   :  { %v5714_v50 = vmul.f32 0.03125, %v652_v39  ;;  %v5716_v58 = vmul.f32 0.03125, %v655_v23 }
 0x76a   :  { %v682_v59 = vmul.f32 %v5714_v50, %v5714_v50  ;;  %v683_v10 = vmul.f32 %v5716_v58, %v5716_v58 }
 0x76b   :  { %v662_v42 = vpop.xlane.xlu0 %661  ;;  %v668_v49 = vpop.xlane.xlu1 %667 }
 0x76c   :  { %v676_v46 = vmul.f32 0.03125, %v662_v42  ;;  %v678_v56 = vmul.f32 0.03125, %v668_v49 }
 0x76e   :  { %v684_v52 = vsub.f32 %v676_v46, %v680_v43  ;;  %v686_v2 = vsub.f32 %v678_v56, %v682_v59 }
 0x76f   :  { %v665_v53 = vpop.xlane.xlu0 %664 }
 0x770   :  { %v688_v55 = vmax.f32 %v684_v52, 0.0  ;;  %v677_v57 = vmul.f32 0.03125, %v665_v53  ;;  %v690_v13 = vmax.f32 %v686_v2, 0.0  ;;  %v703_v52 = vsub.f32 %v5696_v21, %v5716_v58 }
 0x772   :  { %v692_v62 = vadd.f32 1e-05, %v688_v55  ;;  %v685_v63 = vsub.f32 %v677_v57, %v681_v54  ;;  %v694_v17 = vadd.f32 1e-05, %v690_v13 }
 0x773   :  { %v671_v1 = vpop.xlane.xlu0 %670 }
 0x774   :  { %5300 = vrsqrt.f32 %v692_v62  ;;  %v689_v3 = vmax.f32 %v685_v63, 0.0  ;;  %v679_v4 = vmul.f32 0.03125, %v671_v1 }
 0x776   :  { %v693_v11 = vadd.f32 1e-05, %v689_v3  ;;  %v687_v16 = vsub.f32 %v679_v4, %v683_v10 }
 0x778   :  { %5302 = vrsqrt.f32 %v693_v11  ;;  %v691_v18 = vmax.f32 %v687_v16, 0.0 }
 0x779   :  { %5304 = vrsqrt.f32 %v694_v17 }
 0x77a   :  { %v695_v9 = vadd.f32 1e-05, %v691_v18 }
 0x77c   :  { %5306 = vrsqrt.f32 %v695_v9 }
 0x77e   :  { %v5301_v20 = vpop.eup %5300 }
 0x77f   :  { %v704_v40 = vmul.f32 %v5301_v20, %v5499_v5 }
 0x781   :  { %710 = vperm.xlu1 %4809, %v704_v40  }
 0x782   :  { %v5303_v12 = vpop.eup %5302 }
 0x783   :  { %v705_v22 = vmul.f32 %v5303_v12, %v5506_v7  ;;  %v5305_v26 = vpop.eup %5304 }
 0x784   :  { %v706_v28 = vmul.f32 %v5305_v26, %v5514_v8 }
 0x785   :  { %4811 = vset.pattern.permute.xlu1 %v5433_v24  ;;  %715 = vperm.xlu0 %4810, %v705_v22  }
 0x786   :  { %733 = vperm.xlu1 %4811, %v5499_v5   ;;  %v5307_v30 = vpop.eup %5306 }
 0x787   :  { %v707_v31 = vmul.f32 %v5307_v30, %v5531_v25 }
 0x78a   :  { %737 = vperm.xlu1 %4811, %v5506_v7   ;;  %v701_v7 = vsub.f32 %v5682_v14, %v673_v44  ;;  %v702_v44 = vsub.f32 %v5689_v36, %v5714_v50 }
 0x78e   :  { %4812 = vset.pattern.permute.xlu1 %v5432_v45 }
 0x78f   :  { %720 = vperm.xlu1 %4812, %v706_v28  }
 0x793   :  { %725 = vperm.xlu1 %4812, %v707_v31  }
 0x797   :  { %4813 = vset.pattern.permute.xlu1 %v5433_v24  ;;  %v5197_v24 = vld [vmem:[%s7354_s1 + $0x70] ss:$8 sps:$4 sm:$0xff]  }
 0x798   :  { %741 = vperm.xlu1 %4813, %v5514_v8  }
 0x79c   :  { %745 = vperm.xlu1 %4813, %v5531_v25  }
 0x800   :  { %v711_v33 = vpop.permute.xlu1 %710 }
 0x801   :  { %v728_v5 = vmul.f32 %v711_v33, %v700_v35 }
 0x804   :  { %v716_v37 = vpop.permute.xlu0 %715 }
 0x805   :  { %v734_v38 = vpop.permute.xlu1 %733  ;;  %v729_v15 = vmul.f32 %v716_v37, %v701_v7 }
 0x806   :  { %v748_v51 = vadd.f32 %v734_v38, %v728_v5 }
 0x808   :  { %v752_v45 = vadd.f32 %v748_v51, %v5552_v47 }
 0x809   :  { %v738_v23 = vpop.permute.xlu1 %737 }
 0x80a   :  { %v749_v39 = vadd.f32 %v738_v23, %v729_v15  ;;  %v756_v42 = vmax.f32 %v752_v45, 0.0 }
 0x80c   :  { %v753_v43 = vadd.f32 %v749_v39, %v5555_v48  ;;  %v5735_v25 = vmul.f32 %v756_v42, %v5542_v34 }
 0x80e   :  { %v757_v8 = vmax.f32 %v753_v43, 0.0  ;;  %v721_v46 = vpop.permute.xlu1 %720 }
 0x80f   :  { %v730_v48 = vmul.f32 %v721_v46, %v702_v44 }
 0x810   :  { %v5738_v0 = vmul.f32 %v757_v8, %v5542_v34 }
 0x812   :  { %v726_v41 = vpop.permute.xlu1 %725  ;;  %v4814_v14 = vpack.i.bf16 %v5738_v0, %v5735_v25  ;;  %v796_v47 = vpack.c.bf16 %v5738_v0, %v5735_v25 }
 0x813   :  { %v731_v54 = vmul.f32 %v726_v41, %v703_v52 }
 0x814   :  { %4815 = vrot.lane.b32.xlu1 %v4814_v14, %s5424_s24  ;;  %4624 = vmatprep.subr.bf16.mxu1 %v796_v47 }
 0x815   :  { %4625 = vmatpush3.bf16.msra.mxu1 %v796_v47 }
 0x817   :  { %v742_v49 = vpop.permute.xlu1 %741 }
 0x818   :  { %v750_v53 = vadd.f32 %v742_v49, %v730_v48  ;;  %4825 = vrot.lane.b32.xlu1 %v4814_v14, %s5426_s28 }
 0x81a   :  { %v754_v55 = vadd.f32 %v750_v53, %v5569_v60  ;;  %v5196_v60 = vld [vmem:[%s7354_s1 + $0x60] ss:$8 sps:$4 sm:$0xff]  }
 0x81b   :  { %v746_v56 = vpop.permute.xlu1 %745  ;;  %4636 = vmatprep.mubr.msk.bf16.mxu1 %vm311_vm5, %v5196_v60 }
 0x81c   :  { %v751_v57 = vadd.f32 %v746_v56, %v731_v54  ;;  %v758_v59 = vmax.f32 %v754_v55, 0.0 }
 0x81e   :  { %v755_v36 = vadd.f32 %v751_v57, %v5572_v61  ;;  %v5753_v62 = vmul.f32 %v758_v59, %v5542_v34 }
 0x820   :  { %v759_v50 = vmax.f32 %v755_v36, 0.0  ;;  %v5434_v36 = vmov 7  }
 0x821   :  { %4835 = vset.pattern.permute.xlu1 %v5434_v36 }
 0x822   :  { %v5756_v63 = vmul.f32 %v759_v50, %v5542_v34  ;;  %v5819_v50 = vld [vmem:[%s7355_s2] sm:$0xff] }
 0x824   :  { %v4819_v21 = vpack.i.bf16 %v5756_v63, %v5753_v62  ;;  %v797_v58 = vpack.c.bf16 %v5756_v63, %v5753_v62 }
 0x826   :  { %4820 = vrot.lane.b32.xlu0 %v4819_v21, %s5424_s24  ;;  %4626 = vmatprep.subr.bf16.mxu1 %v797_v58 }
 0x827   :  { %4627 = vmatpush3.bf16.msra.mxu1 %v797_v58  ;;  %v5825_v58 = vld [vmem:[%s7355_s2 + $0x8] sm:$0xff] }
 0x82a   :  { %4830 = vrot.lane.b32.xlu0 %v4819_v21, %s5426_s28  ;;  %v5435_v21 = vmov 6  }
 0x82b   :  { %4834 = vset.pattern.permute.xlu0 %v5435_v21 }
 0x886   :  { %v4816_v61 = vpop.permute.xlu1 %4815 }
 0x887   :  { %v4818_v1 = vunpack.i.h.bf16 %v4816_v61  ;;  %v4817_v2 = vunpack.i.l.bf16 %v4816_v61 }
 0x889   :  { %v798_v3 = vpack.c.bf16 %v4818_v1, %v4817_v2 }
 0x88a   :  { %v4826_v4 = vpop.permute.xlu1 %4825 }
 0x88b   :  { %4628 = vmatprep.subr.bf16.mxu1 %v798_v3  ;;  %v4828_v11 = vunpack.i.h.bf16 %v4826_v4  ;;  %v4827_v13 = vunpack.i.l.bf16 %v4826_v4 }
 0x88c   :  { %4629 = vmatpush3.bf16.msra.mxu1 %v798_v3 }
 0x88d   :  { %v800_v12 = vpack.c.bf16 %v4828_v11, %v4827_v13 }
 0x898   :  { %v4821_v10 = vpop.permute.xlu0 %4820 }
 0x899   :  { %v4823_v16 = vunpack.i.h.bf16 %v4821_v10  ;;  %v4822_v17 = vunpack.i.l.bf16 %v4821_v10 }
 0x89b   :  { %v799_v18 = vpack.c.bf16 %v4823_v16, %v4822_v17 }
 0x89c   :  { %v4831_v20 = vpop.permute.xlu0 %4830 }
 0x89d   :  { %v4833_v40 = vunpack.i.h.bf16 %v4831_v20  ;;  %v4832_v9 = vunpack.i.l.bf16 %v4831_v20  ;;  %4630 = vmatprep.subr.bf16.mxu1 %v799_v18 }
 0x89e   :  { %4631 = vmatpush3.bf16.msra.mxu1 %v799_v18 }
 0x89f   :  { %4632 = vmatprep.subr.bf16.mxu1 %v800_v12  ;;  %v801_v22 = vpack.c.bf16 %v4833_v40, %v4832_v9 }
 0x8a2   :  { %4633 = vmatpush3.bf16.msra.mxu1 %v800_v12 }
 0x8a3   :  { %4634 = vmatprep.subr.bf16.mxu1 %v801_v22 }
 0x8a6   :  { %4635 = vmatpush3.bf16.msra.mxu1 %v801_v22 }
 0x8a9   :  { %4637 = vmatmul.mubr.msk.bf16.vlgmr.msra.gmra.mrb[4].mxu1 %vm311_vm5, %v5197_v24 }
 0x97c   :  { %v4638_v26 = vpop.f32.mrb[4].mxu1 }
 0x97d   :  { %v852_v28 = vpop.f32.mrb[5].mxu1 }
 0x97e   :  { %871 = vrot.lane.b32.xlu1 %v852_v28, %s5429_s9  ;;  %v4639_v30 = vpop.f32.mrb[6].mxu1 }
 0x97f   :  { %v855_v31 = vpop.f32.mrb[7].mxu1 }
 0x980   :  { %873 = vrot.lane.b32.xlu0 %v855_v31, %s5429_s9 }
 0x982   :  { %875 = vrot.lane.b32.xlu1 %v4638_v26, %s5429_s9 }
 0x984   :  { %877 = vrot.lane.b32.xlu0 %v4639_v30, %s5429_s9 }
 0x9f0   :  { %v872_v33 = vpop.permute.xlu1 %871 }
 0x9f1   :  { %v883_v35 = vsel %vm22_vm1, 0.0, %v872_v33 }
 0x9f2   :  { %v887_v5 = vsel %vm222_vm4, %v883_v35, 0.0  ;;  %v874_v37 = vpop.permute.xlu0 %873 }
 0x9f3   :  { %v5779_v38 = vmul.f32 %v887_v5, %v5542_v34  ;;  %v884_v7 = vsel %vm22_vm1, 0.0, %v874_v37 }
 0x9f4   :  { %v888_v51 = vsel %vm222_vm4, %v884_v7, 0.0  ;;  %v876_v15 = vpop.permute.xlu1 %875 }
 0x9f5   :  { %v885_v45 = vsel %vm22_vm1, 0.0, %v876_v15  ;;  %v895_v23 = vsel %vm395_vm6, %v5779_v38, 0.0  ;;  %v5788_v43 = vmul.f32 %v888_v51, %v5542_v34  ;;  %v907_v52 = vmul.f32 %v5779_v38, %v5779_v38 }
 0x9f6   :  { %v889_v39 = vsel %vm222_vm4, %v885_v45, 0.0  ;;  %896 = vadd.xlane.f32.xlu1 %v895_v23  ;;  %v878_v42 = vpop.permute.xlu0 %877 }
 0x9f7   :  { %v5791_v8 = vmul.f32 %v889_v39, %v5542_v34  ;;  %v886_v46 = vsel %vm22_vm1, 0.0, %v878_v42  ;;  %v908_v48 = vmul.f32 %v5788_v43, %v5788_v43  ;;  %v898_v49 = vsel %vm395_vm6, %v5788_v43, 0.0 }
 0x9f8   :  { %v890_v41 = vsel %vm222_vm4, %v886_v46, 0.0  ;;  %v911_v55 = vsel %vm395_vm6, %v907_v52, 0.0 }
 0x9f9   :  { %v5796_v14 = vmul.f32 %v890_v41, %v5542_v34  ;;  %v901_v47 = vsel %vm395_vm6, %v5791_v8, 0.0  ;;  %v914_v53 = vsel %vm395_vm6, %v908_v48, 0.0  ;;  %v909_v56 = vmul.f32 %v5791_v8, %v5791_v8 }
 0x9fa   :  { %902 = vadd.xlane.f32.xlu0 %v901_v47  ;;  %v5836_v47 = vld [vmem:[%s7355_s2 + $0x10] sm:$0xff] }
 0x9fb   :  { %v904_v44 = vsel %vm395_vm6, %v5796_v14, 0.0  ;;  %v910_v54 = vmul.f32 %v5796_v14, %v5796_v14  ;;  %v917_v59 = vsel %vm395_vm6, %v909_v56, 0.0 }
 0x9fc   :  { %905 = vadd.xlane.f32.xlu1 %v904_v44 }
 0x9fd   :  { %v920_v57 = vsel %vm395_vm6, %v910_v54, 0.0 }
 0x9fe   :  { %899 = vadd.xlane.f32.xlu0 %v898_v49  ;;  %v5842_v49 = vld [vmem:[%s7355_s2 + $0x18] sm:$0xff] }
 0xa00   :  { %915 = vadd.xlane.f32.xlu1 %v914_v53 }
 0xa02   :  { %912 = vadd.xlane.f32.xlu0 %v911_v55 }
 0xa04   :  { %921 = vadd.xlane.f32.xlu1 %v920_v57 }
 0xa06   :  { %918 = vadd.xlane.f32.xlu0 %v917_v59 }
 0xa15   :  { %984 = vperm.xlu1 %4835, %v5819_v50  }
 0xa19   :  { %988 = vperm.xlu1 %4835, %v5825_v58  }
 0xa1d   :  { %4836 = vset.pattern.permute.xlu1 %v5435_v21 }
 0xa83   :  { %v897_v60 = vpop.xlane.xlu1 %896 }
 0xa84   :  { %v923_v3 = vmul.f32 0.03125, %v897_v60 }
 0xa86   :  { %v931_v16 = vmul.f32 %v923_v3, %v923_v3  ;;  %v951_v21 = vsub.f32 %v5779_v38, %v923_v3 }
 0xa87   :  { %v903_v61 = vpop.xlane.xlu0 %902 }
 0xa88   :  { %v925_v17 = vmul.f32 0.03125, %v903_v61 }
 0xa89   :  { %v906_v1 = vpop.xlane.xlu1 %905 }
 0xa8a   :  { %v5828_v4 = vmul.f32 0.03125, %v906_v1  ;;  %v933_v28 = vmul.f32 %v925_v17, %v925_v17 }
 0xa8b   :  { %v900_v2 = vpop.xlane.xlu0 %899 }
 0xa8c   :  { %v924_v11 = vmul.f32 0.03125, %v900_v2  ;;  %v934_v20 = vmul.f32 %v5828_v4, %v5828_v4 }
 0xa8d   :  { %v916_v10 = vpop.xlane.xlu1 %915 }
 0xa8e   :  { %v932_v9 = vmul.f32 %v924_v11, %v924_v11  ;;  %v928_v12 = vmul.f32 0.03125, %v916_v10  ;;  %v952_v2 = vsub.f32 %v5788_v43, %v924_v11 }
 0xa8f   :  { %v913_v13 = vpop.xlane.xlu0 %912 }
 0xa90   :  { %v927_v18 = vmul.f32 0.03125, %v913_v13  ;;  %v936_v35 = vsub.f32 %v928_v12, %v932_v9  ;;  %v954_v12 = vsub.f32 %v5796_v14, %v5828_v4 }
 0xa91   :  { %v922_v40 = vpop.xlane.xlu1 %921 }
 0xa92   :  { %v935_v22 = vsub.f32 %v927_v18, %v931_v16  ;;  %v930_v24 = vmul.f32 0.03125, %v922_v40  ;;  %v940_v15 = vmax.f32 %v936_v35, 0.0  ;;  %v953_v16 = vsub.f32 %v5791_v8, %v925_v17 }
 0xa93   :  { %v919_v26 = vpop.xlane.xlu0 %918 }
 0xa94   :  { %v939_v30 = vmax.f32 %v935_v22, 0.0  ;;  %v938_v31 = vsub.f32 %v930_v24, %v934_v20  ;;  %v929_v33 = vmul.f32 0.03125, %v919_v26  ;;  %v944_v39 = vadd.f32 1e-05, %v940_v15 }
 0xa95   :  { %v985_v55 = vpop.permute.xlu1 %984 }
 0xa96   :  { %v943_v5 = vadd.f32 1e-05, %v939_v30  ;;  %v942_v37 = vmax.f32 %v938_v31, 0.0  ;;  %v937_v7 = vsub.f32 %v929_v33, %v933_v28  ;;  %v5198_v33 = vld [vmem:[%s7354_s1 + $0x80] ss:$8 sps:$4 sm:$0xff]  }
 0xa97   :  { %4652 = vmatprep.mubr.msk.bf16.mxu0 %vm311_vm5, %v5198_v33  ;;  %v5436_v33 = vmov 9  }
 0xa98   :  { %5308 = vrsqrt.f32 %v943_v5  ;;  %v941_v51 = vmax.f32 %v937_v7, 0.0  ;;  %v946_v45 = vadd.f32 1e-05, %v942_v37 }
 0xa99   :  { %v989_v56 = vpop.permute.xlu1 %988 }
 0xa9a   :  { %v945_v23 = vadd.f32 1e-05, %v941_v51 }
 0xa9c   :  { %5310 = vrsqrt.f32 %v945_v23 }
 0xa9d   :  { %5312 = vrsqrt.f32 %v946_v45 }
 0xa9e   :  { %5314 = vrsqrt.f32 %v944_v39 }
 0xaa2   :  { %v5309_v42 = vpop.eup %5308 }
 0xaa3   :  { %v955_v46 = vmul.f32 %v5819_v50, %v5309_v42 }
 0xaa5   :  { %961 = vperm.xlu0 %4834, %v955_v46  }
 0xaa6   :  { %v5311_v41 = vpop.eup %5310 }
 0xaa7   :  { %v957_v44 = vmul.f32 %v5836_v47, %v5311_v41  ;;  %v5313_v48 = vpop.eup %5312 }
 0xaa8   :  { %v958_v52 = vmul.f32 %v5842_v49, %v5313_v48  ;;  %v5315_v53 = vpop.eup %5314 }
 0xaa9   :  { %971 = vperm.xlu1 %4836, %v957_v44   ;;  %v956_v54 = vmul.f32 %v5825_v58, %v5315_v53 }
 0xaad   :  { %976 = vperm.xlu1 %4836, %v958_v52  }
 0xab1   :  { %966 = vperm.xlu1 %4836, %v956_v54   ;;  %v5199_v54 = vld [vmem:[%s7354_s1 + $0x90] ss:$8 sps:$4 sm:$0xff]  }
 0xab5   :  { %4837 = vset.pattern.permute.xlu1 %v5434_v36 }
 0xab6   :  { %992 = vperm.xlu1 %4837, %v5836_v47  }
 0xaba   :  { %996 = vperm.xlu1 %4837, %v5842_v49  }
 0xabe   :  { %4859 = vset.pattern.permute.xlu1 %v5436_v33 }
 0xb24   :  { %v962_v57 = vpop.permute.xlu0 %961 }
 0xb25   :  { %v979_v60 = vmul.f32 %v962_v57, %v951_v21 }
 0xb27   :  { %v999_v1 = vadd.f32 %v985_v55, %v979_v60 }
 0xb28   :  { %v972_v59 = vpop.permute.xlu1 %971 }
 0xb29   :  { %v1003_v36 = vmax.f32 %v999_v1, 0.0  ;;  %v981_v20 = vmul.f32 %v972_v59, %v953_v16 }
 0xb2b   :  { %v1007_v38 = vmul.f32 %v1003_v36, %v5542_v34 }
 0xb2c   :  { %v977_v61 = vpop.permute.xlu1 %976 }
 0xb2d   :  { %v982_v24 = vmul.f32 %v977_v61, %v954_v12 }
 0xb30   :  { %v967_v10 = vpop.permute.xlu1 %966 }
 0xb31   :  { %v980_v13 = vmul.f32 %v967_v10, %v952_v2 }
 0xb33   :  { %v1000_v18 = vadd.f32 %v989_v56, %v980_v13 }
 0xb35   :  { %v1004_v40 = vmax.f32 %v1000_v18, 0.0  ;;  %v993_v9 = vpop.permute.xlu1 %992 }
 0xb36   :  { %v1001_v22 = vadd.f32 %v993_v9, %v981_v20 }
 0xb37   :  { %v1008_v3 = vmul.f32 %v1004_v40, %v5542_v34 }
 0xb38   :  { %v1005_v28 = vmax.f32 %v1001_v22, 0.0 }
 0xb39   :  { %v997_v26 = vpop.permute.xlu1 %996  ;;  %v4838_v43 = vpack.i.bf16 %v1008_v3, %v1007_v38  ;;  %v1043_v11 = vpack.c.bf16 %v1008_v3, %v1007_v38 }
 0xb3a   :  { %v1002_v30 = vadd.f32 %v997_v26, %v982_v24  ;;  %v1009_v17 = vmul.f32 %v1005_v28, %v5542_v34 }
 0xb3b   :  { %4839 = vrot.lane.b32.xlu1 %v4838_v43, %s5424_s24  ;;  %4640 = vmatprep.subr.bf16.mxu0 %v1043_v11 }
 0xb3c   :  { %v1006_v8 = vmax.f32 %v1002_v30, 0.0  ;;  %4641 = vmatpush3.bf16.msra.mxu0 %v1043_v11 }
 0xb3e   :  { %v1010_v14 = vmul.f32 %v1006_v8, %v5542_v34 }
 0xb3f   :  { %4849 = vrot.lane.b32.xlu1 %v4838_v43, %s5426_s28 }
 0xb40   :  { %v4843_v4 = vpack.i.bf16 %v1010_v14, %v1009_v17  ;;  %v1044_v31 = vpack.c.bf16 %v1010_v14, %v1009_v17 }
 0xb42   :  { %4844 = vrot.lane.b32.xlu0 %v4843_v4, %s5424_s24  ;;  %4642 = vmatprep.subr.bf16.mxu0 %v1044_v31 }
 0xb43   :  { %4643 = vmatpush3.bf16.msra.mxu0 %v1044_v31 }
 0xb46   :  { %4854 = vrot.lane.b32.xlu0 %v4843_v4, %s5426_s28 }
 0xbad   :  { %v4840_v35 = vpop.permute.xlu1 %4839 }
 0xbae   :  { %v4842_v5 = vunpack.i.h.bf16 %v4840_v35  ;;  %v4841_v37 = vunpack.i.l.bf16 %v4840_v35  ;;  %v5437_v35 = vmov 8  }
 0xbaf   :  { %4858 = vset.pattern.permute.xlu0 %v5437_v35 }
 0xbb0   :  { %v1045_v7 = vpack.c.bf16 %v4842_v5, %v4841_v37 }
 0xbb1   :  { %v4850_v51 = vpop.permute.xlu1 %4849 }
 0xbb2   :  { %4644 = vmatprep.subr.bf16.mxu0 %v1045_v7  ;;  %v4852_v45 = vunpack.i.h.bf16 %v4850_v51  ;;  %v4851_v23 = vunpack.i.l.bf16 %v4850_v51 }
 0xbb3   :  { %4645 = vmatpush3.bf16.msra.mxu0 %v1045_v7 }
 0xbb4   :  { %v4845_v15 = vpop.permute.xlu0 %4844  ;;  %v1047_v52 = vpack.c.bf16 %v4852_v45, %v4851_v23 }
 0xbb5   :  { %v4847_v39 = vunpack.i.h.bf16 %v4845_v15  ;;  %v4846_v42 = vunpack.i.l.bf16 %v4845_v15 }
 0xbb7   :  { %v1046_v46 = vpack.c.bf16 %v4847_v39, %v4846_v42 }
 0xbb8   :  { %v4855_v41 = vpop.permute.xlu0 %4854 }
 0xbb9   :  { %v4857_v44 = vunpack.i.h.bf16 %v4855_v41  ;;  %v4856_v48 = vunpack.i.l.bf16 %v4855_v41  ;;  %4646 = vmatprep.subr.bf16.mxu0 %v1046_v46 }
 0xbba   :  { %4647 = vmatpush3.bf16.msra.mxu0 %v1046_v46 }
 0xbbb   :  { %4648 = vmatprep.subr.bf16.mxu0 %v1047_v52  ;;  %v1048_v53 = vpack.c.bf16 %v4857_v44, %v4856_v48 }
 0xbbe   :  { %4649 = vmatpush3.bf16.msra.mxu0 %v1047_v52 }
 0xbbf   :  { %4650 = vmatprep.subr.bf16.mxu0 %v1048_v53 }
 0xbc2   :  { %4651 = vmatpush3.bf16.msra.mxu0 %v1048_v53 }
 0xbc3   :  { %1975 = vmatprep.subr.bf16.mxu0 %v5425_v6 }
 0xbc5   :  { %4653 = vmatmul.mubr.msk.bf16.vlgmr.msra.gmra.mrb[8].mxu0 %vm311_vm5, %v5199_v54 }
 0xc98   :  { %v4654_v55 = vpop.f32.mrb[8].mxu0 }
 0xc99   :  { %v1099_v56 = vpop.f32.mrb[9].mxu0 }
 0xc9a   :  { %1118 = vrot.lane.b32.xlu1 %v1099_v56, %s5429_s9  ;;  %v4655_v57 = vpop.f32.mrb[10].mxu0 }
 0xc9b   :  { %v1102_v59 = vpop.f32.mrb[11].mxu0 }
 0xc9c   :  { %1120 = vrot.lane.b32.xlu0 %v1102_v59, %s5429_s9 }
 0xc9e   :  { %1122 = vrot.lane.b32.xlu1 %v4654_v55, %s5429_s9 }
 0xca0   :  { %1124 = vrot.lane.b32.xlu0 %v4655_v57, %s5429_s9 }
 0xd0c   :  { %v1119_v21 = vpop.permute.xlu1 %1118 }
 0xd0d   :  { %v1130_v60 = vsel %vm22_vm1, 0.0, %v1119_v21 }
 0xd0e   :  { %v1134_v61 = vsel %vm222_vm4, %v1130_v60, 0.0  ;;  %v1121_v1 = vpop.permute.xlu0 %1120 }
 0xd0f   :  { %v5877_v2 = vmul.f32 %v1134_v61, %v5542_v34  ;;  %v1131_v10 = vsel %vm22_vm1, 0.0, %v1121_v1 }
 0xd10   :  { %v1135_v13 = vsel %vm222_vm4, %v1131_v10, 0.0  ;;  %v1123_v16 = vpop.permute.xlu1 %1122 }
 0xd11   :  { %v1132_v36 = vsel %vm22_vm1, 0.0, %v1123_v16  ;;  %v1142_v18 = vsel %vm395_vm6, %v5877_v2, 0.0  ;;  %v5886_v9 = vmul.f32 %v1135_v13, %v5542_v34  ;;  %v1154_v28 = vmul.f32 %v5877_v2, %v5877_v2 }
 0xd12   :  { %v1136_v20 = vsel %vm222_vm4, %v1132_v36, 0.0  ;;  %1143 = vadd.xlane.f32.xlu1 %v1142_v18  ;;  %v1125_v40 = vpop.permute.xlu0 %1124 }
 0xd13   :  { %v5889_v12 = vmul.f32 %v1136_v20, %v5542_v34  ;;  %v1133_v22 = vsel %vm22_vm1, 0.0, %v1125_v40  ;;  %v1155_v43 = vmul.f32 %v5886_v9, %v5886_v9  ;;  %v1145_v11 = vsel %vm395_vm6, %v5886_v9, 0.0 }
 0xd14   :  { %v1137_v38 = vsel %vm222_vm4, %v1133_v22, 0.0  ;;  %v1158_v17 = vsel %vm395_vm6, %v1154_v28, 0.0  ;;  %v47_v22 = vand.u32 127, %v40_v27  ;;  %v5438_v27 = vmov 0.0  }
 0xd15   :  { %v5894_v3 = vmul.f32 %v1137_v38, %v5542_v34  ;;  %v1148_v24 = vsel %vm395_vm6, %v5889_v12, 0.0  ;;  %v1161_v30 = vsel %vm395_vm6, %v1155_v43, 0.0  ;;  %v1156_v14 = vmul.f32 %v5889_v12, %v5889_v12 }
 0xd16   :  { %1149 = vadd.xlane.f32.xlu0 %v1148_v24  ;;  %v4277_v38 = vadd.s32 4294967295, %v47_v22  ;;  %v42_v43 = vadd.s32 8, %v5537_v29  ;;  %vm48_vm7 = vcmp.ge.s32.totalorder %v47_v22, 1  ;;  %vm49_vm8 = vcmp.le.s32.totalorder %v47_v22, 8 }
 0xd17   :  { %v1151_v26 = vsel %vm395_vm6, %v5894_v3, 0.0  ;;  %v1157_v8 = vmul.f32 %v5894_v3, %v5894_v3  ;;  %v1164_v31 = vsel %vm395_vm6, %v1156_v14, 0.0  ;;  %vm5939_vm9 = vmand %vm48_vm7, %vm49_vm8 }
 0xd18   :  { %1152 = vadd.xlane.f32.xlu1 %v1151_v26  ;;  %v5934_v26 = vmul.u32 2, %v4277_v38 }
 0xd19   :  { %v1167_v4 = vsel %vm395_vm6, %v1157_v8, 0.0 }
 0xd1a   :  { %1146 = vadd.xlane.f32.xlu0 %v1145_v11  ;;  %v68_v11 = vadd.s32 18, %v5934_v26  ;;  %vm53_vm6 = vcmp.eq.s32.totalorder %v5537_v29, %v5934_v26  ;;  %vm54_vm7 = vcmp.eq.s32.totalorder %v42_v43, %v5934_v26 }
 0xd1b   :  { %vm58_vm8 = vmand %vm5939_vm9, %vm53_vm6  ;;  %vm1579_vm6 = vcmask 154624  }
 0xd1c   :  { %1162 = vadd.xlane.f32.xlu1 %v1161_v30  ;;  %vm69_vm10 = vcmp.eq.s32.totalorder %v5537_v29, %v68_v11  ;;  %vm70_vm11 = vcmp.eq.s32.totalorder %v42_v43, %v68_v11 }
 0xd1d   :  { %vm74_vm12 = vmand %vm5939_vm9, %vm69_vm10 }
 0xd1e   :  { %1159 = vadd.xlane.f32.xlu0 %v1158_v17  ;;  %vm75_vm13 = vmand %vm5939_vm9, %vm70_vm11  ;;  %v79_v17 = vsel %vm74_vm12, 1.0, %v5438_v27  ;;  %vm38_vm11 = vcmask 80896  }
 0xd1f   :  { %vm59_vm10 = vmand %vm5939_vm9, %vm54_vm7  ;;  %vm1608_vm7 = vcmask 162816  }
 0xd20   :  { %1168 = vadd.xlane.f32.xlu1 %v1167_v4 }
 0xd22   :  { %1165 = vadd.xlane.f32.xlu0 %v1164_v31 }
 0xd31   :  { %1231 = vperm.xlu1 %4859, %v5819_v50  }
 0xd35   :  { %1235 = vperm.xlu1 %4859, %v5825_v58  }
 0xd39   :  { %4860 = vset.pattern.permute.xlu1 %v5437_v35  ;;  %v5952_v35 = vadd.s32 32, %v5537_v29 }
 0xd3b   :  { %vm73_vm14 = vcmp.eq.s32.totalorder %v5952_v35, %v68_v11 }
 0xd3c   :  { %vm78_vm15 = vmand %vm5939_vm9, %vm73_vm14  ;;  %vm57_vm14 = vcmp.eq.s32.totalorder %v5952_v35, %v5934_v26 }
 0xd9f   :  { %v1144_v5 = vpop.xlane.xlu1 %1143 }
 0xda0   :  { %v5917_v15 = vmul.f32 0.03125, %v1144_v5 }
 0xda2   :  { %v1178_v46 = vmul.f32 %v5917_v15, %v5917_v15 }
 0xda3   :  { %v1150_v37 = vpop.xlane.xlu0 %1149 }
 0xda4   :  { %v5925_v41 = vmul.f32 0.03125, %v1150_v37 }
 0xda5   :  { %v1153_v7 = vpop.xlane.xlu1 %1152 }
 0xda6   :  { %v5919_v45 = vmul.f32 0.03125, %v1153_v7  ;;  %v1180_v59 = vmul.f32 %v5925_v41, %v5925_v41  ;;  %v83_v7 = vsel %vm78_vm15, 1.0, %v5438_v27 }
 0xda7   :  { %v1147_v51 = vpop.xlane.xlu0 %1146 }
 0xda8   :  { %v5921_v39 = vmul.f32 0.03125, %v1147_v51  ;;  %v1181_v48 = vmul.f32 %v5919_v45, %v5919_v45  ;;  %v1201_v43 = vsub.f32 %v5894_v3, %v5919_v45 }
 0xda9   :  { %v1163_v23 = vpop.xlane.xlu1 %1162 }
 0xdaa   :  { %v1179_v53 = vmul.f32 %v5921_v39, %v5921_v39  ;;  %v1175_v54 = vmul.f32 0.03125, %v1163_v23  ;;  %v5961_v23 = vadd.s32 16, %v5537_v29 }
 0xdab   :  { %v1160_v42 = vpop.xlane.xlu0 %1159 }
 0xdac   :  { %v1174_v44 = vmul.f32 0.03125, %v1160_v42  ;;  %v1183_v1 = vsub.f32 %v1175_v54, %v1179_v53  ;;  %v5965_v42 = vadd.s32 24, %v5537_v29  ;;  %vm71_vm0 = vcmp.eq.s32.totalorder %v5961_v23, %v68_v11 }
 0xdad   :  { %v1169_v52 = vpop.xlane.xlu1 %1168  ;;  %vm76_vm3 = vmand %vm5939_vm9, %vm71_vm0  ;;  %vm55_vm12 = vcmp.eq.s32.totalorder %v5961_v23, %v5934_v26 }
 0xdae   :  { %v1182_v55 = vsub.f32 %v1174_v44, %v1178_v46  ;;  %v1177_v56 = vmul.f32 0.03125, %v1169_v52  ;;  %v1187_v18 = vmax.f32 %v1183_v1, 0.0  ;;  %vm72_vm2 = vcmp.eq.s32.totalorder %v5965_v42, %v68_v11  ;;  %vm60_vm15 = vmand %vm5939_vm9, %vm55_vm12 }
 0xdaf   :  { %v1166_v57 = vpop.xlane.xlu0 %1165  ;;  %vm77_vm4 = vmand %vm5939_vm9, %vm72_vm2  ;;  %v81_v44 = vsel %vm76_vm3, 1.0, %v5438_v27  ;;  %vm1298_vm3 = vcmask 277504  }
 0xdb0   :  { %v1186_v21 = vmax.f32 %v1182_v55, 0.0  ;;  %v1185_v60 = vsub.f32 %v1177_v56, %v1181_v48  ;;  %v1176_v61 = vmul.f32 0.03125, %v1166_v57  ;;  %v1191_v24 = vadd.f32 1e-05, %v1187_v18  ;;  %vm62_vm2 = vmand %vm5939_vm9, %vm57_vm14 }
 0xdb1   :  { %v82_v48 = vsel %vm77_vm4, 1.0, %v5438_v27  ;;  %v1232_v52 = vpop.permute.xlu1 %1231  ;;  %v63_v57 = vsel %vm58_vm8, 1.0, %v5438_v27  ;;  %vm32_vm4 = vcmask 72704   ;;  %vm1962_vm8 = vcmask 523264  }
 0xdb2   :  { %v1190_v10 = vadd.f32 1e-05, %v1186_v21  ;;  %v1189_v13 = vmax.f32 %v1185_v60, 0.0  ;;  %v1184_v16 = vsub.f32 %v1176_v61, %v1180_v59  ;;  %v64_v59 = vsel %vm59_vm10, 1.0, %v5438_v27 }
 0xdb4   :  { %5316 = vrsqrt.f32 %v1190_v10  ;;  %v1188_v36 = vmax.f32 %v1184_v16, 0.0  ;;  %v1193_v20 = vadd.f32 1e-05, %v1189_v13 }
 0xdb5   :  { %v1236_v53 = vpop.permute.xlu1 %1235 }
 0xdb6   :  { %v1192_v40 = vadd.f32 1e-05, %v1188_v36  ;;  %v1199_v36 = vsub.f32 %v5886_v9, %v5921_v39 }
 0xdb8   :  { %5318 = vrsqrt.f32 %v1192_v40 }
 0xdb9   :  { %5320 = vrsqrt.f32 %v1193_v20  ;;  %v1200_v20 = vsub.f32 %v5889_v12, %v5925_v41 }
 0xdba   :  { %5322 = vrsqrt.f32 %v1191_v24 }
 0xdbe   :  { %v5317_v28 = vpop.eup %5316 }
 0xdbf   :  { %v1202_v30 = vmul.f32 %v5819_v50, %v5317_v28  ;;  %v80_v50 = vsel %vm75_vm13, 1.0, %v5438_v27  ;;  %vm56_vm13 = vcmp.eq.s32.totalorder %v5965_v42, %v5934_v26  ;;  %v65_v26 = vsel %vm60_vm15, 1.0, %v5438_v27 }
 0xdc0   :  { %v4862_v31 = vpack.i.bf16 %v80_v50, %v79_v17  ;;  %vm61_vm0 = vmand %vm5939_vm9, %vm56_vm13  ;;  %vm1311_vm9 = vcmask 1041408  }
 0xdc1   :  { %1208 = vperm.xlu0 %4858, %v1202_v30   ;;  %v66_v17 = vsel %vm61_vm0, 1.0, %v5438_v27 }
 0xdc2   :  { %v5319_v14 = vpop.eup %5318 }
 0xdc3   :  { %v1204_v4 = vmul.f32 %v5836_v47, %v5319_v14  ;;  %v5321_v5 = vpop.eup %5320 }
 0xdc4   :  { %v1205_v37 = vmul.f32 %v5842_v49, %v5321_v5  ;;  %v5323_v51 = vpop.eup %5322 }
 0xdc5   :  { %1218 = vperm.xlu1 %4860, %v1204_v4   ;;  %4863 = vrot.lane.b32.xlu0 %v4862_v31, %s5439_s13  ;;  %v1203_v46 = vmul.f32 %v5825_v58, %v5323_v51  ;;  %v4867_v58 = vpack.i.bf16 %v82_v48, %v81_v44  ;;  %v67_v31 = vsel %vm62_vm2, 1.0, %v5438_v27 }
 0xdc9   :  { %1223 = vperm.xlu1 %4860, %v1205_v37   ;;  %97 = vrot.lane.b32.xlu0 %v83_v7, %s5439_s13 }
 0xdcd   :  { %1213 = vperm.xlu1 %4860, %v1203_v46  }
 0xdd1   :  { %4861 = vset.pattern.permute.xlu1 %v5436_v33  ;;  %v1198_v33 = vsub.f32 %v5877_v2, %v5917_v15 }
 0xdd2   :  { %1239 = vperm.xlu1 %4861, %v5836_v47  }
 0xdd6   :  { %1243 = vperm.xlu1 %4861, %v5842_v49  }
 0xdda   :  { %4868 = vrot.lane.b32.xlu1 %v4867_v58, %s5439_s13 }
 0xe40   :  { %v1209_v47 = vpop.permute.xlu0 %1208 }
 0xe41   :  { %v1226_v54 = vmul.f32 %v1209_v47, %v1198_v33 }
 0xe43   :  { %v1246_v49 = vadd.f32 %v1232_v52, %v1226_v54 }
 0xe44   :  { %v1219_v55 = vpop.permute.xlu1 %1218  ;;  %v4864_v56 = vpop.permute.xlu0 %4863 }
 0xe45   :  { %v1250_v21 = vadd.f32 %v1246_v49, %v5735_v25  ;;  %v4866_v2 = vunpack.i.h.bf16 %v4864_v56  ;;  %v4865_v15 = vunpack.i.l.bf16 %v4864_v56  ;;  %v1228_v22 = vmul.f32 %v1219_v55, %v1200_v20 }
 0xe47   :  { %v1254_v60 = vmax.f32 %v1250_v21, 0.0  ;;  %v104_v61 = vsel %vm38_vm11, %v63_v57, %v4865_v15  ;;  %v105_v1 = vsel %vm38_vm11, %v64_v59, %v4866_v2 }
 0xe48   :  { %v1224_v10 = vpop.permute.xlu1 %1223  ;;  %v4712_v13 = vpack.c.bf16 %v105_v1, %v104_v61  ;;  %v98_v8 = vpop.permute.xlu0 %97  ;;  %v5200_v1 = vld [vmem:[%s7354_s1 + $0xa0] ss:$8 sps:$4 sm:$0xff]  }
 0xe49   :  { %v1258_v16 = vmul.f32 %v1254_v60, %v5542_v34  ;;  %v1229_v9 = vmul.f32 %v1224_v10, %v1201_v43  ;;  %v108_v7 = vsel %vm38_vm11, %v67_v31, %v98_v8  ;;  %v6046_v10 = vsel %vm32_vm4, %v5523_v19, 0.0 }
 0xe4a   :  { %4713 = vmatprep.subr.bf16.mxu1 %v4712_v13 }
 0xe4b   :  { %1282 = vrot.lane.b32.xlu1 %v1258_v16, %s5426_s28  ;;  %1266 = vrot.lane.b32.xlu0 %v1258_v16, %s5424_s24 }
 0xe4c   :  { %v1214_v25 = vpop.permute.xlu1 %1213  ;;  %4715 = vmatpush3.bf16.msra.mxu1 %v4712_v13 }
 0xe4d   :  { %v1227_v18 = vmul.f32 %v1214_v25, %v1199_v36 }
 0xe4f   :  { %v1247_v40 = vadd.f32 %v1236_v53, %v1227_v18 }
 0xe51   :  { %v1251_v38 = vadd.f32 %v1247_v40, %v5738_v0  ;;  %v1240_v24 = vpop.permute.xlu1 %1239 }
 0xe52   :  { %v1248_v11 = vadd.f32 %v1240_v24, %v1228_v22 }
 0xe53   :  { %v1255_v28 = vmax.f32 %v1251_v38, 0.0 }
 0xe54   :  { %v1252_v39 = vadd.f32 %v1248_v11, %v5753_v62 }
 0xe55   :  { %v1244_v12 = vpop.permute.xlu1 %1243  ;;  %v1259_v41 = vmul.f32 %v1255_v28, %v5542_v34 }
 0xe56   :  { %v1256_v0 = vmax.f32 %v1252_v39, 0.0  ;;  %v1249_v3 = vadd.f32 %v1244_v12, %v1229_v9  ;;  %v5201_v12 = vld [vmem:[%s7354_s1 + $0xb0] ss:$8 sps:$4 sm:$0xff]  }
 0xe57   :  { %1268 = vrot.lane.b32.xlu1 %v1259_v41, %s5424_s24 }
 0xe58   :  { %v1260_v45 = vmul.f32 %v1256_v0, %v5542_v34  ;;  %v1253_v62 = vadd.f32 %v1249_v3, %v5756_v63  ;;  %v5203_v0 = vld [vmem:[%s7354_s1 + $0xd0] ss:$8 sps:$4 sm:$0xff]  }
 0xe59   :  { %v4869_v30 = vpop.permute.xlu1 %4868 }
 0xe5a   :  { %v1257_v14 = vmax.f32 %v1253_v62, 0.0  ;;  %v4871_v50 = vunpack.i.h.bf16 %v4869_v30  ;;  %v4870_v4 = vunpack.i.l.bf16 %v4869_v30 }
 0xe5b   :  { %1270 = vrot.lane.b32.xlu1 %v1260_v45, %s5424_s24 }
 0xe5c   :  { %v1261_v35 = vmul.f32 %v1257_v14, %v5542_v34  ;;  %v106_v5 = vsel %vm38_vm11, %v65_v26, %v4870_v4  ;;  %v107_v63 = vsel %vm38_vm11, %v66_v17, %v4871_v50 }
 0xe5d   :  { %v4716_v37 = vpack.c.bf16 %v107_v63, %v106_v5 }
 0xe5e   :  { %1272 = vrot.lane.b32.xlu0 %v1261_v35, %s5424_s24 }
 0xe5f   :  { %1286 = vrot.lane.b32.xlu1 %v1260_v45, %s5426_s28  ;;  %4717 = vmatprep.subr.bf16.mxu1 %v4716_v37 }
 0xe60   :  { %4719 = vmatpush3.bf16.msra.mxu1 %v4716_v37 }
 0xe61   :  { %4664 = vmatprep.subr.msk.mxu1 %vm1311_vm9, %v108_v7 }
 0xe62   :  { %1284 = vrot.lane.b32.xlu0 %v1259_v41, %s5426_s28 }
 0xe64   :  { %4665 = vmatpush3.msk.msra.mxu1 %vm1311_vm9, %v108_v7 }
 0xe66   :  { %1288 = vrot.lane.b32.xlu0 %v1261_v35, %s5426_s28 }
 0xebd   :  { %v1267_v34 = vpop.permute.xlu0 %1266  ;;  %v1283_v51 = vpop.permute.xlu1 %1282 }
 0xebe   :  { %v1278_v27 = vmax.f32 %v1258_v16, %v1267_v34 }
 0xec0   :  { %v1294_v23 = vmax.f32 %v1278_v27, %v1283_v51 }
 0xec2   :  { %4666 = vmatprep.mubr.msk.f32.mxu1 %vm1298_vm3, %v1294_v23 }
 0xec9   :  { %v1269_v42 = vpop.permute.xlu1 %1268 }
 0xeca   :  { %v1279_v48 = vmax.f32 %v1259_v41, %v1269_v42  ;;  %v5202_v41 = vld [vmem:[%s7354_s1 + $0xc0] ss:$8 sps:$4 sm:$0xff]  }
 0xecd   :  { %v1271_v46 = vpop.permute.xlu1 %1270 }
 0xece   :  { %v1280_v52 = vmax.f32 %v1260_v45, %v1271_v46 }
 0xed0   :  { %v1273_v44 = vpop.permute.xlu0 %1272 }
 0xed1   :  { %v1287_v58 = vpop.permute.xlu1 %1286  ;;  %v1281_v54 = vmax.f32 %v1261_v35, %v1273_v44 }
 0xed2   :  { %v1296_v47 = vmax.f32 %v1280_v52, %v1287_v58 }
 0xed4   :  { %v1285_v33 = vpop.permute.xlu0 %1284 }
 0xed5   :  { %v1295_v53 = vmax.f32 %v1279_v48, %v1285_v33 }
 0xed7   :  { %4667 = vmatmul.mubr.msk.f32.vlgmr.msra.gmra.mrb[8].mxu1 %vm1298_vm3, %v1295_v53 }
 0xed8   :  { %v1289_v49 = vpop.permute.xlu0 %1288  ;;  %4669 = vmatprep.mubr.msk.f32.mxu1 %vm1298_vm3, %v1296_v47 }
 0xed9   :  { %v1297_v55 = vmax.f32 %v1281_v54, %v1289_v49 }
 0xedb   :  { %4670 = vmatmul.mubr.msk.f32.gmra.mrb[10].mxu1 %vm1298_vm3, %v1297_v55 }
 0xedc   :  { %4684 = vmatprep.mubr.msk.bf16.mxu1 %vm311_vm5, %v5200_v1 }
 0xfaa   :  { %v4668_v56 = vpop.f32.mrb[8].mxu1 }
 0xfab   :  { %v1381_v57 = vpop.f32.mrb[9].mxu1 }
 0xfac   :  { %v4882_v59 = vpack.i.bf16 %v4668_v56, %v1381_v57  ;;  %v1436_v21 = vpack.c.bf16 %v4668_v56, %v1381_v57 }
 0xfae   :  { %4873 = vrot.lane.b32.xlu1 %v4882_v59, %s5424_s24  ;;  %v4671_v2 = vpop.f32.mrb[10].mxu1  ;;  %4672 = vmatprep.subr.bf16.mxu1 %v1436_v21 }
 0xfaf   :  { %v1391_v15 = vpop.f32.mrb[11].mxu1  ;;  %4673 = vmatpush3.bf16.msra.mxu1 %v1436_v21 }
 0xfb0   :  { %v4887_v60 = vpack.i.bf16 %v4671_v2, %v1391_v15  ;;  %v1437_v61 = vpack.c.bf16 %v4671_v2, %v1391_v15 }
 0xfb2   :  { %4883 = vrot.lane.b32.xlu1 %v4882_v59, %s5426_s28  ;;  %4878 = vrot.lane.b32.xlu0 %v4887_v60, %s5424_s24 }
 0xfb3   :  { %4674 = vmatprep.subr.bf16.mxu1 %v1437_v61 }
 0xfb4   :  { %4675 = vmatpush3.bf16.msra.mxu1 %v1437_v61 }
 0xfb6   :  { %4888 = vrot.lane.b32.xlu0 %v4887_v60, %s5426_s28  ;;  %35 = vrot.lane.b32.xlu1 %v6046_v10, %s5439_s13 }
0x1020   :  { %v4874_v13 = vpop.permute.xlu1 %4873 }
0x1021   :  { %v4876_v16 = vunpack.i.h.bf16 %v4874_v13  ;;  %v4875_v36 = vunpack.i.l.bf16 %v4874_v13 }
0x1023   :  { %v1438_v25 = vpack.c.bf16 %v4876_v16, %v4875_v36 }
0x1024   :  { %v4884_v18 = vpop.permute.xlu1 %4883  ;;  %v4879_v20 = vpop.permute.xlu0 %4878 }
0x1025   :  { %v4886_v40 = vunpack.i.h.bf16 %v4884_v18  ;;  %v4885_v22 = vunpack.i.l.bf16 %v4884_v18  ;;  %v4881_v38 = vunpack.i.h.bf16 %v4879_v20  ;;  %v4880_v24 = vunpack.i.l.bf16 %v4879_v20  ;;  %4676 = vmatprep.subr.bf16.mxu1 %v1438_v25 }
0x1026   :  { %4677 = vmatpush3.bf16.msra.mxu1 %v1438_v25 }
0x1027   :  { %v1439_v43 = vpack.c.bf16 %v4881_v38, %v4880_v24  ;;  %v1440_v28 = vpack.c.bf16 %v4886_v40, %v4885_v22 }
0x1028   :  { %v4889_v11 = vpop.permute.xlu0 %4888  ;;  %v36_v4 = vpop.permute.xlu1 %35 }
0x1029   :  { %v4891_v19 = vunpack.i.h.bf16 %v4889_v11  ;;  %v4890_v9 = vunpack.i.l.bf16 %v4889_v11  ;;  %4678 = vmatprep.subr.bf16.mxu1 %v1439_v43  ;;  %v39_v31 = vsel %vm38_vm11, %v6046_v10, %v36_v4  ;;  %v6174_v4 = vld [vmem:[%s7355_s2 + $0x10] sm:$0xff] }
0x102a   :  { %4679 = vmatpush3.bf16.msra.mxu1 %v1439_v43  ;;  %v6075_v35 = vrot.slane %v39_v31, %v229_v32  ;;  %v6180_v31 = vld [vmem:[%s7355_s2 + $0x18] sm:$0xff] }
0x102b   :  { %4680 = vmatprep.subr.bf16.mxu1 %v1440_v28  ;;  %v1441_v39 = vpack.c.bf16 %v4891_v19, %v4890_v9 }
0x102e   :  { %4681 = vmatpush3.bf16.msra.mxu1 %v1440_v28 }
0x102f   :  { %4682 = vmatprep.subr.bf16.mxu1 %v1441_v39 }
0x1032   :  { %4683 = vmatpush3.bf16.msra.mxu1 %v1441_v39 }
0x1033   :  { %4692 = vmatprep.subr.bf16.mxu1 %v1436_v21 }
0x1035   :  { %4685 = vmatmul.mubr.msk.bf16.vlgmr.msra.gmra.mrb[12].mxu1 %vm311_vm5, %v5201_v12 }
0x1036   :  { %4693 = vmatpush3.bf16.msra.mxu1 %v1436_v21  ;;  %4688 = vmatprep.mubr.msk.bf16.mxu1 %vm311_vm5, %v5202_v41 }
0x1037   :  { %4694 = vmatprep.subr.bf16.mxu1 %v1437_v61 }
0x103a   :  { %4695 = vmatpush3.bf16.msra.mxu1 %v1437_v61 }
0x103b   :  { %4696 = vmatprep.subr.bf16.mxu1 %v1438_v25 }
0x103d   :  { %4689 = vmatmul.mubr.msk.bf16.gmra.mrb[16].mxu1 %vm311_vm5, %v5203_v0 }
0x103e   :  { %4697 = vmatpush3.bf16.msra.mxu1 %v1438_v25 }
0x103f   :  { %4698 = vmatprep.subr.bf16.mxu1 %v1439_v43 }
0x1042   :  { %4699 = vmatpush3.bf16.msra.mxu1 %v1439_v43  ;;  %v5440_v43 = vmov 11  }
0x1043   :  { %4700 = vmatprep.subr.bf16.mxu1 %v1440_v28  ;;  %4892 = vset.pattern.permute.xlu1 %v5440_v43 }
0x1046   :  { %4701 = vmatpush3.bf16.msra.mxu1 %v1440_v28 }
0x1047   :  { %4702 = vmatprep.subr.bf16.mxu1 %v1441_v39 }
0x104a   :  { %4703 = vmatpush3.bf16.msra.mxu1 %v1441_v39 }
0x104b   :  { %2661 = vmatprep.subr.bf16.mxu1 %v5425_v6 }
0x1108   :  { %v4686_v3 = vpop.f32.mrb[12].mxu1 }
0x1109   :  { %v1508_v45 = vpop.f32.mrb[13].mxu1 }
0x110a   :  { %1547 = vrot.lane.b32.xlu0 %v1508_v45, %s5429_s9  ;;  %v4687_v62 = vpop.f32.mrb[14].mxu1 }
0x110b   :  { %v1511_v30 = vpop.f32.mrb[15].mxu1 }
0x110c   :  { %1549 = vrot.lane.b32.xlu1 %v1511_v30, %s5429_s9 }
0x110e   :  { %1551 = vrot.lane.b32.xlu0 %v4686_v3, %s5429_s9 }
0x1110   :  { %1553 = vrot.lane.b32.xlu1 %v4687_v62, %s5429_s9  ;;  %v4690_v26 = vpop.f32.mrb[16].mxu1 }
0x1111   :  { %v1524_v17 = vpop.f32.mrb[17].mxu1 }
0x1112   :  { %1555 = vrot.lane.b32.xlu0 %v1524_v17, %s5429_s9  ;;  %v4691_v14 = vpop.f32.mrb[18].mxu1  ;;  %v6161_v17 = vld [vmem:[%s7355_s2] sm:$0xff] }
0x1113   :  { %v1527_v50 = vpop.f32.mrb[19].mxu1 }
0x1114   :  { %1557 = vrot.lane.b32.xlu1 %v1527_v50, %s5429_s9  ;;  %v6168_v50 = vld [vmem:[%s7355_s2 + $0x8] sm:$0xff] }
0x1116   :  { %1559 = vrot.lane.b32.xlu0 %v4690_v26, %s5429_s9 }
0x1118   :  { %1561 = vrot.lane.b32.xlu1 %v4691_v14, %s5429_s9  ;;  %v5441_v14 = vmov 10  }
0x1119   :  { %4894 = vset.pattern.permute.xlu0 %v5441_v14 }
0x117c   :  { %v1548_v5 = vpop.permute.xlu0 %1547 }
0x117d   :  { %v1571_v63 = vsel %vm22_vm1, 0.0, %v1548_v5 }
0x117e   :  { %v1580_v8 = vsel %vm1579_vm6, %v1571_v63, 0.0  ;;  %v1550_v37 = vpop.permute.xlu1 %1549 }
0x117f   :  { %v6080_v7 = vmul.f32 %v6075_v35, %v1580_v8  ;;  %v1572_v23 = vsel %vm22_vm1, 0.0, %v1550_v37 }
0x1180   :  { %v1552_v34 = vpop.permute.xlu0 %1551  ;;  %v1581_v53 = vsel %vm1579_vm6, %v1572_v23, 0.0 }
0x1181   :  { %v1573_v27 = vsel %vm22_vm1, 0.0, %v1552_v34  ;;  %v1609_v51 = vsel %vm1608_vm7, %v6080_v7, 0.0  ;;  %v1633_v49 = vmul.f32 %v6080_v7, %v6080_v7  ;;  %v6105_v56 = vmul.f32 %v6075_v35, %v1581_v53 }
0x1182   :  { %v1582_v29 = vsel %vm1579_vm6, %v1573_v27, 0.0  ;;  %v1554_v32 = vpop.permute.xlu1 %1553  ;;  %1610 = vadd.xlane.f32.xlu0 %v1609_v51 }
0x1183   :  { %v6088_v42 = vmul.f32 %v6075_v35, %v1582_v29  ;;  %v1574_v46 = vsel %vm22_vm1, 0.0, %v1554_v32  ;;  %v1641_v60 = vsel %vm1608_vm7, %v1633_v49, 0.0  ;;  %v1612_v13 = vsel %vm1608_vm7, %v6105_v56, 0.0 }
0x1184   :  { %v1583_v44 = vsel %vm1579_vm6, %v1574_v46, 0.0  ;;  %v1556_v48 = vpop.permute.xlu0 %1555  ;;  %v1634_v25 = vmul.f32 %v6105_v56, %v6105_v56 }
0x1185   :  { %v6093_v58 = vmul.f32 %v6075_v35, %v1583_v44  ;;  %v1615_v52 = vsel %vm1608_vm7, %v6088_v42, 0.0  ;;  %v1635_v33 = vmul.f32 %v6088_v42, %v6088_v42  ;;  %v1575_v15 = vsel %vm22_vm1, 0.0, %v1556_v48 }
0x1186   :  { %1616 = vadd.xlane.f32.xlu1 %v1615_v52  ;;  %v1558_v47 = vpop.permute.xlu1 %1557  ;;  %v1584_v16 = vsel %vm1579_vm6, %v1575_v15, 0.0  ;;  %v1644_v24 = vsel %vm1608_vm7, %v1634_v25, 0.0 }
0x1187   :  { %v1618_v54 = vsel %vm1608_vm7, %v6093_v58, 0.0  ;;  %v1647_v59 = vsel %vm1608_vm7, %v1635_v33, 0.0  ;;  %v1636_v61 = vmul.f32 %v6093_v58, %v6093_v58  ;;  %v6126_v20 = vmul.f32 %v6075_v35, %v1584_v16 }
0x1188   :  { %1619 = vadd.xlane.f32.xlu0 %v1618_v54  ;;  %v1560_v55 = vpop.permute.xlu0 %1559  ;;  %v1576_v40 = vsel %vm22_vm1, 0.0, %v1558_v47 }
0x1189   :  { %v1577_v57 = vsel %vm22_vm1, 0.0, %v1560_v55  ;;  %v1650_v36 = vsel %vm1608_vm7, %v1636_v61, 0.0  ;;  %v1585_v11 = vsel %vm1579_vm6, %v1576_v40, 0.0  ;;  %v1621_v28 = vsel %vm1608_vm7, %v6126_v20, 0.0 }
0x118a   :  { %v1586_v21 = vsel %vm1579_vm6, %v1577_v57, 0.0  ;;  %1648 = vadd.xlane.f32.xlu1 %v1647_v59  ;;  %v1562_v2 = vpop.permute.xlu1 %1561  ;;  %v1637_v19 = vmul.f32 %v6126_v20, %v6126_v20  ;;  %v6142_v9 = vmul.f32 %v6075_v35, %v1585_v11 }
0x118b   :  { %v6115_v1 = vmul.f32 %v6075_v35, %v1586_v21  ;;  %v1578_v10 = vsel %vm22_vm1, 0.0, %v1562_v2 }
0x118c   :  { %1642 = vadd.xlane.f32.xlu0 %v1641_v60  ;;  %v1587_v18 = vsel %vm1579_vm6, %v1578_v10, 0.0  ;;  %v1653_v12 = vsel %vm1608_vm7, %v1637_v19, 0.0  ;;  %v1624_v0 = vsel %vm1608_vm7, %v6142_v9, 0.0  ;;  %v1638_v3 = vmul.f32 %v6142_v9, %v6142_v9 }
0x118d   :  { %v1627_v22 = vsel %vm1608_vm7, %v6115_v1, 0.0  ;;  %v6132_v38 = vmul.f32 %v6075_v35, %v1587_v18  ;;  %v1639_v41 = vmul.f32 %v6115_v1, %v6115_v1 }
0x118e   :  { %1613 = vadd.xlane.f32.xlu1 %v1612_v13  ;;  %v1656_v62 = vsel %vm1608_vm7, %v1638_v3, 0.0 }
0x118f   :  { %v1630_v39 = vsel %vm1608_vm7, %v6132_v38, 0.0  ;;  %v1659_v45 = vsel %vm1608_vm7, %v1639_v41, 0.0  ;;  %v1640_v30 = vmul.f32 %v6132_v38, %v6132_v38 }
0x1190   :  { %1651 = vadd.xlane.f32.xlu0 %v1650_v36 }
0x1191   :  { %v1662_v26 = vsel %vm1608_vm7, %v1640_v30, 0.0 }
0x1192   :  { %1628 = vadd.xlane.f32.xlu1 %v1627_v22 }
0x1194   :  { %1645 = vadd.xlane.f32.xlu0 %v1644_v24 }
0x1196   :  { %1622 = vadd.xlane.f32.xlu1 %v1621_v28 }
0x1198   :  { %1631 = vadd.xlane.f32.xlu0 %v1630_v39 }
0x119a   :  { %1654 = vadd.xlane.f32.xlu1 %v1653_v12 }
0x119c   :  { %1625 = vadd.xlane.f32.xlu0 %v1624_v0 }
0x119e   :  { %1660 = vadd.xlane.f32.xlu1 %v1659_v45 }
0x11a0   :  { %1657 = vadd.xlane.f32.xlu0 %v1656_v62 }
0x11a4   :  { %1663 = vadd.xlane.f32.xlu0 %v1662_v26 }
0x11af   :  { %1788 = vperm.xlu1 %4892, %v6161_v17  }
0x11b3   :  { %1793 = vperm.xlu1 %4892, %v6168_v50  }
0x11b7   :  { %1798 = vperm.xlu1 %4892, %v6174_v4  }
0x11bb   :  { %1803 = vperm.xlu1 %4892, %v6180_v31  }
0x11bf   :  { %4893 = vset.pattern.permute.xlu1 %v5441_v14 }
0x120f   :  { %v1611_v5 = vpop.xlane.xlu0 %1610 }
0x1210   :  { %v6186_v34 = vmul.f32 0.0625, %v1611_v5 }
0x1212   :  { %v1682_v46 = vmul.f32 %v6186_v34, %v6186_v34 }
0x1213   :  { %v1617_v63 = vpop.xlane.xlu1 %1616 }
0x1214   :  { %v6184_v8 = vmul.f32 0.0625, %v1617_v63 }
0x1215   :  { %v1620_v37 = vpop.xlane.xlu0 %1619 }
0x1216   :  { %v1684_v51 = vmul.f32 %v6184_v8, %v6184_v8  ;;  %v6190_v32 = vmul.f32 0.0625, %v1620_v37 }
0x1217   :  { %v1649_v27 = vpop.xlane.xlu1 %1648 }
0x1218   :  { %v1676_v29 = vmul.f32 0.0625, %v1649_v27  ;;  %v1685_v47 = vmul.f32 %v6190_v32, %v6190_v32 }
0x1219   :  { %v1643_v23 = vpop.xlane.xlu0 %1642 }
0x121a   :  { %v1692_v44 = vsub.f32 %v1676_v29, %v1684_v51  ;;  %v1674_v48 = vmul.f32 0.0625, %v1643_v23 }
0x121b   :  { %v1614_v52 = vpop.xlane.xlu1 %1613 }
0x121c   :  { %v1700_v33 = vmax.f32 %v1692_v44, 0.0  ;;  %v1690_v53 = vsub.f32 %v1674_v48, %v1682_v46  ;;  %v6196_v57 = vmul.f32 0.0625, %v1614_v52 }
0x121d   :  { %v1652_v54 = vpop.xlane.xlu0 %1651 }
0x121e   :  { %v1708_v49 = vadd.f32 1e-05, %v1700_v33  ;;  %v1698_v55 = vmax.f32 %v1690_v53, 0.0  ;;  %v1677_v59 = vmul.f32 0.0625, %v1652_v54  ;;  %v1683_v61 = vmul.f32 %v6196_v57, %v6196_v57 }
0x121f   :  { %v1629_v21 = vpop.xlane.xlu1 %1628 }
0x1220   :  { %5324 = vrsqrt.f32 %v1708_v49  ;;  %v1706_v2 = vadd.f32 1e-05, %v1698_v55  ;;  %v1693_v15 = vsub.f32 %v1677_v59, %v1685_v47  ;;  %v6202_v11 = vmul.f32 0.0625, %v1629_v21 }
0x1221   :  { %v1646_v60 = vpop.xlane.xlu0 %1645 }
0x1222   :  { %5326 = vrsqrt.f32 %v1706_v2  ;;  %v1701_v10 = vmax.f32 %v1693_v15, 0.0  ;;  %v1675_v13 = vmul.f32 0.0625, %v1646_v60  ;;  %v1688_v26 = vmul.f32 %v6202_v11, %v6202_v11 }
0x1223   :  { %v1623_v16 = vpop.xlane.xlu1 %1622 }
0x1224   :  { %v1709_v36 = vadd.f32 1e-05, %v1701_v10  ;;  %v1691_v25 = vsub.f32 %v1675_v13, %v1683_v61  ;;  %v6200_v18 = vmul.f32 0.0625, %v1623_v16  ;;  %v6223_v10 = vld [vmem:[%s7355_s2 + $0x28] sm:$0xff]  ;;  %v6231_v16 = vld [vmem:[%s7355_s2 + $0x20] sm:$0xff] }
0x1225   :  { %v1632_v40 = vpop.xlane.xlu0 %1631 }
0x1226   :  { %5328 = vrsqrt.f32 %v1709_v36  ;;  %v1699_v22 = vmax.f32 %v1691_v25, 0.0  ;;  %v1686_v19 = vmul.f32 %v6200_v18, %v6200_v18  ;;  %v6211_v63 = vmul.f32 0.0625, %v1632_v40  ;;  %v6236_v36 = vld [vmem:[%s7355_s2 + $0x30] sm:$0xff] }
0x1227   :  { %v1655_v24 = vpop.xlane.xlu1 %1654 }
0x1228   :  { %v1707_v28 = vadd.f32 1e-05, %v1699_v22  ;;  %v1678_v39 = vmul.f32 0.0625, %v1655_v24  ;;  %v1689_v33 = vmul.f32 %v6211_v63, %v6211_v63  ;;  %v6245_v24 = vld [vmem:[%s7355_s2 + $0x38] sm:$0xff] }
0x1229   :  { %v1626_v12 = vpop.xlane.xlu0 %1625 }
0x122a   :  { %v5325_v41 = vpop.eup %5324  ;;  %5330 = vrsqrt.f32 %v1707_v28  ;;  %v1694_v0 = vsub.f32 %v1678_v39, %v1686_v19  ;;  %v6206_v3 = vmul.f32 0.0625, %v1626_v12 }
0x122b   :  { %v1661_v45 = vpop.xlane.xlu1 %1660  ;;  %v1732_v62 = vmul.f32 %v5325_v41, %v6174_v4 }
0x122c   :  { %v5327_v30 = vpop.eup %5326  ;;  %v1680_v5 = vmul.f32 0.0625, %v1661_v45  ;;  %v1702_v27 = vmax.f32 %v1694_v0, 0.0  ;;  %v1687_v51 = vmul.f32 %v6206_v3, %v6206_v3 }
0x122d   :  { %v1658_v37 = vpop.xlane.xlu0 %1657  ;;  %1750 = vperm.xlu1 %4893, %v1732_v62   ;;  %v1730_v46 = vmul.f32 %v5327_v30, %v6161_v17 }
0x122e   :  { %v1696_v29 = vsub.f32 %v1680_v5, %v1688_v26  ;;  %v1679_v23 = vmul.f32 0.0625, %v1658_v37  ;;  %v1710_v47 = vadd.f32 1e-05, %v1702_v27  ;;  %v1724_v26 = vsub.f32 %v6088_v42, %v6184_v8 }
0x122f   :  { %v1722_v37 = vsub.f32 %v6080_v7, %v6186_v34 }
0x1230   :  { %v5329_v44 = vpop.eup %5328  ;;  %v1704_v48 = vmax.f32 %v1696_v29, 0.0  ;;  %v1695_v52 = vsub.f32 %v1679_v23, %v1687_v51 }
0x1231   :  { %v1664_v53 = vpop.xlane.xlu0 %1663  ;;  %1740 = vperm.xlu1 %4893, %v1730_v46   ;;  %v1733_v59 = vmul.f32 %v5329_v44, %v6180_v31 }
0x1232   :  { %v1712_v54 = vadd.f32 1e-05, %v1704_v48  ;;  %v1703_v49 = vmax.f32 %v1695_v52, 0.0  ;;  %v1681_v55 = vmul.f32 0.0625, %v1664_v53  ;;  %v1723_v48 = vsub.f32 %v6105_v56, %v6196_v57 }
0x1234   :  { %v5331_v21 = vpop.eup %5330  ;;  %5332 = vrsqrt.f32 %v1712_v54  ;;  %v1697_v2 = vsub.f32 %v1681_v55, %v1689_v33  ;;  %v1711_v15 = vadd.f32 1e-05, %v1703_v49 }
0x1235   :  { %1755 = vperm.xlu1 %4893, %v1733_v59   ;;  %v1731_v60 = vmul.f32 %v5331_v21, %v6168_v50  ;;  %5334 = vrsqrt.f32 %v1710_v47 }
0x1236   :  { %v1705_v61 = vmax.f32 %v1697_v2, 0.0  ;;  %5336 = vrsqrt.f32 %v1711_v15  ;;  %v1726_v15 = vsub.f32 %v6126_v20, %v6200_v18 }
0x1237   :  { %1745 = vperm.xlu0 %4894, %v1731_v60  }
0x1238   :  { %v1713_v13 = vadd.f32 1e-05, %v1705_v61 }
0x1239   :  { %4896 = vset.pattern.permute.xlu1 %v5440_v43 }
0x123a   :  { %5338 = vrsqrt.f32 %v1713_v13  ;;  %1813 = vperm.xlu1 %4896, %v6223_v10  }
0x123b   :  { %4895 = vset.pattern.permute.xlu0 %v5440_v43 }
0x123c   :  { %1808 = vperm.xlu0 %4895, %v6231_v16  }
0x123e   :  { %v5333_v25 = vpop.eup %5332  ;;  %4897 = vset.pattern.permute.xlu1 %v5441_v14 }
0x123f   :  { %v1736_v40 = vmul.f32 %v5333_v25, %v6236_v36  ;;  %v5335_v22 = vpop.eup %5334 }
0x1240   :  { %4898 = vset.pattern.permute.xlu0 %v5441_v14  ;;  %v5337_v28 = vpop.eup %5336  ;;  %v1734_v19 = vmul.f32 %v5335_v22, %v6231_v16  ;;  %v1789_v14 = vpop.permute.xlu1 %1788 }
0x1241   :  { %1770 = vperm.xlu1 %4897, %v1736_v40   ;;  %v1735_v41 = vmul.f32 %v5337_v28, %v6223_v10  ;;  %v1727_v40 = vsub.f32 %v6142_v9, %v6206_v3 }
0x1244   :  { %v5339_v39 = vpop.eup %5338  ;;  %v1794_v0 = vpop.permute.xlu1 %1793 }
0x1245   :  { %1760 = vperm.xlu1 %4897, %v1734_v19   ;;  %v1737_v12 = vmul.f32 %v5339_v39, %v6245_v24  ;;  %v1728_v19 = vsub.f32 %v6115_v1, %v6202_v11 }
0x1247   :  { %1775 = vperm.xlu0 %4898, %v1737_v12  }
0x1248   :  { %v1799_v45 = vpop.permute.xlu1 %1798 }
0x1249   :  { %1765 = vperm.xlu1 %4897, %v1735_v41  }
0x124c   :  { %v1804_v62 = vpop.permute.xlu1 %1803 }
0x124d   :  { %4899 = vset.pattern.permute.xlu1 %v5440_v43  ;;  %v1725_v43 = vsub.f32 %v6093_v58, %v6190_v32 }
0x124e   :  { %1818 = vperm.xlu1 %4899, %v6236_v36  }
0x1252   :  { %1823 = vperm.xlu1 %4899, %v6245_v24  }
0x12ac   :  { %v1751_v30 = vpop.permute.xlu1 %1750 }
0x12ad   :  { %v1780_v5 = vmul.f32 %v1751_v30, %v1724_v26 }
0x12af   :  { %v1828_v29 = vadd.f32 %v1799_v45, %v1780_v5 }
0x12b0   :  { %v1741_v27 = vpop.permute.xlu1 %1740 }
0x12b1   :  { %v1778_v51 = vmul.f32 %v1741_v27, %v1722_v37  ;;  %v1836_v33 = vmax.f32 %v1828_v29, 0.0  ;;  %v5204_v29 = vld [vmem:[%s7354_s1 + $0xe4] ss:$8 sps:$4 sm:$0xff]  }
0x12b2   :  { %4319 = vmatprep.mubr.msk.bf16.mxu0 %vm1962_vm8, %v5204_v29 }
0x12b3   :  { %v1826_v23 = vadd.f32 %v1789_v14, %v1778_v51  ;;  %v1844_v34 = vmul.f32 %v1836_v33, %v6075_v35 }
0x12b4   :  { %v1756_v46 = vpop.permute.xlu1 %1755 }
0x12b5   :  { %v1781_v44 = vmul.f32 %v1756_v46, %v1725_v43  ;;  %v1834_v8 = vmax.f32 %v1826_v23, 0.0  ;;  %v5216_v43 = vld [vmem:[%s7354_s1 + $0x120] ss:$8 sps:$4 sm:$0xff]   ;;  %v5217_v23 = vld [vmem:[%s7354_s1 + $0x130] ss:$8 sps:$4 sm:$0xff]  }
0x12b6   :  { %v1746_v52 = vpop.permute.xlu0 %1745  ;;  %v5218_v46 = vld [vmem:[%s7354_s1 + $0x140] ss:$8 sps:$4 sm:$0xff]   ;;  %4704 = vmatprep.mubr.msk.bf16.mxu1 %vm311_vm5, %v5216_v43 }
0x12b7   :  { %v1829_v53 = vadd.f32 %v1804_v62, %v1781_v44  ;;  %v1779_v42 = vmul.f32 %v1746_v52, %v1723_v48  ;;  %v1842_v58 = vmul.f32 %v1834_v8, %v6075_v35  ;;  %4705 = vmatmul.mubr.msk.bf16.vlgmr.msra.gmra.mrb[20].mxu1 %vm311_vm5, %v5217_v23  ;;  %v5219_v44 = vld [vmem:[%s7354_s1 + $0x150] ss:$8 sps:$4 sm:$0xff]  }
0x12b8   :  { %4708 = vmatprep.mubr.msk.bf16.mxu1 %vm311_vm5, %v5218_v46 }
0x12b9   :  { %v1837_v47 = vmax.f32 %v1829_v53, 0.0  ;;  %v1827_v54 = vadd.f32 %v1794_v0, %v1779_v42  ;;  %v1814_v7 = vpop.permute.xlu1 %1813  ;;  %v1729_v0 = vsub.f32 %v6132_v38, %v6211_v63 }
0x12bb   :  { %v1845_v49 = vmul.f32 %v1837_v47, %v6075_v35  ;;  %v1835_v55 = vmax.f32 %v1827_v54, 0.0  ;;  %v1809_v13 = vpop.permute.xlu0 %1808 }
0x12bd   :  { %v1843_v32 = vmul.f32 %v1835_v55, %v6075_v35  ;;  %v4905_v59 = vpack.i.bf16 %v1845_v49, %v1844_v34  ;;  %v1915_v21 = vpack.c.bf16 %v1845_v49, %v1844_v34 }
0x12bf   :  { %4906 = vrot.lane.b32.xlu1 %v4905_v59, %s5424_s24  ;;  %v4900_v56 = vpack.i.bf16 %v1843_v32, %v1842_v58  ;;  %v1914_v57 = vpack.c.bf16 %v1843_v32, %v1842_v58  ;;  %4709 = vmatmul.mubr.msk.bf16.gmra.mrb[24].mxu1 %vm311_vm5, %v5219_v44 }
0x12c0   :  { %v1771_v2 = vpop.permute.xlu1 %1770 }
0x12c1   :  { %4901 = vrot.lane.b32.xlu0 %v4900_v56, %s5424_s24  ;;  %1976 = vmatpush1.bf16.msra.mxu0 %v1914_v57  ;;  %v1784_v41 = vmul.f32 %v1771_v2, %v1728_v19 }
0x12c2   :  { %1977 = vmatprep.subr.bf16.mxu0 %v5425_v6 }
0x12c4   :  { %v1761_v60 = vpop.permute.xlu1 %1760 }
0x12c5   :  { %v1782_v61 = vmul.f32 %v1761_v60, %v1726_v15  ;;  %1978 = vmatpush1.bf16.msra.mxu0 %v1915_v21 }
0x12c6   :  { %1979 = vmatprep.subr.bf16.mxu0 %v5425_v6  ;;  %v1776_v14 = vpop.permute.xlu0 %1775 }
0x12c7   :  { %v1830_v25 = vadd.f32 %v1809_v13, %v1782_v61  ;;  %v1785_v9 = vmul.f32 %v1776_v14, %v1729_v0  ;;  %v5209_v0 = vld [vmem:[%s7354_s1 + $0xf0] ss:$8 sps:$4 sm:$0xff]  }
0x12c8   :  { %v1766_v22 = vpop.permute.xlu1 %1765 }
0x12c9   :  { %v1783_v28 = vmul.f32 %v1766_v22, %v1727_v40  ;;  %v1838_v39 = vmax.f32 %v1830_v25, 0.0 }
0x12cb   :  { %v1831_v12 = vadd.f32 %v1814_v7, %v1783_v28  ;;  %v1846_v62 = vmul.f32 %v1838_v39, %v6075_v35 }
0x12cd   :  { %v1839_v20 = vmax.f32 %v1831_v12, 0.0  ;;  %v1819_v18 = vpop.permute.xlu1 %1818 }
0x12ce   :  { %v1832_v45 = vadd.f32 %v1819_v18, %v1784_v41  ;;  %v5207_v18 = vld [vmem:[%s7354_s1 + $0xf4] ss:$8 sps:$4 sm:$0xff]  }
0x12cf   :  { %v1847_v30 = vmul.f32 %v1839_v20, %v6075_v35  ;;  %v5206_v20 = vld [vmem:[%s7354_s1 + $0xe0] ss:$8 sps:$4 sm:$0xff]  }
0x12d0   :  { %v1840_v37 = vmax.f32 %v1832_v45, 0.0  ;;  %v5210_v45 = vld [vmem:[%s7354_s1 + $0x104] ss:$8 sps:$4 sm:$0xff]  }
0x12d1   :  { %v1824_v3 = vpop.permute.xlu1 %1823  ;;  %v4910_v26 = vpack.i.bf16 %v1847_v30, %v1846_v62  ;;  %v1916_v5 = vpack.c.bf16 %v1847_v30, %v1846_v62  ;;  %v5212_v62 = vld [vmem:[%s7354_s1 + $0x100] ss:$8 sps:$4 sm:$0xff]   ;;  %v5213_v30 = vld [vmem:[%s7354_s1 + $0x114] ss:$8 sps:$4 sm:$0xff]  }
0x12d2   :  { %v1833_v1 = vadd.f32 %v1824_v3, %v1785_v9  ;;  %v1848_v27 = vmul.f32 %v1840_v37, %v6075_v35  ;;  %v5215_v9 = vld [vmem:[%s7354_s1 + $0x110] ss:$8 sps:$4 sm:$0xff]  }
0x12d3   :  { %4911 = vrot.lane.b32.xlu0 %v4910_v26, %s5424_s24  ;;  %1980 = vmatpush1.bf16.msra.mxu0 %v1916_v5 }
0x12d4   :  { %v1841_v11 = vmax.f32 %v1833_v1, 0.0  ;;  %1981 = vmatprep.subr.bf16.mxu0 %v5425_v6 }
0x12d6   :  { %v1849_v38 = vmul.f32 %v1841_v11, %v6075_v35 }
0x12d7   :  { %4921 = vrot.lane.b32.xlu0 %v4900_v56, %s5426_s28 }
0x12d8   :  { %v4915_v63 = vpack.i.bf16 %v1849_v38, %v1848_v27  ;;  %v1917_v51 = vpack.c.bf16 %v1849_v38, %v1848_v27 }
0x12da   :  { %4916 = vrot.lane.b32.xlu1 %v4915_v63, %s5424_s24  ;;  %1982 = vmatpush1.bf16.msra.mxu0 %v1917_v51 }
0x12db   :  { %4931 = vrot.lane.b32.xlu0 %v4910_v26, %s5426_s28  ;;  %1983 = vmatprep.subr.bf16.mxu0 %v5425_v6 }
0x12de   :  { %4926 = vrot.lane.b32.xlu1 %v4905_v59, %s5426_s28 }
0x12e2   :  { %4936 = vrot.lane.b32.xlu1 %v4915_v63, %s5426_s28 }
0x1331   :  { %v4907_v48 = vpop.permute.xlu1 %4906 }
0x1332   :  { %v4909_v42 = vunpack.i.h.bf16 %v4907_v48  ;;  %v4908_v8 = vunpack.i.l.bf16 %v4907_v48  ;;  %v5442_v48 = vmov 1  }
0x1333   :  { %v4902_v52 = vpop.permute.xlu0 %4901  ;;  %4940 = vset.pattern.permute.xlu1 %v5442_v48  ;;  %4943 = vset.pattern.permute.xlu0 %v5442_v48 }
0x1334   :  { %v4904_v33 = vunpack.i.h.bf16 %v4902_v52  ;;  %v4903_v53 = vunpack.i.l.bf16 %v4902_v52  ;;  %v1919_v54 = vpack.c.bf16 %v4909_v42, %v4908_v8 }
0x1336   :  { %v1918_v47 = vpack.c.bf16 %v4904_v33, %v4903_v53 }
0x1338   :  { %1984 = vmatpush1.bf16.msra.mxu0 %v1918_v47 }
0x1339   :  { %1985 = vmatprep.subr.bf16.mxu0 %v5425_v6 }
0x133c   :  { %1986 = vmatpush1.bf16.msra.mxu0 %v1919_v54 }
0x133d   :  { %1987 = vmatprep.subr.bf16.mxu0 %v5425_v6 }
0x1345   :  { %v4912_v7 = vpop.permute.xlu0 %4911 }
0x1346   :  { %v4914_v34 = vunpack.i.h.bf16 %v4912_v7  ;;  %v4913_v49 = vunpack.i.l.bf16 %v4912_v7 }
0x1348   :  { %v1920_v55 = vpack.c.bf16 %v4914_v34, %v4913_v49 }
0x1349   :  { %v4922_v58 = vpop.permute.xlu0 %4921 }
0x134a   :  { %1988 = vmatpush1.bf16.msra.mxu0 %v1920_v55  ;;  %v4924_v56 = vunpack.i.h.bf16 %v4922_v58  ;;  %v4923_v57 = vunpack.i.l.bf16 %v4922_v58 }
0x134b   :  { %1989 = vmatprep.subr.bf16.mxu0 %v5425_v6 }
0x134c   :  { %v4917_v32 = vpop.permute.xlu1 %4916  ;;  %v1922_v60 = vpack.c.bf16 %v4924_v56, %v4923_v57 }
0x134d   :  { %v4919_v59 = vunpack.i.h.bf16 %v4917_v32  ;;  %v4918_v21 = vunpack.i.l.bf16 %v4917_v32  ;;  %v4932_v25 = vpop.permute.xlu0 %4931 }
0x134e   :  { %v4934_v40 = vunpack.i.h.bf16 %v4932_v25  ;;  %v4933_v22 = vunpack.i.l.bf16 %v4932_v25 }
0x134f   :  { %v1921_v2 = vpack.c.bf16 %v4919_v59, %v4918_v21 }
0x1350   :  { %v4927_v15 = vpop.permute.xlu1 %4926  ;;  %v1924_v39 = vpack.c.bf16 %v4934_v40, %v4933_v22 }
0x1351   :  { %1990 = vmatpush1.bf16.msra.mxu0 %v1921_v2  ;;  %v4929_v61 = vunpack.i.h.bf16 %v4927_v15  ;;  %v4928_v13 = vunpack.i.l.bf16 %v4927_v15 }
0x1352   :  { %1991 = vmatprep.subr.bf16.mxu0 %v5425_v6 }
0x1353   :  { %v1923_v28 = vpack.c.bf16 %v4929_v61, %v4928_v13 }
0x1354   :  { %v4937_v19 = vpop.permute.xlu1 %4936 }
0x1355   :  { %1992 = vmatpush1.bf16.msra.mxu0 %v1922_v60  ;;  %v4939_v12 = vunpack.i.h.bf16 %v4937_v19  ;;  %v4938_v41 = vunpack.i.l.bf16 %v4937_v19 }
0x1356   :  { %1993 = vmatprep.subr.bf16.mxu0 %v5425_v6 }
0x1357   :  { %v1925_v14 = vpack.c.bf16 %v4939_v12, %v4938_v41 }
0x1359   :  { %1994 = vmatpush1.bf16.msra.mxu0 %v1923_v28 }
0x135a   :  { %1995 = vmatprep.subr.bf16.mxu0 %v5425_v6 }
0x135d   :  { %1996 = vmatpush1.bf16.msra.mxu0 %v1924_v39 }
0x135e   :  { %1997 = vmatprep.subr.bf16.mxu0 %v5425_v6 }
0x1361   :  { %1998 = vmatpush1.bf16.msra.mxu0 %v1925_v14 }
0x1362   :  { %3138 = vmatprep.subr.bf16.mxu0 %v5425_v6 }
0x1364   :  { %2008 = vmatmul.mubr.bf16.vlgmr.msra.gmra.mrb[12].mxu0 %v5206_v20 }
0x1365   :  { %4320 = vmatprep.mubr.msk.bf16.mxu0 %vm1962_vm8, %v5207_v18 }
0x136c   :  { %2016 = vmatmul.mubr.bf16.gmra.mrb[16].mxu0 %v5209_v0 }
0x136d   :  { %4321 = vmatprep.mubr.msk.bf16.mxu0 %vm1962_vm8, %v5210_v45 }
0x1374   :  { %2024 = vmatmul.mubr.bf16.gmra.mrb[20].mxu0 %v5212_v62 }
0x1375   :  { %4322 = vmatprep.mubr.msk.bf16.mxu0 %vm1962_vm8, %v5213_v30 }
0x137c   :  { %2032 = vmatmul.mubr.bf16.gmra.mrb[24].mxu0 %v5215_v9 }
0x138a   :  { %v6351_v33 = vpop.f32.mrb[20].mxu1 }
0x138b   :  { %v6353_v53 = vpop.f32.mrb[21].mxu1 }
0x138c   :  { %v6355_v42 = vpop.f32.mrb[22].mxu1 }
0x138d   :  { %v6357_v8 = vpop.f32.mrb[23].mxu1 }
0x1392   :  { %v6359_v47 = vpop.f32.mrb[24].mxu1 }
0x1393   :  { %v6361_v54 = vpop.f32.mrb[25].mxu1 }
0x1394   :  { %v6363_v7 = vpop.f32.mrb[26].mxu1 }
0x1395   :  { %v6365_v34 = vpop.f32.mrb[27].mxu1 }
0x1437   :  { %v2009_v3 = vpop.f32.mrb[12].mxu0 }
0x1438   :  { %2048 = vrot.lane.b32.xlu0 %v2009_v3, %s5429_s9  ;;  %v2011_v26 = vpop.f32.mrb[13].mxu0 }
0x1439   :  { %v2012_v5 = vpop.f32.mrb[14].mxu0 }
0x143a   :  { %2050 = vrot.lane.b32.xlu1 %v2012_v5, %s5429_s9  ;;  %v2014_v37 = vpop.f32.mrb[15].mxu0 }
0x143f   :  { %v2017_v1 = vpop.f32.mrb[16].mxu0 }
0x1440   :  { %2052 = vrot.lane.b32.xlu0 %v2017_v1, %s5429_s9  ;;  %v2019_v11 = vpop.f32.mrb[17].mxu0 }
0x1441   :  { %v2020_v27 = vpop.f32.mrb[18].mxu0 }
0x1442   :  { %2054 = vrot.lane.b32.xlu1 %v2020_v27, %s5429_s9  ;;  %v2022_v38 = vpop.f32.mrb[19].mxu0 }
0x1447   :  { %v2025_v63 = vpop.f32.mrb[20].mxu0 }
0x1448   :  { %2056 = vrot.lane.b32.xlu0 %v2025_v63, %s5429_s9  ;;  %v2027_v51 = vpop.f32.mrb[21].mxu0 }
0x1449   :  { %v2028_v29 = vpop.f32.mrb[22].mxu0 }
0x144a   :  { %2058 = vrot.lane.b32.xlu1 %v2028_v29, %s5429_s9  ;;  %v2030_v43 = vpop.f32.mrb[23].mxu0 }
0x144f   :  { %v2033_v23 = vpop.f32.mrb[24].mxu0 }
0x1450   :  { %2060 = vrot.lane.b32.xlu0 %v2033_v23, %s5429_s9  ;;  %v2035_v46 = vpop.f32.mrb[25].mxu0 }
0x1451   :  { %v2036_v44 = vpop.f32.mrb[26].mxu0 }
0x1452   :  { %2062 = vrot.lane.b32.xlu1 %v2036_v44, %s5429_s9  ;;  %v2038_v52 = vpop.f32.mrb[27].mxu0 }
0x14aa   :  { %v2049_v49 = vpop.permute.xlu0 %2048 }
0x14ab   :  { %v2072_v55 = vsel %vm22_vm1, 0.0, %v2049_v49 }
0x14ac   :  { %v2080_v58 = vsel %vm1579_vm6, %v2072_v55, 0.0  ;;  %v2051_v32 = vpop.permute.xlu1 %2050 }
0x14ad   :  { %v6370_v59 = vmul.f32 %v2080_v58, %v6075_v35  ;;  %v2073_v21 = vsel %vm22_vm1, 0.0, %v2051_v32 }
0x14ae   :  { %v2081_v56 = vsel %vm1579_vm6, %v2073_v21, 0.0 }
0x14af   :  { %v6375_v57 = vmul.f32 %v2081_v56, %v6075_v35  ;;  %v2297_v2 = vsel %vm1608_vm7, %v6370_v59, 0.0  ;;  %v2321_v15 = vmul.f32 %v6370_v59, %v6370_v59 }
0x14b0   :  { %2298 = vadd.xlane.f32.xlu0 %v2297_v2 }
0x14b1   :  { %v2300_v60 = vsel %vm1608_vm7, %v6375_v57, 0.0  ;;  %v2329_v25 = vsel %vm1608_vm7, %v2321_v15, 0.0  ;;  %v2322_v40 = vmul.f32 %v6375_v57, %v6375_v57 }
0x14b2   :  { %v2053_v61 = vpop.permute.xlu0 %2052  ;;  %2301 = vadd.xlane.f32.xlu1 %v2300_v60 }
0x14b3   :  { %v2074_v13 = vsel %vm22_vm1, 0.0, %v2053_v61  ;;  %v2332_v14 = vsel %vm1608_vm7, %v2322_v40, 0.0 }
0x14b4   :  { %v2082_v22 = vsel %vm1579_vm6, %v2074_v13, 0.0  ;;  %v2055_v28 = vpop.permute.xlu1 %2054  ;;  %2330 = vadd.xlane.f32.xlu0 %v2329_v25  ;;  %v5443_v25 = vmov 13  }
0x14b5   :  { %v6389_v19 = vmul.f32 %v2082_v22, %v6075_v35  ;;  %v2075_v39 = vsel %vm22_vm1, 0.0, %v2055_v28 }
0x14b6   :  { %v2083_v12 = vsel %vm1579_vm6, %v2075_v39, 0.0 }
0x14b7   :  { %v6394_v41 = vmul.f32 %v2083_v12, %v6075_v35  ;;  %v2303_v20 = vsel %vm1608_vm7, %v6389_v19, 0.0  ;;  %v2323_v18 = vmul.f32 %v6389_v19, %v6389_v19 }
0x14b8   :  { %2333 = vadd.xlane.f32.xlu0 %v2332_v14  ;;  %2304 = vadd.xlane.f32.xlu1 %v2303_v20 }
0x14b9   :  { %v2306_v62 = vsel %vm1608_vm7, %v6394_v41, 0.0  ;;  %v2335_v30 = vsel %vm1608_vm7, %v2323_v18, 0.0  ;;  %v2324_v9 = vmul.f32 %v6394_v41, %v6394_v41 }
0x14ba   :  { %v2057_v0 = vpop.permute.xlu0 %2056 }
0x14bb   :  { %v2076_v45 = vsel %vm22_vm1, 0.0, %v2057_v0  ;;  %v2338_v27 = vsel %vm1608_vm7, %v2324_v9, 0.0 }
0x14bc   :  { %v2084_v3 = vsel %vm1579_vm6, %v2076_v45, 0.0  ;;  %v2059_v26 = vpop.permute.xlu1 %2058  ;;  %2307 = vadd.xlane.f32.xlu0 %v2306_v62  ;;  %2336 = vadd.xlane.f32.xlu1 %v2335_v30 }
0x14bd   :  { %v6409_v5 = vmul.f32 %v2084_v3, %v6075_v35  ;;  %v2077_v37 = vsel %vm22_vm1, 0.0, %v2059_v26 }
0x14be   :  { %v2085_v1 = vsel %vm1579_vm6, %v2077_v37, 0.0 }
0x14bf   :  { %v6414_v11 = vmul.f32 %v2085_v1, %v6075_v35  ;;  %v2309_v38 = vsel %vm1608_vm7, %v6409_v5, 0.0  ;;  %v2325_v63 = vmul.f32 %v6409_v5, %v6409_v5 }
0x14c0   :  { %2339 = vadd.xlane.f32.xlu0 %v2338_v27  ;;  %2310 = vadd.xlane.f32.xlu1 %v2309_v38 }
0x14c1   :  { %v2312_v43 = vsel %vm1608_vm7, %v6414_v11, 0.0  ;;  %v2341_v23 = vsel %vm1608_vm7, %v2325_v63, 0.0  ;;  %v2326_v46 = vmul.f32 %v6414_v11, %v6414_v11 }
0x14c2   :  { %v2061_v51 = vpop.permute.xlu0 %2060 }
0x14c3   :  { %v2078_v29 = vsel %vm22_vm1, 0.0, %v2061_v51  ;;  %v2344_v21 = vsel %vm1608_vm7, %v2326_v46, 0.0 }
0x14c4   :  { %v2086_v44 = vsel %vm1579_vm6, %v2078_v29, 0.0  ;;  %2313 = vadd.xlane.f32.xlu0 %v2312_v43  ;;  %2342 = vadd.xlane.f32.xlu1 %v2341_v23  ;;  %v2063_v52 = vpop.permute.xlu1 %2062 }
0x14c5   :  { %v6429_v49 = vmul.f32 %v2086_v44, %v6075_v35  ;;  %v2079_v55 = vsel %vm22_vm1, 0.0, %v2063_v52 }
0x14c6   :  { %v2087_v58 = vsel %vm1579_vm6, %v2079_v55, 0.0 }
0x14c7   :  { %v6434_v32 = vmul.f32 %v2087_v58, %v6075_v35  ;;  %v2315_v56 = vsel %vm1608_vm7, %v6429_v49, 0.0  ;;  %v2327_v2 = vmul.f32 %v6429_v49, %v6429_v49 }
0x14c8   :  { %2345 = vadd.xlane.f32.xlu0 %v2344_v21  ;;  %2316 = vadd.xlane.f32.xlu1 %v2315_v56 }
0x14c9   :  { %v2347_v15 = vsel %vm1608_vm7, %v2327_v2, 0.0  ;;  %v2318_v60 = vsel %vm1608_vm7, %v6434_v32, 0.0  ;;  %v2328_v61 = vmul.f32 %v6434_v32, %v6434_v32 }
0x14cb   :  { %v2350_v13 = vsel %vm1608_vm7, %v2328_v61, 0.0 }
0x14cc   :  { %2348 = vadd.xlane.f32.xlu1 %v2347_v15  ;;  %2319 = vadd.xlane.f32.xlu0 %v2318_v60 }
0x14d0   :  { %2351 = vadd.xlane.f32.xlu0 %v2350_v13 }
0x14dd   :  { %2258 = vperm.xlu1 %4940, %v6161_v17  }
0x14e1   :  { %2262 = vperm.xlu1 %4940, %v6168_v50  }
0x14e5   :  { %4941 = vset.pattern.permute.xlu1 %v5443_v25 }
0x14e6   :  { %2474 = vperm.xlu1 %4941, %v6161_v17   ;;  %2211 = vrot.lane.b32.xlu0 %v6357_v8, %s5429_s9  ;;  %v5444_v8 = vmov 12  }
0x14ea   :  { %2478 = vperm.xlu1 %4941, %v6168_v50   ;;  %2270 = vperm.xlu0 %4943, %v6180_v31  }
0x14ee   :  { %2209 = vrot.lane.b32.xlu1 %v6353_v53, %s5429_s9  ;;  %2215 = vrot.lane.b32.xlu0 %v6355_v42, %s5429_s9 }
0x14ef   :  { %4942 = vset.pattern.permute.xlu1 %v5442_v48 }
0x14f2   :  { %2266 = vperm.xlu1 %4942, %v6174_v4   ;;  %2278 = vperm.xlu0 %4943, %v6223_v10  }
0x14f6   :  { %4944 = vset.pattern.permute.xlu1 %v5443_v25  ;;  %2219 = vrot.lane.b32.xlu0 %v6365_v34, %s5429_s9 }
0x14f7   :  { %2482 = vperm.xlu1 %4944, %v6174_v4   ;;  %4949 = vset.pattern.permute.xlu0 %v5444_v8 }
0x14fb   :  { %2486 = vperm.xlu1 %4944, %v6180_v31  }
0x14ff   :  { %2213 = vrot.lane.b32.xlu1 %v6351_v33, %s5429_s9 }
0x1500   :  { %4945 = vset.pattern.permute.xlu1 %v5442_v48 }
0x1503   :  { %2274 = vperm.xlu1 %4945, %v6231_v16  }
0x1507   :  { %4946 = vset.pattern.permute.xlu1 %v5443_v25 }
0x1508   :  { %2490 = vperm.xlu1 %4946, %v6231_v16  }
0x150c   :  { %2494 = vperm.xlu1 %4946, %v6223_v10  }
0x1510   :  { %2217 = vrot.lane.b32.xlu1 %v6361_v54, %s5429_s9 }
0x1511   :  { %4947 = vset.pattern.permute.xlu1 %v5442_v48 }
0x1514   :  { %2282 = vperm.xlu1 %4947, %v6236_v36  }
0x1518   :  { %4948 = vset.pattern.permute.xlu1 %v5444_v8 }
0x153d   :  { %v2299_v33 = vpop.xlane.xlu0 %2298 }
0x153e   :  { %v6480_v53 = vmul.f32 0.0625, %v2299_v33 }
0x153f   :  { %v2302_v42 = vpop.xlane.xlu1 %2301 }
0x1540   :  { %v2369_v40 = vmul.f32 %v6480_v53, %v6480_v53  ;;  %v6484_v22 = vmul.f32 0.0625, %v2302_v42 }
0x1541   :  { %v2331_v34 = vpop.xlane.xlu0 %2330 }
0x1542   :  { %v2361_v28 = vmul.f32 0.0625, %v2331_v34  ;;  %v2370_v14 = vmul.f32 %v6484_v22, %v6484_v22 }
0x1544   :  { %v2377_v39 = vsub.f32 %v2361_v28, %v2369_v40 }
0x1545   :  { %v2334_v12 = vpop.xlane.xlu0 %2333  ;;  %v2305_v54 = vpop.xlane.xlu1 %2304 }
0x1546   :  { %v2385_v20 = vmax.f32 %v2377_v39, 0.0  ;;  %v2362_v18 = vmul.f32 0.0625, %v2334_v12  ;;  %v6488_v0 = vmul.f32 0.0625, %v2305_v54 }
0x1548   :  { %v2393_v45 = vadd.f32 1e-05, %v2385_v20  ;;  %v2378_v62 = vsub.f32 %v2362_v18, %v2370_v14  ;;  %v2371_v30 = vmul.f32 %v6488_v0, %v6488_v0 }
0x1549   :  { %v2308_v9 = vpop.xlane.xlu0 %2307  ;;  %v2337_v3 = vpop.xlane.xlu1 %2336 }
0x154a   :  { %5340 = vrsqrt.f32 %v2393_v45  ;;  %v2386_v26 = vmax.f32 %v2378_v62, 0.0  ;;  %v6492_v37 = vmul.f32 0.0625, %v2308_v9  ;;  %v2363_v1 = vmul.f32 0.0625, %v2337_v3 }
0x154c   :  { %v2394_v27 = vadd.f32 1e-05, %v2386_v26  ;;  %v2379_v38 = vsub.f32 %v2363_v1, %v2371_v30  ;;  %v2372_v63 = vmul.f32 %v6492_v37, %v6492_v37 }
0x154d   :  { %v2340_v51 = vpop.xlane.xlu0 %2339  ;;  %v2311_v29 = vpop.xlane.xlu1 %2310 }
0x154e   :  { %5342 = vrsqrt.f32 %v2394_v27  ;;  %v2387_v43 = vmax.f32 %v2379_v38, 0.0  ;;  %v2364_v23 = vmul.f32 0.0625, %v2340_v51  ;;  %v6496_v46 = vmul.f32 0.0625, %v2311_v29 }
0x1550   :  { %v2395_v44 = vadd.f32 1e-05, %v2387_v43  ;;  %v2380_v52 = vsub.f32 %v2364_v23, %v2372_v63  ;;  %v2373_v55 = vmul.f32 %v6496_v46, %v6496_v46 }
0x1551   :  { %v2314_v58 = vpop.xlane.xlu0 %2313  ;;  %v2343_v21 = vpop.xlane.xlu1 %2342 }
0x1552   :  { %5344 = vrsqrt.f32 %v2395_v44  ;;  %v2388_v56 = vmax.f32 %v2380_v52, 0.0  ;;  %v6500_v2 = vmul.f32 0.0625, %v2314_v58  ;;  %v2365_v15 = vmul.f32 0.0625, %v2343_v21 }
0x1554   :  { %v5341_v60 = vpop.eup %5340  ;;  %v2396_v61 = vadd.f32 1e-05, %v2388_v56  ;;  %v2381_v13 = vsub.f32 %v2365_v15, %v2373_v55  ;;  %v2374_v33 = vmul.f32 %v6500_v2, %v6500_v2 }
0x1555   :  { %v2346_v42 = vpop.xlane.xlu0 %2345  ;;  %v2317_v34 = vpop.xlane.xlu1 %2316  ;;  %v2417_v40 = vmul.f32 %v5341_v60, %v6161_v17 }
0x1556   :  { %5346 = vrsqrt.f32 %v2396_v61  ;;  %v2389_v28 = vmax.f32 %v2381_v13, 0.0  ;;  %v2366_v39 = vmul.f32 0.0625, %v2346_v42  ;;  %v6505_v12 = vmul.f32 0.0625, %v2317_v34 }
0x1557   :  { %2427 = vperm.xlu1 %4948, %v2417_v40  }
0x1558   :  { %v5343_v54 = vpop.eup %5342  ;;  %v2397_v14 = vadd.f32 1e-05, %v2389_v28  ;;  %v2382_v20 = vsub.f32 %v2366_v39, %v2374_v33  ;;  %v2375_v18 = vmul.f32 %v6505_v12, %v6505_v12 }
0x1559   :  { %v2320_v45 = vpop.xlane.xlu0 %2319  ;;  %v2349_v62 = vpop.xlane.xlu1 %2348  ;;  %v2418_v30 = vmul.f32 %v5343_v54, %v6168_v50 }
0x155a   :  { %5348 = vrsqrt.f32 %v2397_v14  ;;  %v2390_v9 = vmax.f32 %v2382_v20, 0.0  ;;  %v6510_v3 = vmul.f32 0.0625, %v2320_v45  ;;  %v2367_v17 = vmul.f32 0.0625, %v2349_v62 }
0x155b   :  { %4951 = vset.pattern.permute.xlu1 %v5443_v25  ;;  %2432 = vperm.xlu0 %4949, %v2418_v30  }
0x155c   :  { %v5345_v26 = vpop.eup %5344  ;;  %v2398_v1 = vadd.f32 1e-05, %v2390_v9  ;;  %v2383_v27 = vsub.f32 %v2367_v17, %v2375_v18  ;;  %2498 = vperm.xlu1 %4951, %v6236_v36   ;;  %v2376_v63 = vmul.f32 %v6510_v3, %v6510_v3  ;;  %v2409_v9 = vsub.f32 %v6370_v59, %v6480_v53 }
0x155d   :  { %v2352_v38 = vpop.xlane.xlu0 %2351  ;;  %v2419_v29 = vmul.f32 %v5345_v26, %v6174_v4 }
0x155e   :  { %5350 = vrsqrt.f32 %v2398_v1  ;;  %v2391_v51 = vmax.f32 %v2383_v27, 0.0  ;;  %v2368_v50 = vmul.f32 0.0625, %v2352_v38  ;;  %v2410_v38 = vsub.f32 %v6375_v57, %v6484_v22 }
0x155f   :  { %4950 = vset.pattern.permute.xlu0 %v5442_v48  ;;  %v2411_v57 = vsub.f32 %v6389_v19, %v6488_v0  ;;  %v2412_v19 = vsub.f32 %v6394_v41, %v6492_v37 }
0x1560   :  { %v5347_v43 = vpop.eup %5346  ;;  %v2399_v23 = vadd.f32 1e-05, %v2391_v51  ;;  %v2384_v44 = vsub.f32 %v2368_v50, %v2376_v63  ;;  %4952 = vset.pattern.permute.xlu1 %v5444_v8  ;;  %2286 = vperm.xlu0 %4950, %v6245_v24  }
0x1561   :  { %2437 = vperm.xlu1 %4952, %v2419_v29   ;;  %v2420_v55 = vmul.f32 %v5347_v43, %v6180_v31  ;;  %v2212_v39 = vpop.permute.xlu0 %2211 }
0x1562   :  { %5352 = vrsqrt.f32 %v2399_v23  ;;  %v2392_v52 = vmax.f32 %v2384_v44, 0.0  ;;  %v2234_v62 = vsel %vm22_vm1, 0.0, %v2212_v39 }
0x1563   :  { %v2242_v17 = vsel %vm1579_vm6, %v2234_v62, 0.0 }
0x1564   :  { %v5349_v58 = vpop.eup %5348  ;;  %v2400_v21 = vadd.f32 1e-05, %v2392_v52  ;;  %4953 = vset.pattern.permute.xlu0 %v5444_v8  ;;  %v2250_v63 = vmul.f32 %v2242_v17, %v6075_v35 }
0x1565   :  { %2442 = vperm.xlu1 %4952, %v2420_v55   ;;  %v2421_v4 = vmul.f32 %v5349_v58, %v6231_v16 }
0x1566   :  { %5354 = vrsqrt.f32 %v2400_v21 }
0x1567   :  { %2447 = vperm.xlu0 %4953, %v2421_v4  }
0x1568   :  { %v5351_v48 = vpop.eup %5350 }
0x1569   :  { %v2422_v56 = vmul.f32 %v5351_v48, %v6223_v10  ;;  %v2259_v10 = vpop.permute.xlu1 %2258 }
0x156b   :  { %2452 = vperm.xlu1 %4952, %v2422_v56  }
0x156c   :  { %v5353_v15 = vpop.eup %5352 }
0x156d   :  { %v2423_v60 = vmul.f32 %v5353_v15, %v6236_v36  ;;  %v2263_v16 = vpop.permute.xlu1 %2262 }
0x156e   :  { %v2290_v55 = vadd.f32 %v2263_v16, %v2250_v63 }
0x156f   :  { %2457 = vperm.xlu0 %4953, %v2423_v60  }
0x1570   :  { %v5355_v61 = vpop.eup %5354 }
0x1571   :  { %v2424_v31 = vmul.f32 %v5355_v61, %v6245_v24  ;;  %v2475_v8 = vpop.permute.xlu1 %2474 }
0x1573   :  { %2462 = vperm.xlu1 %4952, %v2424_v31   ;;  %2221 = vrot.lane.b32.xlu0 %v6359_v47, %s5429_s9 }
0x1575   :  { %v2479_v13 = vpop.permute.xlu1 %2478 }
0x1577   :  { %4954 = vset.pattern.permute.xlu1 %v5443_v25  ;;  %v2271_v25 = vpop.permute.xlu0 %2270 }
0x1578   :  { %2502 = vperm.xlu1 %4954, %v6245_v24  }
0x1579   :  { %v2210_v36 = vpop.permute.xlu1 %2209 }
0x157b   :  { %v2216_v24 = vpop.permute.xlu0 %2215 }
0x157c   :  { %2223 = vrot.lane.b32.xlu1 %v6363_v7, %s5429_s9  ;;  %v2233_v7 = vsel %vm22_vm1, 0.0, %v2210_v36  ;;  %v2236_v59 = vsel %vm22_vm1, 0.0, %v2216_v24 }
0x157d   :  { %v2267_v33 = vpop.permute.xlu1 %2266  ;;  %v2241_v45 = vsel %vm1579_vm6, %v2233_v7, 0.0  ;;  %v2244_v22 = vsel %vm1579_vm6, %v2236_v59, 0.0  ;;  %v2413_v7 = vsub.f32 %v6409_v5, %v6496_v46  ;;  %v2414_v5 = vsub.f32 %v6414_v11, %v6500_v2 }
0x157e   :  { %v2249_v30 = vmul.f32 %v2241_v45, %v6075_v35 }
0x157f   :  { %v6539_v20 = vpop.permute.xlu0 %2278 }
0x1580   :  { %v2289_v51 = vadd.f32 %v2259_v10, %v2249_v30 }
0x1581   :  { %v2483_v42 = vpop.permute.xlu1 %2482 }
0x1583   :  { %v2220_v26 = vpop.permute.xlu0 %2219 }
0x1584   :  { %v2238_v61 = vsel %vm22_vm1, 0.0, %v2220_v26 }
0x1585   :  { %v2487_v34 = vpop.permute.xlu1 %2486  ;;  %v2246_v39 = vsel %vm1579_vm6, %v2238_v61, 0.0 }
0x1586   :  { %v2254_v17 = vmul.f32 %v2246_v39, %v6075_v35 }
0x1589   :  { %v2214_v40 = vpop.permute.xlu1 %2213 }
0x158a   :  { %v2235_v50 = vsel %vm22_vm1, 0.0, %v2214_v40 }
0x158b   :  { %v2243_v53 = vsel %vm1579_vm6, %v2235_v50, 0.0 }
0x158c   :  { %v2251_v4 = vmul.f32 %v2243_v53, %v6075_v35 }
0x158d   :  { %v6532_v28 = vpop.permute.xlu1 %2274 }
0x158e   :  { %v2291_v0 = vadd.f32 %v2267_v33, %v2251_v4 }
0x1591   :  { %v6534_v47 = vpop.permute.xlu1 %2490 }
0x1595   :  { %v6536_v54 = vpop.permute.xlu1 %2494 }
0x1599   :  { %v2218_v14 = vpop.permute.xlu1 %2217 }
0x159a   :  { %v2237_v21 = vsel %vm22_vm1, 0.0, %v2218_v14 }
0x159b   :  { %v2245_v31 = vsel %vm1579_vm6, %v2237_v21, 0.0 }
0x159c   :  { %v2253_v24 = vmul.f32 %v2245_v31, %v6075_v35 }
0x159d   :  { %v6541_v18 = vpop.permute.xlu1 %2282 }
0x159e   :  { %v2293_v46 = vadd.f32 %v6532_v28, %v2253_v24 }
0x15d6   :  { %v2428_v1 = vpop.permute.xlu1 %2427 }
0x15d7   :  { %v2465_v27 = vmul.f32 %v2428_v1, %v2409_v9 }
0x15d9   :  { %v2505_v29 = vadd.f32 %v2475_v8, %v2465_v27  ;;  %v2252_v8 = vmul.f32 %v2244_v22, %v6075_v35  ;;  %v2415_v22 = vsub.f32 %v6429_v49, %v6505_v12 }
0x15da   :  { %v2433_v43 = vpop.permute.xlu0 %2432 }
0x15db   :  { %v2513_v23 = vadd.f32 %v2505_v29, %v2289_v51  ;;  %v2466_v44 = vmul.f32 %v2433_v43, %v2410_v38  ;;  %v6553_v52 = vpop.permute.xlu1 %2498  ;;  %v2292_v30 = vadd.f32 %v2271_v25, %v2252_v8  ;;  %v2294_v51 = vadd.f32 %v6539_v20, %v2254_v17 }
0x15dd   :  { %v2506_v58 = vadd.f32 %v2479_v13, %v2466_v44  ;;  %v2521_v48 = vmax.f32 %v2513_v23, 0.0 }
0x15df   :  { %v2514_v56 = vadd.f32 %v2506_v58, %v2290_v55  ;;  %v6562_v60 = vpop.permute.xlu0 %2286  ;;  %v6570_v13 = vmul.f32 %v2521_v48, %v6075_v35 }
0x15e0   :  { %v2438_v15 = vpop.permute.xlu1 %2437 }
0x15e1   :  { %v2522_v10 = vmax.f32 %v2514_v56, 0.0  ;;  %v2467_v16 = vmul.f32 %v2438_v15, %v2411_v57 }
0x15e3   :  { %v6573_v36 = vmul.f32 %v2522_v10, %v6075_v35  ;;  %v2507_v40 = vadd.f32 %v2483_v42, %v2467_v16  ;;  %v2416_v10 = vsub.f32 %v6434_v32, %v6510_v3 }
0x15e4   :  { %v2443_v14 = vpop.permute.xlu1 %2442 }
0x15e5   :  { %v2515_v45 = vadd.f32 %v2507_v40, %v2291_v0  ;;  %v2468_v62 = vmul.f32 %v2443_v14, %v2412_v19  ;;  %v4955_v41 = vpack.i.bf16 %v6573_v36, %v6570_v13  ;;  %v2601_v37 = vpack.c.bf16 %v6573_v36, %v6570_v13 }
0x15e6   :  { %v2448_v33 = vpop.permute.xlu0 %2447 }
0x15e7   :  { %v2508_v9 = vadd.f32 %v2487_v34, %v2468_v62  ;;  %v2469_v42 = vmul.f32 %v2448_v33, %v2413_v7  ;;  %4956 = vrot.lane.b32.xlu0 %v4955_v41, %s5424_s24  ;;  %2662 = vmatpush1.bf16.msra.mxu1 %v2601_v37  ;;  %v2523_v26 = vmax.f32 %v2515_v45, 0.0 }
0x15e8   :  { %2663 = vmatprep.subr.bf16.mxu1 %v5425_v6 }
0x15e9   :  { %v2516_v1 = vadd.f32 %v2508_v9, %v2292_v30  ;;  %v2509_v27 = vadd.f32 %v6534_v47, %v2469_v42  ;;  %v6592_v50 = vmul.f32 %v2523_v26, %v6075_v35 }
0x15ea   :  { %v2453_v38 = vpop.permute.xlu1 %2452 }
0x15eb   :  { %v2524_v25 = vmax.f32 %v2516_v1, 0.0  ;;  %v2517_v34 = vadd.f32 %v2509_v27, %v2293_v46  ;;  %v2470_v63 = vmul.f32 %v2453_v38, %v2414_v5 }
0x15ed   :  { %v6595_v29 = vmul.f32 %v2524_v25, %v6075_v35  ;;  %v2510_v11 = vadd.f32 %v6536_v54, %v2470_v63  ;;  %v2525_v28 = vmax.f32 %v2517_v34, 0.0 }
0x15ee   :  { %v2458_v2 = vpop.permute.xlu0 %2457 }
0x15ef   :  { %v2518_v43 = vadd.f32 %v2510_v11, %v2294_v51  ;;  %v4960_v47 = vpack.i.bf16 %v6595_v29, %v6592_v50  ;;  %v2602_v23 = vpack.c.bf16 %v6595_v29, %v6592_v50  ;;  %v6604_v53 = vmul.f32 %v2525_v28, %v6075_v35 }
0x15f0   :  { %v2471_v56 = vmul.f32 %v2458_v2, %v2415_v22  ;;  %v5223_v22 = vld [vmem:[%s7354_s1 + $0x174] ss:$8 sps:$4 sm:$0xff]  }
0x15f1   :  { %v2526_v44 = vmax.f32 %v2518_v43, 0.0  ;;  %4961 = vrot.lane.b32.xlu1 %v4960_v47, %s5424_s24  ;;  %2664 = vmatpush1.bf16.msra.mxu1 %v2602_v23 }
0x15f2   :  { %v2463_v20 = vpop.permute.xlu1 %2462  ;;  %v2222_v59 = vpop.permute.xlu0 %2221  ;;  %2665 = vmatprep.subr.bf16.mxu1 %v5425_v6  ;;  %v2511_v31 = vadd.f32 %v6553_v52, %v2471_v56  ;;  %v5228_v56 = vld [vmem:[%s7354_s1 + $0x180] ss:$8 sps:$4 sm:$0xff]  }
0x15f3   :  { %v6607_v54 = vmul.f32 %v2526_v44, %v6075_v35  ;;  %v2239_v55 = vsel %vm22_vm1, 0.0, %v2222_v59  ;;  %v2472_v16 = vmul.f32 %v2463_v20, %v2416_v10 }
0x15f4   :  { %v2247_v58 = vsel %vm1579_vm6, %v2239_v55, 0.0 }
0x15f5   :  { %v4965_v21 = vpack.i.bf16 %v6607_v54, %v6604_v53  ;;  %v2603_v57 = vpack.c.bf16 %v6607_v54, %v6604_v53  ;;  %v2255_v4 = vmul.f32 %v2247_v58, %v6075_v35 }
0x15f7   :  { %v2503_v48 = vpop.permute.xlu1 %2502  ;;  %4966 = vrot.lane.b32.xlu0 %v4965_v21, %s5424_s24  ;;  %2666 = vmatpush1.bf16.msra.mxu1 %v2603_v57  ;;  %v2295_v15 = vadd.f32 %v6541_v18, %v2255_v4  ;;  %v5220_v57 = vld [vmem:[%s7354_s1 + $0x160] ss:$8 sps:$4 sm:$0xff]   ;;  %v5225_v4 = vld [vmem:[%s7354_s1 + $0x170] ss:$8 sps:$4 sm:$0xff]  }
0x15f8   :  { %2667 = vmatprep.subr.bf16.mxu1 %v5425_v6  ;;  %v2512_v0 = vadd.f32 %v2503_v48, %v2472_v16  ;;  %v5226_v48 = vld [vmem:[%s7354_s1 + $0x184] ss:$8 sps:$4 sm:$0xff]  }
0x15f9   :  { %v2519_v8 = vadd.f32 %v2511_v31, %v2295_v15  ;;  %v5229_v15 = vld [vmem:[%s7354_s1 + $0x194] ss:$8 sps:$4 sm:$0xff]  }
0x15fb   :  { %v2224_v61 = vpop.permute.xlu1 %2223  ;;  %4976 = vrot.lane.b32.xlu0 %v4955_v41, %s5426_s28  ;;  %v2527_v40 = vmax.f32 %v2519_v8, 0.0 }
0x15fc   :  { %v2240_v49 = vsel %vm22_vm1, 0.0, %v2224_v61  ;;  %v5231_v61 = vld [vmem:[%s7354_s1 + $0x190] ss:$8 sps:$4 sm:$0xff]  }
0x15fd   :  { %v2248_v12 = vsel %vm1579_vm6, %v2240_v49, 0.0  ;;  %v6632_v52 = vmul.f32 %v2527_v40, %v6075_v35 }
0x15fe   :  { %v2256_v19 = vmul.f32 %v2248_v12, %v6075_v35 }
0x15ff   :  { %4986 = vrot.lane.b32.xlu0 %v4965_v21, %s5426_s28 }
0x1600   :  { %v2296_v18 = vadd.f32 %v6562_v60, %v2256_v19  ;;  %v5222_v60 = vld [vmem:[%s7354_s1 + $0x164] ss:$8 sps:$4 sm:$0xff]  }
0x1601   :  { %4339 = vmatprep.mubr.msk.bf16.mxu1 %vm1962_vm8, %v5222_v60 }
0x1602   :  { %v2520_v39 = vadd.f32 %v2512_v0, %v2296_v18 }
0x1604   :  { %v2528_v24 = vmax.f32 %v2520_v39, 0.0 }
0x1606   :  { %v6635_v32 = vmul.f32 %v2528_v24, %v6075_v35 }
0x1608   :  { %v4970_v3 = vpack.i.bf16 %v6635_v32, %v6632_v52  ;;  %v2604_v14 = vpack.c.bf16 %v6635_v32, %v6632_v52 }
0x160a   :  { %4971 = vrot.lane.b32.xlu1 %v4970_v3, %s5424_s24  ;;  %2668 = vmatpush1.bf16.msra.mxu1 %v2604_v14 }
0x160b   :  { %2669 = vmatprep.subr.bf16.mxu1 %v5425_v6 }
0x160e   :  { %4981 = vrot.lane.b32.xlu1 %v4960_v47, %s5426_s28 }
0x1612   :  { %4991 = vrot.lane.b32.xlu1 %v4970_v3, %s5426_s28 }
0x1659   :  { %v4957_v7 = vpop.permute.xlu0 %4956 }
0x165a   :  { %v4959_v45 = vunpack.i.h.bf16 %v4957_v7  ;;  %v4958_v62 = vunpack.i.l.bf16 %v4957_v7  ;;  %v5445_v7 = vmov 15  }
0x165b   :  { %4995 = vset.pattern.permute.xlu1 %v5445_v7 }
0x165c   :  { %v2605_v41 = vpack.c.bf16 %v4959_v45, %v4958_v62 }
0x165e   :  { %2670 = vmatpush1.bf16.msra.mxu1 %v2605_v41 }
0x165f   :  { %2671 = vmatprep.subr.bf16.mxu1 %v5425_v6 }
0x1663   :  { %v4962_v37 = vpop.permute.xlu1 %4961 }
0x1664   :  { %v4964_v33 = vunpack.i.h.bf16 %v4962_v37  ;;  %v4963_v30 = vunpack.i.l.bf16 %v4962_v37 }
0x1666   :  { %v2606_v9 = vpack.c.bf16 %v4964_v33, %v4963_v30 }
0x1668   :  { %2672 = vmatpush1.bf16.msra.mxu1 %v2606_v9 }
0x1669   :  { %v4967_v42 = vpop.permute.xlu0 %4966  ;;  %2673 = vmatprep.subr.bf16.mxu1 %v5425_v6 }
0x166a   :  { %v4969_v17 = vunpack.i.h.bf16 %v4967_v42  ;;  %v4968_v5 = vunpack.i.l.bf16 %v4967_v42 }
0x166c   :  { %v2607_v46 = vpack.c.bf16 %v4969_v17, %v4968_v5 }
0x166d   :  { %v4977_v26 = vpop.permute.xlu0 %4976 }
0x166e   :  { %2674 = vmatpush1.bf16.msra.mxu1 %v2607_v46  ;;  %v4979_v25 = vunpack.i.h.bf16 %v4977_v26  ;;  %v4978_v34 = vunpack.i.l.bf16 %v4977_v26 }
0x166f   :  { %2675 = vmatprep.subr.bf16.mxu1 %v5425_v6 }
0x1670   :  { %v2609_v11 = vpack.c.bf16 %v4979_v25, %v4978_v34 }
0x1671   :  { %v4987_v43 = vpop.permute.xlu0 %4986 }
0x1672   :  { %v4989_v47 = vunpack.i.h.bf16 %v4987_v43  ;;  %v4988_v23 = vunpack.i.l.bf16 %v4987_v43 }
0x1674   :  { %v2611_v59 = vpack.c.bf16 %v4989_v47, %v4988_v23 }
0x167c   :  { %v4972_v1 = vpop.permute.xlu1 %4971 }
0x167d   :  { %v4974_v27 = vunpack.i.h.bf16 %v4972_v1  ;;  %v4973_v38 = vunpack.i.l.bf16 %v4972_v1 }
0x167f   :  { %v2608_v63 = vpack.c.bf16 %v4974_v27, %v4973_v38 }
0x1680   :  { %v4982_v51 = vpop.permute.xlu1 %4981 }
0x1681   :  { %2676 = vmatpush1.bf16.msra.mxu1 %v2608_v63  ;;  %v4984_v2 = vunpack.i.h.bf16 %v4982_v51  ;;  %v4983_v28 = vunpack.i.l.bf16 %v4982_v51 }
0x1682   :  { %2677 = vmatprep.subr.bf16.mxu1 %v5425_v6 }
0x1683   :  { %v2610_v44 = vpack.c.bf16 %v4984_v2, %v4983_v28 }
0x1684   :  { %v4992_v20 = vpop.permute.xlu1 %4991 }
0x1685   :  { %2678 = vmatpush1.bf16.msra.mxu1 %v2609_v11  ;;  %v4994_v55 = vunpack.i.h.bf16 %v4992_v20  ;;  %v4993_v58 = vunpack.i.l.bf16 %v4992_v20 }
0x1686   :  { %2679 = vmatprep.subr.bf16.mxu1 %v5425_v6 }
0x1687   :  { %v2612_v21 = vpack.c.bf16 %v4994_v55, %v4993_v58 }
0x1689   :  { %2680 = vmatpush1.bf16.msra.mxu1 %v2610_v44 }
0x168a   :  { %2681 = vmatprep.subr.bf16.mxu1 %v5425_v6 }
0x168d   :  { %2682 = vmatpush1.bf16.msra.mxu1 %v2611_v59 }
0x168e   :  { %2683 = vmatprep.subr.bf16.mxu1 %v5425_v6 }
0x1691   :  { %2684 = vmatpush1.bf16.msra.mxu1 %v2612_v21 }
0x1694   :  { %2694 = vmatmul.mubr.bf16.vlgmr.msra.gmra.mrb[28].mxu1 %v5220_v57 }
0x1695   :  { %4340 = vmatprep.mubr.msk.bf16.mxu1 %vm1962_vm8, %v5223_v22 }
0x169c   :  { %2702 = vmatmul.mubr.bf16.gmra.mrb[32].mxu1 %v5225_v4 }
0x169d   :  { %4341 = vmatprep.mubr.msk.bf16.mxu1 %vm1962_vm8, %v5226_v48 }
0x16a4   :  { %2710 = vmatmul.mubr.bf16.gmra.mrb[36].mxu1 %v5228_v56 }
0x16a5   :  { %4342 = vmatprep.mubr.msk.bf16.mxu1 %vm1962_vm8, %v5229_v15 }
0x16ac   :  { %2718 = vmatmul.mubr.bf16.gmra.mrb[40].mxu1 %v5231_v61 }
0x1767   :  { %v2695_v31 = vpop.f32.mrb[28].mxu1 }
0x1768   :  { %2734 = vrot.lane.b32.xlu0 %v2695_v31, %s5429_s9  ;;  %v2697_v10 = vpop.f32.mrb[29].mxu1 }
0x1769   :  { %v2698_v49 = vpop.f32.mrb[30].mxu1 }
0x176a   :  { %2736 = vrot.lane.b32.xlu1 %v2698_v49, %s5429_s9  ;;  %v2700_v12 = vpop.f32.mrb[31].mxu1 }
0x176f   :  { %v2703_v16 = vpop.f32.mrb[32].mxu1 }
0x1770   :  { %2738 = vrot.lane.b32.xlu0 %v2703_v16, %s5429_s9  ;;  %v2705_v8 = vpop.f32.mrb[33].mxu1 }
0x1771   :  { %v2706_v19 = vpop.f32.mrb[34].mxu1 }
0x1772   :  { %2740 = vrot.lane.b32.xlu1 %v2706_v19, %s5429_s9  ;;  %v2708_v0 = vpop.f32.mrb[35].mxu1 }
0x1777   :  { %v2711_v18 = vpop.f32.mrb[36].mxu1 }
0x1778   :  { %2742 = vrot.lane.b32.xlu0 %v2711_v18, %s5429_s9  ;;  %v2713_v40 = vpop.f32.mrb[37].mxu1 }
0x1779   :  { %v2714_v39 = vpop.f32.mrb[38].mxu1 }
0x177a   :  { %2744 = vrot.lane.b32.xlu1 %v2714_v39, %s5429_s9  ;;  %v2716_v24 = vpop.f32.mrb[39].mxu1 }
0x177f   :  { %v2719_v3 = vpop.f32.mrb[40].mxu1 }
0x1780   :  { %2746 = vrot.lane.b32.xlu0 %v2719_v3, %s5429_s9  ;;  %v2721_v14 = vpop.f32.mrb[41].mxu1 }
0x1781   :  { %v2722_v60 = vpop.f32.mrb[42].mxu1 }
0x1782   :  { %2748 = vrot.lane.b32.xlu1 %v2722_v60, %s5429_s9  ;;  %v2724_v45 = vpop.f32.mrb[43].mxu1 }
0x17da   :  { %v2735_v62 = vpop.permute.xlu0 %2734 }
0x17db   :  { %v2758_v41 = vsel %vm22_vm1, 0.0, %v2735_v62 }
0x17dc   :  { %v2766_v37 = vsel %vm1579_vm6, %v2758_v41, 0.0  ;;  %v2737_v33 = vpop.permute.xlu1 %2736 }
0x17dd   :  { %v6692_v30 = vmul.f32 %v2766_v37, %v6075_v35  ;;  %v2759_v9 = vsel %vm22_vm1, 0.0, %v2737_v33  ;;  %v5446_v33 = vmov 14  }
0x17de   :  { %v2767_v42 = vsel %vm1579_vm6, %v2759_v9, 0.0  ;;  %4997 = vset.pattern.permute.xlu0 %v5446_v33  ;;  %v6773_v9 = vld [vmem:[%s7355_s2] sm:$0xff] }
0x17df   :  { %v6697_v17 = vmul.f32 %v2767_v42, %v6075_v35  ;;  %v2782_v5 = vsel %vm1608_vm7, %v6692_v30, 0.0  ;;  %v2806_v46 = vmul.f32 %v6692_v30, %v6692_v30  ;;  %v6779_v42 = vld [vmem:[%s7355_s2 + $0x8] sm:$0xff] }
0x17e0   :  { %2783 = vadd.xlane.f32.xlu0 %v2782_v5  ;;  %v6785_v5 = vld [vmem:[%s7355_s2 + $0x10] sm:$0xff] }
0x17e1   :  { %v2785_v26 = vsel %vm1608_vm7, %v6697_v17, 0.0  ;;  %v2814_v38 = vsel %vm1608_vm7, %v2806_v46, 0.0  ;;  %v2807_v25 = vmul.f32 %v6697_v17, %v6697_v17  ;;  %v6791_v46 = vld [vmem:[%s7355_s2 + $0x18] sm:$0xff] }
0x17e2   :  { %v2739_v1 = vpop.permute.xlu0 %2738  ;;  %2786 = vadd.xlane.f32.xlu1 %v2785_v26 }
0x17e3   :  { %v2760_v27 = vsel %vm22_vm1, 0.0, %v2739_v1  ;;  %v2817_v43 = vsel %vm1608_vm7, %v2807_v25, 0.0 }
0x17e4   :  { %v2768_v34 = vsel %vm1579_vm6, %v2760_v27, 0.0  ;;  %v2741_v63 = vpop.permute.xlu1 %2740  ;;  %2815 = vadd.xlane.f32.xlu0 %v2814_v38 }
0x17e5   :  { %v6711_v51 = vmul.f32 %v2768_v34, %v6075_v35  ;;  %v2761_v11 = vsel %vm22_vm1, 0.0, %v2741_v63 }
0x17e6   :  { %v2769_v2 = vsel %vm1579_vm6, %v2761_v11, 0.0 }
0x17e7   :  { %v6716_v28 = vmul.f32 %v2769_v2, %v6075_v35  ;;  %v2788_v47 = vsel %vm1608_vm7, %v6711_v51, 0.0  ;;  %v2808_v23 = vmul.f32 %v6711_v51, %v6711_v51 }
0x17e8   :  { %2818 = vadd.xlane.f32.xlu0 %v2817_v43  ;;  %2789 = vadd.xlane.f32.xlu1 %v2788_v47 }
0x17e9   :  { %v2791_v59 = vsel %vm1608_vm7, %v6716_v28, 0.0  ;;  %v2820_v55 = vsel %vm1608_vm7, %v2808_v23, 0.0  ;;  %v2809_v58 = vmul.f32 %v6716_v28, %v6716_v28 }
0x17ea   :  { %v2743_v44 = vpop.permute.xlu0 %2742 }
0x17eb   :  { %v2762_v20 = vsel %vm22_vm1, 0.0, %v2743_v44  ;;  %v2823_v15 = vsel %vm1608_vm7, %v2809_v58, 0.0 }
0x17ec   :  { %v2770_v21 = vsel %vm1579_vm6, %v2762_v20, 0.0  ;;  %v2745_v57 = vpop.permute.xlu1 %2744  ;;  %2792 = vadd.xlane.f32.xlu0 %v2791_v59  ;;  %2821 = vadd.xlane.f32.xlu1 %v2820_v55 }
0x17ed   :  { %v6731_v22 = vmul.f32 %v2770_v21, %v6075_v35  ;;  %v2763_v4 = vsel %vm22_vm1, 0.0, %v2745_v57 }
0x17ee   :  { %v2771_v48 = vsel %vm1579_vm6, %v2763_v4, 0.0 }
0x17ef   :  { %v6736_v56 = vmul.f32 %v2771_v48, %v6075_v35  ;;  %v2794_v61 = vsel %vm1608_vm7, %v6731_v22, 0.0  ;;  %v2810_v31 = vmul.f32 %v6731_v22, %v6731_v22 }
0x17f0   :  { %2824 = vadd.xlane.f32.xlu0 %v2823_v15  ;;  %2795 = vadd.xlane.f32.xlu1 %v2794_v61 }
0x17f1   :  { %v2797_v12 = vsel %vm1608_vm7, %v6736_v56, 0.0  ;;  %v2826_v16 = vsel %vm1608_vm7, %v2810_v31, 0.0  ;;  %v2811_v8 = vmul.f32 %v6736_v56, %v6736_v56 }
0x17f2   :  { %v2747_v10 = vpop.permute.xlu0 %2746 }
0x17f3   :  { %v2764_v49 = vsel %vm22_vm1, 0.0, %v2747_v10  ;;  %v2829_v3 = vsel %vm1608_vm7, %v2811_v8, 0.0 }
0x17f4   :  { %v2772_v19 = vsel %vm1579_vm6, %v2764_v49, 0.0  ;;  %2798 = vadd.xlane.f32.xlu0 %v2797_v12  ;;  %2827 = vadd.xlane.f32.xlu1 %v2826_v16  ;;  %v2749_v0 = vpop.permute.xlu1 %2748 }
0x17f5   :  { %v6751_v18 = vmul.f32 %v2772_v19, %v6075_v35  ;;  %v2765_v40 = vsel %vm22_vm1, 0.0, %v2749_v0 }
0x17f6   :  { %v2773_v39 = vsel %vm1579_vm6, %v2765_v40, 0.0 }
0x17f7   :  { %v6756_v24 = vmul.f32 %v2773_v39, %v6075_v35  ;;  %v2800_v14 = vsel %vm1608_vm7, %v6751_v18, 0.0  ;;  %v2812_v60 = vmul.f32 %v6751_v18, %v6751_v18 }
0x17f8   :  { %2830 = vadd.xlane.f32.xlu0 %v2829_v3  ;;  %2801 = vadd.xlane.f32.xlu1 %v2800_v14 }
0x17f9   :  { %v2832_v45 = vsel %vm1608_vm7, %v2812_v60, 0.0  ;;  %v2803_v62 = vsel %vm1608_vm7, %v6756_v24, 0.0  ;;  %v2813_v41 = vmul.f32 %v6756_v24, %v6756_v24 }
0x17fb   :  { %v2835_v37 = vsel %vm1608_vm7, %v2813_v41, 0.0 }
0x17fc   :  { %2833 = vadd.xlane.f32.xlu1 %v2832_v45  ;;  %2804 = vadd.xlane.f32.xlu0 %v2803_v62 }
0x1800   :  { %2836 = vadd.xlane.f32.xlu0 %v2835_v37 }
0x180d   :  { %2959 = vperm.xlu1 %4995, %v6773_v9  }
0x1811   :  { %2963 = vperm.xlu1 %4995, %v6779_v42  }
0x1815   :  { %2967 = vperm.xlu1 %4995, %v6785_v5  }
0x1819   :  { %2971 = vperm.xlu1 %4995, %v6791_v46  }
0x181d   :  { %4996 = vset.pattern.permute.xlu1 %v5446_v33 }
0x186d   :  { %v2784_v26 = vpop.xlane.xlu0 %2783 }
0x186e   :  { %v6795_v1 = vmul.f32 0.0625, %v2784_v26 }
0x186f   :  { %v2787_v27 = vpop.xlane.xlu1 %2786 }
0x1870   :  { %v2854_v25 = vmul.f32 %v6795_v1, %v6795_v1  ;;  %v6799_v34 = vmul.f32 0.0625, %v2787_v27 }
0x1871   :  { %v2816_v38 = vpop.xlane.xlu0 %2815 }
0x1872   :  { %v2846_v63 = vmul.f32 0.0625, %v2816_v38  ;;  %v2855_v47 = vmul.f32 %v6799_v34, %v6799_v34 }
0x1874   :  { %v2862_v11 = vsub.f32 %v2846_v63, %v2854_v25 }
0x1875   :  { %v2819_v2 = vpop.xlane.xlu0 %2818  ;;  %v2790_v43 = vpop.xlane.xlu1 %2789 }
0x1876   :  { %v2870_v23 = vmax.f32 %v2862_v11, 0.0  ;;  %v2847_v44 = vmul.f32 0.0625, %v2819_v2  ;;  %v6803_v20 = vmul.f32 0.0625, %v2790_v43 }
0x1878   :  { %v2878_v59 = vadd.f32 1e-05, %v2870_v23  ;;  %v2863_v55 = vsub.f32 %v2847_v44, %v2855_v47  ;;  %v2856_v58 = vmul.f32 %v6803_v20, %v6803_v20 }
0x1879   :  { %v2793_v21 = vpop.xlane.xlu0 %2792  ;;  %v2822_v57 = vpop.xlane.xlu1 %2821 }
0x187a   :  { %5356 = vrsqrt.f32 %v2878_v59  ;;  %v2871_v4 = vmax.f32 %v2863_v55, 0.0  ;;  %v6807_v48 = vmul.f32 0.0625, %v2793_v21  ;;  %v2848_v15 = vmul.f32 0.0625, %v2822_v57 }
0x187c   :  { %v2879_v61 = vadd.f32 1e-05, %v2871_v4  ;;  %v2864_v31 = vsub.f32 %v2848_v15, %v2856_v58  ;;  %v2857_v10 = vmul.f32 %v6807_v48, %v6807_v48 }
0x187d   :  { %v2825_v49 = vpop.xlane.xlu0 %2824  ;;  %v2796_v12 = vpop.xlane.xlu1 %2795 }
0x187e   :  { %5358 = vrsqrt.f32 %v2879_v61  ;;  %v2872_v16 = vmax.f32 %v2864_v31, 0.0  ;;  %v2849_v8 = vmul.f32 0.0625, %v2825_v49  ;;  %v6811_v19 = vmul.f32 0.0625, %v2796_v12  ;;  %v6831_v49 = vld [vmem:[%s7355_s2 + $0x28] sm:$0xff] }
0x1880   :  { %v2880_v0 = vadd.f32 1e-05, %v2872_v16  ;;  %v2865_v40 = vsub.f32 %v2849_v8, %v2857_v10  ;;  %v2858_v39 = vmul.f32 %v6811_v19, %v6811_v19 }
0x1881   :  { %v2799_v3 = vpop.xlane.xlu0 %2798  ;;  %v2828_v14 = vpop.xlane.xlu1 %2827 }
0x1882   :  { %5360 = vrsqrt.f32 %v2880_v0  ;;  %v2873_v60 = vmax.f32 %v2865_v40, 0.0  ;;  %v6815_v45 = vmul.f32 0.0625, %v2799_v3  ;;  %v2850_v62 = vmul.f32 0.0625, %v2828_v14 }
0x1884   :  { %v5357_v41 = vpop.eup %5356  ;;  %v2881_v37 = vadd.f32 1e-05, %v2873_v60  ;;  %v2866_v26 = vsub.f32 %v2850_v62, %v2858_v39  ;;  %v2859_v27 = vmul.f32 %v6815_v45, %v6815_v45  ;;  %v6842_v60 = vld [vmem:[%s7355_s2 + $0x20] sm:$0xff] }
0x1885   :  { %v2831_v38 = vpop.xlane.xlu0 %2830  ;;  %v2802_v25 = vpop.xlane.xlu1 %2801  ;;  %v2902_v63 = vmul.f32 %v6773_v9, %v5357_v41 }
0x1886   :  { %5362 = vrsqrt.f32 %v2881_v37  ;;  %v2874_v11 = vmax.f32 %v2866_v26, 0.0  ;;  %v2851_v2 = vmul.f32 0.0625, %v2831_v38  ;;  %v6820_v43 = vmul.f32 0.0625, %v2802_v25 }
0x1887   :  { %2912 = vperm.xlu1 %4996, %v2902_v63  }
0x1888   :  { %v5359_v47 = vpop.eup %5358  ;;  %v2882_v23 = vadd.f32 1e-05, %v2874_v11  ;;  %v2867_v44 = vsub.f32 %v2851_v2, %v2859_v27  ;;  %v2860_v59 = vmul.f32 %v6820_v43, %v6820_v43  ;;  %v6852_v11 = vld [vmem:[%s7355_s2 + $0x30] sm:$0xff] }
0x1889   :  { %v2805_v55 = vpop.xlane.xlu0 %2804  ;;  %v2834_v58 = vpop.xlane.xlu1 %2833  ;;  %v2903_v21 = vmul.f32 %v6779_v42, %v5359_v47 }
0x188a   :  { %5364 = vrsqrt.f32 %v2882_v23  ;;  %v2875_v57 = vmax.f32 %v2867_v44, 0.0  ;;  %v6825_v4 = vmul.f32 0.0625, %v2805_v55  ;;  %v2852_v15 = vmul.f32 0.0625, %v2834_v58 }
0x188b   :  { %4999 = vset.pattern.permute.xlu1 %v5445_v7  ;;  %2917 = vperm.xlu0 %4997, %v2903_v21   ;;  %v2894_v21 = vsub.f32 %v6692_v30, %v6795_v1 }
0x188c   :  { %v5361_v61 = vpop.eup %5360  ;;  %v2883_v31 = vadd.f32 1e-05, %v2875_v57  ;;  %v2868_v10 = vsub.f32 %v2852_v15, %v2860_v59  ;;  %2979 = vperm.xlu1 %4999, %v6831_v49   ;;  %v2861_v16 = vmul.f32 %v6825_v4, %v6825_v4 }
0x188d   :  { %v2837_v12 = vpop.xlane.xlu0 %2836  ;;  %v2904_v40 = vmul.f32 %v6785_v5, %v5361_v61  ;;  %v2960_v44 = vpop.permute.xlu1 %2959 }
0x188e   :  { %5366 = vrsqrt.f32 %v2883_v31  ;;  %v2876_v8 = vmax.f32 %v2868_v10, 0.0  ;;  %v2853_v0 = vmul.f32 0.0625, %v2837_v12  ;;  %v2895_v31 = vsub.f32 %v6697_v17, %v6799_v34 }
0x188f   :  { %4998 = vset.pattern.permute.xlu0 %v5445_v7 }
0x1890   :  { %v5363_v39 = vpop.eup %5362  ;;  %v2884_v3 = vadd.f32 1e-05, %v2876_v8  ;;  %v2869_v14 = vsub.f32 %v2853_v0, %v2861_v16  ;;  %5000 = vset.pattern.permute.xlu1 %v5446_v33  ;;  %2975 = vperm.xlu0 %4998, %v6842_v60  }
0x1891   :  { %2922 = vperm.xlu1 %5000, %v2904_v40   ;;  %v2905_v41 = vmul.f32 %v6791_v46, %v5363_v39  ;;  %v2964_v59 = vpop.permute.xlu1 %2963  ;;  %v2896_v40 = vsub.f32 %v6711_v51, %v6803_v20 }
0x1892   :  { %5368 = vrsqrt.f32 %v2884_v3  ;;  %v2877_v62 = vmax.f32 %v2869_v14, 0.0  ;;  %v2897_v14 = vsub.f32 %v6716_v28, %v6807_v48 }
0x1894   :  { %v5365_v37 = vpop.eup %5364  ;;  %v2885_v26 = vadd.f32 1e-05, %v2877_v62  ;;  %5001 = vset.pattern.permute.xlu0 %v5446_v33  ;;  %v6858_v33 = vld [vmem:[%s7355_s2 + $0x38] sm:$0xff] }
0x1895   :  { %2927 = vperm.xlu1 %5000, %v2905_v41   ;;  %v2906_v27 = vmul.f32 %v6842_v60, %v5365_v37  ;;  %v2968_v55 = vpop.permute.xlu1 %2967 }
0x1896   :  { %5370 = vrsqrt.f32 %v2885_v26  ;;  %v2898_v26 = vsub.f32 %v6731_v22, %v6811_v19 }
0x1898   :  { %v5367_v38 = vpop.eup %5366 }
0x1899   :  { %2932 = vperm.xlu1 %5000, %v2906_v27   ;;  %v2907_v25 = vmul.f32 %v6831_v49, %v5367_v38  ;;  %v2972_v58 = vpop.permute.xlu1 %2971 }
0x189c   :  { %v5369_v63 = vpop.eup %5368 }
0x189d   :  { %2937 = vperm.xlu1 %5000, %v2907_v25   ;;  %v2908_v2 = vmul.f32 %v6852_v11, %v5369_v63 }
0x18a0   :  { %v5371_v47 = vpop.eup %5370 }
0x18a1   :  { %2942 = vperm.xlu1 %5000, %v2908_v2   ;;  %v2909_v23 = vmul.f32 %v6858_v33, %v5371_v47  ;;  %v2899_v47 = vsub.f32 %v6736_v56, %v6815_v45 }
0x18a3   :  { %2947 = vperm.xlu0 %5001, %v2909_v23  }
0x18a5   :  { %5002 = vset.pattern.permute.xlu1 %v5445_v7 }
0x18a6   :  { %2983 = vperm.xlu1 %5002, %v6852_v11  }
0x18aa   :  { %2987 = vperm.xlu1 %5002, %v6858_v33  }
0x1906   :  { %v2913_v57 = vpop.permute.xlu1 %2912 }
0x1907   :  { %v2950_v15 = vmul.f32 %v2913_v57, %v2894_v21  ;;  %v2900_v57 = vsub.f32 %v6751_v18, %v6820_v43 }
0x1909   :  { %v2990_v61 = vadd.f32 %v2960_v44, %v2950_v15 }
0x190a   :  { %v2918_v10 = vpop.permute.xlu0 %2917 }
0x190b   :  { %v2951_v12 = vmul.f32 %v2918_v10, %v2895_v31  ;;  %v2980_v7 = vpop.permute.xlu1 %2979  ;;  %v2998_v16 = vmax.f32 %v2990_v61, 0.0 }
0x190d   :  { %v2991_v8 = vadd.f32 %v2964_v59, %v2951_v12  ;;  %v3006_v3 = vmul.f32 %v2998_v16, %v6075_v35 }
0x190f   :  { %v2999_v0 = vmax.f32 %v2991_v8, 0.0  ;;  %v2976_v38 = vpop.permute.xlu0 %2975 }
0x1910   :  { %v2923_v39 = vpop.permute.xlu1 %2922 }
0x1911   :  { %v3007_v30 = vmul.f32 %v2999_v0, %v6075_v35  ;;  %v2952_v1 = vmul.f32 %v2923_v39, %v2896_v40 }
0x1913   :  { %v2992_v62 = vadd.f32 %v2968_v55, %v2952_v1  ;;  %v5003_v17 = vpack.i.bf16 %v3007_v30, %v3006_v3  ;;  %v3078_v34 = vpack.c.bf16 %v3007_v30, %v3006_v3  ;;  %v5234_v30 = vld [vmem:[%s7354_s1 + $0x1a4] ss:$8 sps:$4 sm:$0xff]  }
0x1914   :  { %v2928_v41 = vpop.permute.xlu1 %2927  ;;  %4351 = vmatprep.mubr.msk.bf16.mxu0 %vm1962_vm8, %v5234_v30 }
0x1915   :  { %v2953_v37 = vmul.f32 %v2928_v41, %v2897_v14  ;;  %5004 = vrot.lane.b32.xlu0 %v5003_v17, %s5424_s24  ;;  %3139 = vmatpush1.bf16.msra.mxu0 %v3078_v34  ;;  %v3000_v51 = vmax.f32 %v2992_v62, 0.0 }
0x1916   :  { %3140 = vmatprep.subr.bf16.mxu0 %v5425_v6 }
0x1917   :  { %v2993_v20 = vadd.f32 %v2972_v58, %v2953_v37  ;;  %v3008_v28 = vmul.f32 %v3000_v51, %v6075_v35 }
0x1918   :  { %v2933_v27 = vpop.permute.xlu1 %2932 }
0x1919   :  { %v3001_v25 = vmax.f32 %v2993_v20, 0.0  ;;  %v2954_v63 = vmul.f32 %v2933_v27, %v2898_v26 }
0x191b   :  { %v3009_v48 = vmul.f32 %v3001_v25, %v6075_v35  ;;  %v2994_v2 = vadd.f32 %v2976_v38, %v2954_v63 }
0x191c   :  { %v2938_v23 = vpop.permute.xlu1 %2937 }
0x191d   :  { %v2955_v44 = vmul.f32 %v2938_v23, %v2899_v47  ;;  %v5008_v59 = vpack.i.bf16 %v3009_v48, %v3008_v28  ;;  %v3079_v55 = vpack.c.bf16 %v3009_v48, %v3008_v28  ;;  %v3002_v58 = vmax.f32 %v2994_v2, 0.0 }
0x191f   :  { %v2995_v21 = vadd.f32 %v2980_v7, %v2955_v44  ;;  %5009 = vrot.lane.b32.xlu1 %v5008_v59, %s5424_s24  ;;  %3141 = vmatpush1.bf16.msra.mxu0 %v3079_v55  ;;  %v3010_v15 = vmul.f32 %v3002_v58, %v6075_v35  ;;  %v2901_v7 = vsub.f32 %v6756_v24, %v6825_v4 }
0x1920   :  { %v2943_v22 = vpop.permute.xlu1 %2942  ;;  %3142 = vmatprep.subr.bf16.mxu0 %v5425_v6 }
0x1921   :  { %v3003_v19 = vmax.f32 %v2995_v21, 0.0  ;;  %v2956_v45 = vmul.f32 %v2943_v22, %v2900_v57 }
0x1922   :  { %v2948_v61 = vpop.permute.xlu0 %2947 }
0x1923   :  { %v3011_v56 = vmul.f32 %v3003_v19, %v6075_v35  ;;  %v2957_v8 = vmul.f32 %v2948_v61, %v2901_v7  ;;  %v5237_v7 = vld [vmem:[%s7354_s1 + $0x1b0] ss:$8 sps:$4 sm:$0xff]  }
0x1925   :  { %v2984_v31 = vpop.permute.xlu1 %2983  ;;  %v5013_v10 = vpack.i.bf16 %v3011_v56, %v3010_v15  ;;  %v3080_v12 = vpack.c.bf16 %v3011_v56, %v3010_v15 }
0x1926   :  { %v2996_v16 = vadd.f32 %v2984_v31, %v2956_v45 }
0x1927   :  { %5014 = vrot.lane.b32.xlu0 %v5013_v10, %s5424_s24  ;;  %3143 = vmatpush1.bf16.msra.mxu0 %v3080_v12  ;;  %v5235_v12 = vld [vmem:[%s7354_s1 + $0x1b4] ss:$8 sps:$4 sm:$0xff]  }
0x1928   :  { %3144 = vmatprep.subr.bf16.mxu0 %v5425_v6  ;;  %v3004_v43 = vmax.f32 %v2996_v16, 0.0  ;;  %v5240_v16 = vld [vmem:[%s7354_s1 + $0x1c0] ss:$8 sps:$4 sm:$0xff]  }
0x1929   :  { %v2988_v18 = vpop.permute.xlu1 %2987 }
0x192a   :  { %v2997_v0 = vadd.f32 %v2988_v18, %v2957_v8  ;;  %v3012_v39 = vmul.f32 %v3004_v43, %v6075_v35  ;;  %v5241_v8 = vld [vmem:[%s7354_s1 + $0x1d4] ss:$8 sps:$4 sm:$0xff]   ;;  %v5243_v18 = vld [vmem:[%s7354_s1 + $0x1d0] ss:$8 sps:$4 sm:$0xff]  }
0x192b   :  { %5024 = vrot.lane.b32.xlu0 %v5003_v17, %s5426_s28 }
0x192c   :  { %v3005_v40 = vmax.f32 %v2997_v0, 0.0 }
0x192e   :  { %v3013_v3 = vmul.f32 %v3005_v40, %v6075_v35 }
0x192f   :  { %5034 = vrot.lane.b32.xlu0 %v5013_v10, %s5426_s28  ;;  %v5232_v10 = vld [vmem:[%s7354_s1 + $0x1a0] ss:$8 sps:$4 sm:$0xff]  }
0x1930   :  { %v5018_v24 = vpack.i.bf16 %v3013_v3, %v3012_v39  ;;  %v3081_v4 = vpack.c.bf16 %v3013_v3, %v3012_v39 }
0x1932   :  { %5019 = vrot.lane.b32.xlu1 %v5018_v24, %s5424_s24  ;;  %3145 = vmatpush1.bf16.msra.mxu0 %v3081_v4 }
0x1933   :  { %3146 = vmatprep.subr.bf16.mxu0 %v5425_v6 }
0x1936   :  { %5029 = vrot.lane.b32.xlu1 %v5008_v59, %s5426_s28 }
0x193a   :  { %5039 = vrot.lane.b32.xlu1 %v5018_v24, %s5426_s28 }
0x1987   :  { %v5005_v1 = vpop.permute.xlu0 %5004 }
0x1988   :  { %v5007_v14 = vunpack.i.h.bf16 %v5005_v1  ;;  %v5006_v62 = vunpack.i.l.bf16 %v5005_v1 }
0x198a   :  { %v3082_v17 = vpack.c.bf16 %v5007_v14, %v5006_v62 }
0x198c   :  { %3147 = vmatpush1.bf16.msra.mxu0 %v3082_v17 }
0x198d   :  { %3148 = vmatprep.subr.bf16.mxu0 %v5425_v6 }
0x1991   :  { %v5010_v34 = vpop.permute.xlu1 %5009 }
0x1992   :  { %v5012_v41 = vunpack.i.h.bf16 %v5010_v34  ;;  %v5011_v37 = vunpack.i.l.bf16 %v5010_v34 }
0x1994   :  { %v3083_v51 = vpack.c.bf16 %v5012_v41, %v5011_v37 }
0x1996   :  { %3149 = vmatpush1.bf16.msra.mxu0 %v3083_v51  ;;  %v5447_v51 = vmov 17  }
0x1997   :  { %3150 = vmatprep.subr.bf16.mxu0 %v5425_v6  ;;  %5043 = vset.pattern.permute.xlu1 %v5447_v51 }
0x1999   :  { %v5015_v20 = vpop.permute.xlu0 %5014 }
0x199a   :  { %v5017_v26 = vunpack.i.h.bf16 %v5015_v20  ;;  %v5016_v27 = vunpack.i.l.bf16 %v5015_v20 }
0x199c   :  { %v3084_v38 = vpack.c.bf16 %v5017_v26, %v5016_v27 }
0x199d   :  { %v5025_v25 = vpop.permute.xlu0 %5024 }
0x199e   :  { %3151 = vmatpush1.bf16.msra.mxu0 %v3084_v38  ;;  %v5027_v2 = vunpack.i.h.bf16 %v5025_v25  ;;  %v5026_v47 = vunpack.i.l.bf16 %v5025_v25 }
0x199f   :  { %3152 = vmatprep.subr.bf16.mxu0 %v5425_v6 }
0x19a0   :  { %v3086_v59 = vpack.c.bf16 %v5027_v2, %v5026_v47 }
0x19a1   :  { %v5035_v21 = vpop.permute.xlu0 %5034 }
0x19a2   :  { %v5037_v22 = vunpack.i.h.bf16 %v5035_v21  ;;  %v5036_v19 = vunpack.i.l.bf16 %v5035_v21 }
0x19a4   :  { %v5020_v63 = vpop.permute.xlu1 %5019  ;;  %v3088_v56 = vpack.c.bf16 %v5037_v22, %v5036_v19 }
0x19a5   :  { %v5022_v28 = vunpack.i.h.bf16 %v5020_v63  ;;  %v5021_v48 = vunpack.i.l.bf16 %v5020_v63 }
0x19a7   :  { %v3085_v23 = vpack.c.bf16 %v5022_v28, %v5021_v48 }
0x19a8   :  { %v5030_v44 = vpop.permute.xlu1 %5029 }
0x19a9   :  { %3153 = vmatpush1.bf16.msra.mxu0 %v3085_v23  ;;  %v5032_v55 = vunpack.i.h.bf16 %v5030_v44  ;;  %v5031_v58 = vunpack.i.l.bf16 %v5030_v44 }
0x19aa   :  { %3154 = vmatprep.subr.bf16.mxu0 %v5425_v6 }
0x19ab   :  { %v3087_v57 = vpack.c.bf16 %v5032_v55, %v5031_v58 }
0x19ac   :  { %v5040_v15 = vpop.permute.xlu1 %5039 }
0x19ad   :  { %3155 = vmatpush1.bf16.msra.mxu0 %v3086_v59  ;;  %v5042_v45 = vunpack.i.h.bf16 %v5040_v15  ;;  %v5041_v61 = vunpack.i.l.bf16 %v5040_v15 }
0x19ae   :  { %3156 = vmatprep.subr.bf16.mxu0 %v5425_v6 }
0x19af   :  { %v3089_v31 = vpack.c.bf16 %v5042_v45, %v5041_v61 }
0x19b1   :  { %3157 = vmatpush1.bf16.msra.mxu0 %v3087_v57 }
0x19b2   :  { %3158 = vmatprep.subr.bf16.mxu0 %v5425_v6 }
0x19b5   :  { %3159 = vmatpush1.bf16.msra.mxu0 %v3088_v56 }
0x19b6   :  { %3160 = vmatprep.subr.bf16.mxu0 %v5425_v6  ;;  %v5238_v6 = vld [vmem:[%s7354_s1 + $0x1c4] ss:$8 sps:$4 sm:$0xff]   ;;  %s5449_s1 = smov 122  }
0x19b9   :  { %3161 = vmatpush1.bf16.msra.mxu0 %v3089_v31 }
0x19bc   :  { %3171 = vmatmul.mubr.bf16.vlgmr.msra.gmra.mrb[28].mxu0 %v5232_v10 }
0x19bd   :  { %4352 = vmatprep.mubr.msk.bf16.mxu0 %vm1962_vm8, %v5235_v12 }
0x19c4   :  { %3179 = vmatmul.mubr.bf16.gmra.mrb[32].mxu0 %v5237_v7 }
0x19c5   :  { %4353 = vmatprep.mubr.msk.bf16.mxu0 %vm1962_vm8, %v5238_v6 }
0x19cc   :  { %3187 = vmatmul.mubr.bf16.gmra.mrb[36].mxu0 %v5240_v16 }
0x19cd   :  { %4354 = vmatprep.mubr.msk.bf16.mxu0 %vm1962_vm8, %v5241_v8 }
0x19d4   :  { %3195 = vmatmul.mubr.bf16.gmra.mrb[40].mxu0 %v5243_v18 }
0x1a8f   :  { %v3172_v43 = vpop.f32.mrb[28].mxu0 }
0x1a90   :  { %3211 = vrot.lane.b32.xlu0 %v3172_v43, %s5429_s9  ;;  %v3174_v0 = vpop.f32.mrb[29].mxu0 }
0x1a91   :  { %v3175_v40 = vpop.f32.mrb[30].mxu0 }
0x1a92   :  { %3213 = vrot.lane.b32.xlu1 %v3175_v40, %s5429_s9  ;;  %v3177_v39 = vpop.f32.mrb[31].mxu0 }
0x1a97   :  { %v3180_v3 = vpop.f32.mrb[32].mxu0 }
0x1a98   :  { %3215 = vrot.lane.b32.xlu0 %v3180_v3, %s5429_s9  ;;  %v3182_v24 = vpop.f32.mrb[33].mxu0 }
0x1a99   :  { %v3183_v4 = vpop.f32.mrb[34].mxu0 }
0x1a9a   :  { %3217 = vrot.lane.b32.xlu1 %v3183_v4, %s5429_s9  ;;  %v3185_v30 = vpop.f32.mrb[35].mxu0 }
0x1a9f   :  { %v3188_v1 = vpop.f32.mrb[36].mxu0 }
0x1aa0   :  { %3219 = vrot.lane.b32.xlu0 %v3188_v1, %s5429_s9  ;;  %v3190_v14 = vpop.f32.mrb[37].mxu0 }
0x1aa1   :  { %v3191_v62 = vpop.f32.mrb[38].mxu0 }
0x1aa2   :  { %3221 = vrot.lane.b32.xlu1 %v3191_v62, %s5429_s9  ;;  %v3193_v17 = vpop.f32.mrb[39].mxu0 }
0x1aa7   :  { %v3196_v34 = vpop.f32.mrb[40].mxu0 }
0x1aa8   :  { %3223 = vrot.lane.b32.xlu0 %v3196_v34, %s5429_s9  ;;  %v3198_v41 = vpop.f32.mrb[41].mxu0 }
0x1aa9   :  { %v3199_v37 = vpop.f32.mrb[42].mxu0 }
0x1aaa   :  { %3225 = vrot.lane.b32.xlu1 %v3199_v37, %s5429_s9  ;;  %v3201_v20 = vpop.f32.mrb[43].mxu0  ;;  %s5450_s9 = smov 121  }
0x1b02   :  { %v3212_v26 = vpop.permute.xlu0 %3211 }
0x1b03   :  { %v3235_v27 = vsel %vm22_vm1, 0.0, %v3212_v26 }
0x1b04   :  { %v3243_v38 = vsel %vm1579_vm6, %v3235_v27, 0.0  ;;  %v3214_v25 = vpop.permute.xlu1 %3213 }
0x1b05   :  { %v6947_v63 = vmul.f32 %v3243_v38, %v6075_v35  ;;  %v3236_v28 = vsel %vm22_vm1, 0.0, %v3214_v25 }
0x1b06   :  { %v3244_v48 = vsel %vm1579_vm6, %v3236_v28, 0.0 }
0x1b07   :  { %v6952_v2 = vmul.f32 %v3244_v48, %v6075_v35  ;;  %v3259_v47 = vsel %vm1608_vm7, %v6947_v63, 0.0  ;;  %v3283_v23 = vmul.f32 %v6947_v63, %v6947_v63 }
0x1b08   :  { %3260 = vadd.xlane.f32.xlu0 %v3259_v47 }
0x1b09   :  { %v3262_v44 = vsel %vm1608_vm7, %v6952_v2, 0.0  ;;  %v3291_v58 = vsel %vm1608_vm7, %v3283_v23, 0.0  ;;  %v3284_v21 = vmul.f32 %v6952_v2, %v6952_v2 }
0x1b0a   :  { %v3216_v59 = vpop.permute.xlu0 %3215  ;;  %3263 = vadd.xlane.f32.xlu1 %v3262_v44 }
0x1b0b   :  { %v3237_v55 = vsel %vm22_vm1, 0.0, %v3216_v59  ;;  %v3294_v61 = vsel %vm1608_vm7, %v3284_v21, 0.0 }
0x1b0c   :  { %v3245_v22 = vsel %vm1579_vm6, %v3237_v55, 0.0  ;;  %v3218_v19 = vpop.permute.xlu1 %3217  ;;  %3292 = vadd.xlane.f32.xlu0 %v3291_v58  ;;  %v5448_v55 = vmov 16  }
0x1b0d   :  { %v6966_v57 = vmul.f32 %v3245_v22, %v6075_v35  ;;  %v3238_v15 = vsel %vm22_vm1, 0.0, %v3218_v19  ;;  %5045 = vset.pattern.permute.xlu0 %v5448_v55 }
0x1b0e   :  { %v3246_v56 = vsel %vm1579_vm6, %v3238_v15, 0.0 }
0x1b0f   :  { %v6971_v45 = vmul.f32 %v3246_v56, %v6075_v35  ;;  %v3265_v31 = vsel %vm1608_vm7, %v6966_v57, 0.0  ;;  %v3285_v10 = vmul.f32 %v6966_v57, %v6966_v57 }
0x1b10   :  { %3295 = vadd.xlane.f32.xlu0 %v3294_v61  ;;  %3266 = vadd.xlane.f32.xlu1 %v3265_v31 }
0x1b11   :  { %v3268_v6 = vsel %vm1608_vm7, %v6971_v45, 0.0  ;;  %v3297_v16 = vsel %vm1608_vm7, %v3285_v10, 0.0  ;;  %v3286_v8 = vmul.f32 %v6971_v45, %v6971_v45 }
0x1b12   :  { %v3220_v12 = vpop.permute.xlu0 %3219 }
0x1b13   :  { %v3239_v7 = vsel %vm22_vm1, 0.0, %v3220_v12  ;;  %v3300_v24 = vsel %vm1608_vm7, %v3286_v8, 0.0 }
0x1b14   :  { %v3247_v18 = vsel %vm1579_vm6, %v3239_v7, 0.0  ;;  %v3222_v43 = vpop.permute.xlu1 %3221  ;;  %3269 = vadd.xlane.f32.xlu0 %v3268_v6  ;;  %3298 = vadd.xlane.f32.xlu1 %v3297_v16 }
0x1b15   :  { %v6986_v0 = vmul.f32 %v3247_v18, %v6075_v35  ;;  %v3240_v40 = vsel %vm22_vm1, 0.0, %v3222_v43 }
0x1b16   :  { %v3248_v39 = vsel %vm1579_vm6, %v3240_v40, 0.0 }
0x1b17   :  { %v6991_v3 = vmul.f32 %v3248_v39, %v6075_v35  ;;  %v3271_v4 = vsel %vm1608_vm7, %v6986_v0, 0.0  ;;  %v3287_v30 = vmul.f32 %v6986_v0, %v6986_v0 }
0x1b18   :  { %3301 = vadd.xlane.f32.xlu0 %v3300_v24  ;;  %3272 = vadd.xlane.f32.xlu1 %v3271_v4 }
0x1b19   :  { %v3274_v62 = vsel %vm1608_vm7, %v6991_v3, 0.0  ;;  %v3303_v17 = vsel %vm1608_vm7, %v3287_v30, 0.0  ;;  %v3288_v34 = vmul.f32 %v6991_v3, %v6991_v3 }
0x1b1a   :  { %v3224_v1 = vpop.permute.xlu0 %3223 }
0x1b1b   :  { %v3241_v14 = vsel %vm22_vm1, 0.0, %v3224_v1  ;;  %v3306_v25 = vsel %vm1608_vm7, %v3288_v34, 0.0 }
0x1b1c   :  { %v3249_v41 = vsel %vm1579_vm6, %v3241_v14, 0.0  ;;  %3275 = vadd.xlane.f32.xlu0 %v3274_v62  ;;  %3304 = vadd.xlane.f32.xlu1 %v3303_v17  ;;  %v3226_v37 = vpop.permute.xlu1 %3225 }
0x1b1d   :  { %v7006_v20 = vmul.f32 %v3249_v41, %v6075_v35  ;;  %v3242_v26 = vsel %vm22_vm1, 0.0, %v3226_v37 }
0x1b1e   :  { %v3250_v27 = vsel %vm1579_vm6, %v3242_v26, 0.0 }
0x1b1f   :  { %v7011_v38 = vmul.f32 %v3250_v27, %v6075_v35  ;;  %v3277_v28 = vsel %vm1608_vm7, %v7006_v20, 0.0  ;;  %v3289_v48 = vmul.f32 %v7006_v20, %v7006_v20 }
0x1b20   :  { %3307 = vadd.xlane.f32.xlu0 %v3306_v25  ;;  %3278 = vadd.xlane.f32.xlu1 %v3277_v28 }
0x1b21   :  { %v3309_v47 = vsel %vm1608_vm7, %v3289_v48, 0.0  ;;  %v3280_v23 = vsel %vm1608_vm7, %v7011_v38, 0.0  ;;  %v3290_v44 = vmul.f32 %v7011_v38, %v7011_v38 }
0x1b23   :  { %v3312_v59 = vsel %vm1608_vm7, %v3290_v44, 0.0 }
0x1b24   :  { %3310 = vadd.xlane.f32.xlu1 %v3309_v47  ;;  %3281 = vadd.xlane.f32.xlu0 %v3280_v23 }
0x1b28   :  { %3313 = vadd.xlane.f32.xlu0 %v3312_v59 }
0x1b35   :  { %3436 = vperm.xlu1 %5043, %v6773_v9  }
0x1b39   :  { %3440 = vperm.xlu1 %5043, %v6779_v42  }
0x1b3d   :  { %3444 = vperm.xlu1 %5043, %v6785_v5  }
0x1b41   :  { %3448 = vperm.xlu1 %5043, %v6791_v46  }
0x1b45   :  { %3452 = vperm.xlu1 %5043, %v6842_v60  }
0x1b49   :  { %5044 = vset.pattern.permute.xlu1 %v5448_v55 }
0x1b95   :  { %v3261_v58 = vpop.xlane.xlu0 %3260 }
0x1b96   :  { %v7031_v21 = vmul.f32 0.0625, %v3261_v58 }
0x1b97   :  { %v3264_v22 = vpop.xlane.xlu1 %3263 }
0x1b98   :  { %v3331_v15 = vmul.f32 %v7031_v21, %v7031_v21  ;;  %v7035_v56 = vmul.f32 0.0625, %v3264_v22 }
0x1b99   :  { %v3293_v19 = vpop.xlane.xlu0 %3292 }
0x1b9a   :  { %v3323_v61 = vmul.f32 0.0625, %v3293_v19  ;;  %v3332_v7 = vmul.f32 %v7035_v56, %v7035_v56 }
0x1b9c   :  { %v3339_v31 = vsub.f32 %v3323_v61, %v3331_v15 }
0x1b9d   :  { %v3296_v10 = vpop.xlane.xlu0 %3295  ;;  %v3267_v12 = vpop.xlane.xlu1 %3266 }
0x1b9e   :  { %v3347_v6 = vmax.f32 %v3339_v31, 0.0  ;;  %v3324_v16 = vmul.f32 0.0625, %v3296_v10  ;;  %v7039_v8 = vmul.f32 0.0625, %v3267_v12 }
0x1ba0   :  { %v3355_v18 = vadd.f32 1e-05, %v3347_v6  ;;  %v3340_v43 = vsub.f32 %v3324_v16, %v3332_v7  ;;  %v3333_v40 = vmul.f32 %v7039_v8, %v7039_v8 }
0x1ba1   :  { %v3270_v39 = vpop.xlane.xlu0 %3269  ;;  %v3299_v24 = vpop.xlane.xlu1 %3298 }
0x1ba2   :  { %5372 = vrsqrt.f32 %v3355_v18  ;;  %v3348_v4 = vmax.f32 %v3340_v43, 0.0  ;;  %v7043_v30 = vmul.f32 0.0625, %v3270_v39  ;;  %v3325_v1 = vmul.f32 0.0625, %v3299_v24 }
0x1ba4   :  { %v3356_v14 = vadd.f32 1e-05, %v3348_v4  ;;  %v3341_v62 = vsub.f32 %v3325_v1, %v3333_v40  ;;  %v3334_v17 = vmul.f32 %v7043_v30, %v7043_v30 }
0x1ba5   :  { %v3302_v34 = vpop.xlane.xlu0 %3301  ;;  %v3273_v41 = vpop.xlane.xlu1 %3272 }
0x1ba6   :  { %5374 = vrsqrt.f32 %v3356_v14  ;;  %v3349_v37 = vmax.f32 %v3341_v62, 0.0  ;;  %v3326_v26 = vmul.f32 0.0625, %v3302_v34  ;;  %v7047_v27 = vmul.f32 0.0625, %v3273_v41 }
0x1ba8   :  { %v3357_v25 = vadd.f32 1e-05, %v3349_v37  ;;  %v3342_v28 = vsub.f32 %v3326_v26, %v3334_v17  ;;  %v3335_v48 = vmul.f32 %v7047_v27, %v7047_v27 }
0x1ba9   :  { %v3276_v47 = vpop.xlane.xlu0 %3275  ;;  %v3305_v23 = vpop.xlane.xlu1 %3304 }
0x1baa   :  { %5376 = vrsqrt.f32 %v3357_v25  ;;  %v3350_v44 = vmax.f32 %v3342_v28, 0.0  ;;  %v7051_v59 = vmul.f32 0.0625, %v3276_v47  ;;  %v3327_v58 = vmul.f32 0.0625, %v3305_v23 }
0x1bac   :  { %v5373_v22 = vpop.eup %5372  ;;  %v3358_v19 = vadd.f32 1e-05, %v3350_v44  ;;  %v3343_v15 = vsub.f32 %v3327_v58, %v3335_v48  ;;  %v3336_v61 = vmul.f32 %v7051_v59, %v7051_v59 }
0x1bad   :  { %v3308_v31 = vpop.xlane.xlu0 %3307  ;;  %v3279_v10 = vpop.xlane.xlu1 %3278  ;;  %v3379_v12 = vmul.f32 %v6773_v9, %v5373_v22 }
0x1bae   :  { %5378 = vrsqrt.f32 %v3358_v19  ;;  %v3351_v7 = vmax.f32 %v3343_v15, 0.0  ;;  %v3328_v6 = vmul.f32 0.0625, %v3308_v31  ;;  %v7056_v16 = vmul.f32 0.0625, %v3279_v10 }
0x1baf   :  { %3389 = vperm.xlu1 %5044, %v3379_v12  }
0x1bb0   :  { %v5375_v18 = vpop.eup %5374  ;;  %v3359_v43 = vadd.f32 1e-05, %v3351_v7  ;;  %v3344_v40 = vsub.f32 %v3328_v6, %v3336_v61  ;;  %v3337_v39 = vmul.f32 %v7056_v16, %v7056_v16 }
0x1bb1   :  { %v3282_v24 = vpop.xlane.xlu0 %3281  ;;  %v3311_v4 = vpop.xlane.xlu1 %3310  ;;  %v3380_v1 = vmul.f32 %v6779_v42, %v5375_v18  ;;  %v3371_v18 = vsub.f32 %v6947_v63, %v7031_v21 }
0x1bb2   :  { %5380 = vrsqrt.f32 %v3359_v43  ;;  %v3352_v14 = vmax.f32 %v3344_v40, 0.0  ;;  %v7061_v62 = vmul.f32 0.0625, %v3282_v24  ;;  %v3329_v9 = vmul.f32 0.0625, %v3311_v4 }
0x1bb3   :  { %3394 = vperm.xlu0 %5045, %v3380_v1  }
0x1bb4   :  { %v5377_v17 = vpop.eup %5376  ;;  %v3360_v34 = vadd.f32 1e-05, %v3352_v14  ;;  %v3345_v41 = vsub.f32 %v3329_v9, %v3337_v39  ;;  %v3338_v25 = vmul.f32 %v7061_v62, %v7061_v62 }
0x1bb5   :  { %v3314_v37 = vpop.xlane.xlu0 %3313  ;;  %v3381_v26 = vmul.f32 %v6785_v5, %v5377_v17 }
0x1bb6   :  { %5382 = vrsqrt.f32 %v3360_v34  ;;  %v3353_v28 = vmax.f32 %v3345_v41, 0.0  ;;  %v3330_v48 = vmul.f32 0.0625, %v3314_v37  ;;  %v3374_v41 = vsub.f32 %v6971_v45, %v7043_v30 }
0x1bb7   :  { %3399 = vperm.xlu1 %5044, %v3381_v26   ;;  %5046 = vset.pattern.permute.xlu0 %v5447_v51 }
0x1bb8   :  { %v5379_v42 = vpop.eup %5378  ;;  %v3361_v47 = vadd.f32 1e-05, %v3353_v28  ;;  %v3346_v23 = vsub.f32 %v3330_v48, %v3338_v25  ;;  %3456 = vperm.xlu0 %5046, %v6831_v49  }
0x1bb9   :  { %v3382_v44 = vmul.f32 %v6791_v46, %v5379_v42 }
0x1bba   :  { %5384 = vrsqrt.f32 %v3361_v47  ;;  %v3354_v58 = vmax.f32 %v3346_v23, 0.0 }
0x1bbb   :  { %3404 = vperm.xlu1 %5044, %v3382_v44  }
0x1bbc   :  { %v5381_v5 = vpop.eup %5380  ;;  %v3362_v22 = vadd.f32 1e-05, %v3354_v58  ;;  %5047 = vset.pattern.permute.xlu0 %v5448_v55 }
0x1bbd   :  { %v3383_v19 = vmul.f32 %v6842_v60, %v5381_v5  ;;  %v3437_v60 = vpop.permute.xlu1 %3436 }
0x1bbe   :  { %5386 = vrsqrt.f32 %v3362_v22 }
0x1bbf   :  { %3409 = vperm.xlu1 %5044, %v3383_v19  }
0x1bc0   :  { %v5383_v15 = vpop.eup %5382 }
0x1bc1   :  { %v3384_v61 = vmul.f32 %v6831_v49, %v5383_v15  ;;  %v3441_v55 = vpop.permute.xlu1 %3440 }
0x1bc3   :  { %3414 = vperm.xlu0 %5047, %v3384_v61  }
0x1bc4   :  { %v5385_v31 = vpop.eup %5384 }
0x1bc5   :  { %v3385_v10 = vmul.f32 %v6852_v11, %v5385_v31  ;;  %v3445_v49 = vpop.permute.xlu1 %3444 }
0x1bc7   :  { %3419 = vperm.xlu1 %5044, %v3385_v10   ;;  %5048 = vset.pattern.permute.xlu0 %v5447_v51 }
0x1bc8   :  { %v5387_v46 = vpop.eup %5386  ;;  %3460 = vperm.xlu0 %5048, %v6852_v11   ;;  %v3372_v11 = vsub.f32 %v6952_v2, %v7035_v56 }
0x1bc9   :  { %v3386_v12 = vmul.f32 %v6858_v33, %v5387_v46  ;;  %v3449_v7 = vpop.permute.xlu1 %3448 }
0x1bcb   :  { %3424 = vperm.xlu1 %5044, %v3386_v12  }
0x1bcd   :  { %v3453_v6 = vpop.permute.xlu1 %3452 }
0x1bcf   :  { %5049 = vset.pattern.permute.xlu1 %v5447_v51 }
0x1bd0   :  { %3464 = vperm.xlu1 %5049, %v6858_v33   ;;  %v3373_v33 = vsub.f32 %v6966_v57, %v7039_v8 }
0x1c2e   :  { %v3390_v43 = vpop.permute.xlu1 %3389 }
0x1c2f   :  { %v3427_v40 = vmul.f32 %v3390_v43, %v3371_v18 }
0x1c31   :  { %v3467_v39 = vadd.f32 %v3437_v60, %v3427_v40 }
0x1c32   :  { %v3395_v24 = vpop.permute.xlu0 %3394 }
0x1c33   :  { %v3475_v4 = vadd.f32 %v3467_v39, %v6570_v13  ;;  %v3428_v51 = vmul.f32 %v3395_v24, %v3372_v11  ;;  %v5249_v11 = vld [vmem:[%s7356_s3 + $0xc] ss:$16 sps:$4 sm:$0xff]  }
0x1c34   :  { %4028 = vmatprep.mubr.bf16.mxu0 %v5249_v11 }
0x1c35   :  { %v3468_v1 = vadd.f32 %v3441_v55, %v3428_v51  ;;  %v3483_v9 = vmax.f32 %v3475_v4, 0.0 }
0x1c36   :  { %v3400_v14 = vpop.permute.xlu1 %3399 }
0x1c37   :  { %v3476_v17 = vadd.f32 %v3468_v1, %v6573_v36  ;;  %v3429_v34 = vmul.f32 %v3400_v14, %v3373_v33  ;;  %v7089_v2 = vmul.f32 %v3483_v9, %v6075_v35  ;;  %v3457_v8 = vpop.permute.xlu0 %3456  ;;  %v3375_v36 = vsub.f32 %v6986_v0, %v7047_v27 }
0x1c38   :  { %v3376_v0 = vsub.f32 %v6991_v3, %v7051_v59  ;;  %v3377_v3 = vsub.f32 %v7006_v20, %v7056_v16 }
0x1c39   :  { %v3484_v63 = vmax.f32 %v3476_v17, 0.0  ;;  %v3469_v21 = vadd.f32 %v3445_v49, %v3429_v34 }
0x1c3a   :  { %v3405_v37 = vpop.permute.xlu1 %3404 }
0x1c3b   :  { %v7092_v13 = vmul.f32 %v3484_v63, %v6075_v35  ;;  %v3477_v56 = vadd.f32 %v3469_v21, %v6592_v50  ;;  %v3430_v57 = vmul.f32 %v3405_v37, %v3374_v41 }
0x1c3d   :  { %v3485_v26 = vmax.f32 %v3477_v56, 0.0  ;;  %v3470_v25 = vadd.f32 %v3449_v7, %v3430_v57  ;;  %v5055_v28 = vpack.i.bf16 %v7092_v13, %v7089_v2  ;;  %v3707_v50 = vpack.c.bf16 %v7092_v13, %v7089_v2 }
0x1c3e   :  { %v3410_v45 = vpop.permute.xlu1 %3409 }
0x1c3f   :  { %v3478_v30 = vadd.f32 %v3470_v25, %v6595_v29  ;;  %v3431_v48 = vmul.f32 %v3410_v45, %v3375_v36  ;;  %5056 = vrot.lane.b32.xlu1 %v5055_v28, %s5449_s1  ;;  %5051 = vrot.lane.b32.xlu0 %v5055_v28, %s5426_s28  ;;  %v7107_v27 = vmul.f32 %v3485_v26, %v6075_v35 }
0x1c41   :  { %v3486_v42 = vmax.f32 %v3478_v30, 0.0  ;;  %v3471_v47 = vadd.f32 %v3453_v6, %v3431_v48 }
0x1c42   :  { %v3415_v23 = vpop.permute.xlu0 %3414 }
0x1c43   :  { %v7110_v29 = vmul.f32 %v3486_v42, %v6075_v35  ;;  %v3479_v44 = vadd.f32 %v3471_v47, %v6604_v53  ;;  %v3432_v58 = vmul.f32 %v3415_v23, %v3376_v0  ;;  %5071 = vrot.lane.b32.xlu1 %v5055_v28, %s5450_s9  ;;  %5061 = vrot.lane.b32.xlu0 %v5055_v28, %s5451_s17 }
0x1c45   :  { %v3472_v5 = vadd.f32 %v3457_v8, %v3432_v58  ;;  %v5085_v59 = vpack.i.bf16 %v7110_v29, %v7107_v27  ;;  %v3487_v19 = vmax.f32 %v3479_v44, 0.0  ;;  %v3708_v31 = vpack.c.bf16 %v7110_v29, %v7107_v27 }
0x1c46   :  { %v3420_v22 = vpop.permute.xlu1 %3419 }
0x1c47   :  { %v3480_v15 = vadd.f32 %v3472_v5, %v6607_v54  ;;  %v3433_v61 = vmul.f32 %v3420_v22, %v3377_v3  ;;  %5081 = vrot.lane.b32.xlu1 %v5055_v28, %s5452_s18  ;;  %5066 = vrot.lane.b32.xlu0 %v5055_v28, %s5453_s19  ;;  %v3461_v53 = vpop.permute.xlu0 %3460  ;;  %v7125_v46 = vmul.f32 %v3487_v19, %v6075_v35 }
0x1c48   :  { %v3378_v54 = vsub.f32 %v7011_v38, %v7061_v62 }
0x1c49   :  { %v3488_v10 = vmax.f32 %v3480_v15, 0.0  ;;  %v3473_v20 = vadd.f32 %v3461_v53, %v3433_v61 }
0x1c4a   :  { %v3425_v16 = vpop.permute.xlu1 %3424 }
0x1c4b   :  { %v7128_v12 = vmul.f32 %v3488_v10, %v6075_v35  ;;  %5076 = vrot.lane.b32.xlu0 %v5055_v28, %s5424_s24  ;;  %5086 = vrot.lane.b32.xlu1 %v5085_v59, %s5426_s28  ;;  %v3481_v60 = vadd.f32 %v3473_v20, %v6632_v52  ;;  %v3434_v55 = vmul.f32 %v3425_v16, %v3378_v54 }
0x1c4d   :  { %v5115_v49 = vpack.i.bf16 %v7128_v12, %v7125_v46  ;;  %v3709_v6 = vpack.c.bf16 %v7128_v12, %v7125_v46  ;;  %v3489_v38 = vmax.f32 %v3481_v60, 0.0 }
0x1c4f   :  { %5091 = vrot.lane.b32.xlu0 %v5085_v59, %s5449_s1  ;;  %5096 = vrot.lane.b32.xlu1 %v5085_v59, %s5451_s17  ;;  %v3465_v7 = vpop.permute.xlu1 %3464  ;;  %v7145_v43 = vmul.f32 %v3489_v38, %v6075_v35 }
0x1c50   :  { %v3474_v18 = vadd.f32 %v3465_v7, %v3434_v55 }
0x1c52   :  { %v3482_v62 = vadd.f32 %v3474_v18, %v6635_v32 }
0x1c53   :  { %5101 = vrot.lane.b32.xlu0 %v5085_v59, %s5453_s19  ;;  %5106 = vrot.lane.b32.xlu1 %v5085_v59, %s5450_s9 }
0x1c54   :  { %v3490_v52 = vmax.f32 %v3482_v62, 0.0 }
0x1c56   :  { %v7148_v40 = vmul.f32 %v3490_v52, %v6075_v35  ;;  %v5246_v35 = vld [vmem:[%s7356_s3 + $0x4] ss:$16 sps:$4 sm:$0xff]  }
0x1c57   :  { %5116 = vrot.lane.b32.xlu1 %v5115_v49, %s5449_s1  ;;  %5111 = vrot.lane.b32.xlu0 %v5115_v49, %s5426_s28 }
0x1c58   :  { %v5125_v39 = vpack.i.bf16 %v7148_v40, %v7145_v43  ;;  %v3710_v32 = vpack.c.bf16 %v7148_v40, %v7145_v43  ;;  %3931 = vmatprep.mubr.bf16.mxu1 %v5246_v35 }
0x1c5b   :  { %5121 = vrot.lane.b32.xlu0 %v5115_v49, %s5451_s17  ;;  %5126 = vrot.lane.b32.xlu1 %v5125_v39, %s5426_s28 }
0x1c5f   :  { %5131 = vrot.lane.b32.xlu0 %v5125_v39, %s5449_s1  ;;  %5141 = vrot.lane.b32.xlu1 %v5085_v59, %s5452_s18 }
0x1c63   :  { %5136 = vrot.lane.b32.xlu0 %v5085_v59, %s5424_s24  ;;  %5151 = vrot.lane.b32.xlu1 %v5125_v39, %s5451_s17 }
0x1c67   :  { %5146 = vrot.lane.b32.xlu0 %v5115_v49, %s5453_s19  ;;  %5156 = vrot.lane.b32.xlu1 %v5115_v49, %s5450_s9 }
0x1c6b   :  { %5161 = vrot.lane.b32.xlu0 %v5115_v49, %s5424_s24  ;;  %5166 = vrot.lane.b32.xlu1 %v5115_v49, %s5452_s18 }
0x1c6f   :  { %5171 = vrot.lane.b32.xlu0 %v5125_v39, %s5453_s19  ;;  %5176 = vrot.lane.b32.xlu1 %v5125_v39, %s5450_s9 }
0x1c73   :  { %5181 = vrot.lane.b32.xlu0 %v5125_v39, %s5424_s24  ;;  %5186 = vrot.lane.b32.xlu1 %v5125_v39, %s5452_s18 }
0x1cb1   :  { %v5052_v24 = vpop.permute.xlu0 %5051  ;;  %v5057_v4 = vpop.permute.xlu1 %5056 }
0x1cb2   :  { %v5054_v51 = vunpack.i.h.bf16 %v5052_v24  ;;  %v5053_v1 = vunpack.i.l.bf16 %v5052_v24  ;;  %v5059_v33 = vunpack.i.h.bf16 %v5057_v4  ;;  %v5058_v14 = vunpack.i.l.bf16 %v5057_v4 }
0x1cb4   :  { %v3715_v9 = vpack.c.bf16 %v5054_v51, %v5053_v1  ;;  %v3731_v17 = vpack.c.bf16 %v5059_v33, %v5058_v14 }
0x1cb5   :  { %v5062_v34 = vpop.permute.xlu0 %5061  ;;  %v7176_v63 = vpop.permute.xlu1 %5071 }
0x1cb6   :  { %v5064_v21 = vunpack.i.h.bf16 %v5062_v34  ;;  %v5063_v41 = vunpack.i.l.bf16 %v5062_v34  ;;  %4454 = vmatprep.subr.bf16.mxu1 %v3715_v9  ;;  %4518 = vmatprep.subr.bf16.mxu0 %v3731_v17  ;;  %v5074_v46 = vunpack.i.h.bf16 %v7176_v63  ;;  %v5073_v12 = vunpack.i.l.bf16 %v7176_v63 }
0x1cb7   :  { %4455 = vmatpush3.bf16.msra.mxu1 %v3707_v50 }
0x1cb8   :  { %v3723_v37 = vpack.c.bf16 %v5064_v21, %v5063_v41  ;;  %v3735_v34 = vpack.c.bf16 %v5074_v46, %v5073_v12  ;;  %v5262_v46 = vld [vmem:[%s7356_s3 + $0x64] ss:$16 sps:$4 sm:$0xff]   ;;  %v5264_v12 = vld [vmem:[%s7356_s3 + $0x6c] ss:$16 sps:$4 sm:$0xff]  }
0x1cb9   :  { %v5067_v56 = vpop.permute.xlu0 %5066  ;;  %v7181_v57 = vpop.permute.xlu1 %5081 }
0x1cba   :  { %4519 = vmatpush3.bf16.msra.mxu0 %v3723_v37  ;;  %v5069_v61 = vunpack.i.h.bf16 %v5067_v56  ;;  %v5068_v53 = vunpack.i.l.bf16 %v5067_v56  ;;  %v5084_v17 = vunpack.i.h.bf16 %v7181_v57  ;;  %v5083_v43 = vunpack.i.l.bf16 %v7181_v57 }
0x1cbc   :  { %v3719_v52 = vpack.c.bf16 %v5069_v61, %v5068_v53 }
0x1cbd   :  { %v5077_v8 = vpop.permute.xlu0 %5076  ;;  %v5087_v36 = vpop.permute.xlu1 %5086 }
0x1cbe   :  { %v5089_v26 = vunpack.i.h.bf16 %v5087_v36  ;;  %v5088_v25 = vunpack.i.l.bf16 %v5087_v36  ;;  %v5079_v55 = vunpack.i.h.bf16 %v5077_v8  ;;  %v5078_v49 = vunpack.i.l.bf16 %v5077_v8 }
0x1cbf   :  { %v3727_v36 = vpack.c.bf16 %v5084_v17, %v5083_v43  ;;  %v5278_v17 = vld [vmem:[%s7356_s3 + $0xa0] ss:$16 sps:$4 sm:$0xff]   ;;  %v5279_v43 = vld [vmem:[%s7356_s3 + $0xa8] ss:$16 sps:$4 sm:$0xff]  }
0x1cc0   :  { %v3716_v28 = vpack.c.bf16 %v5089_v26, %v5088_v25 }
0x1cc1   :  { %v5092_v45 = vpop.permute.xlu0 %5091  ;;  %v5097_v30 = vpop.permute.xlu1 %5096 }
0x1cc2   :  { %v5094_v48 = vunpack.i.h.bf16 %v5092_v45  ;;  %v5093_v42 = vunpack.i.l.bf16 %v5092_v45  ;;  %v5099_v47 = vunpack.i.h.bf16 %v5097_v30  ;;  %v5098_v0 = vunpack.i.l.bf16 %v5097_v30  ;;  %4456 = vmatprep.subr.bf16.mxu1 %v3716_v28 }
0x1cc3   :  { %4457 = vmatpush3.bf16.msra.mxu1 %v3708_v31 }
0x1cc4   :  { %v3732_v2 = vpack.c.bf16 %v5094_v48, %v5093_v42  ;;  %v3724_v13 = vpack.c.bf16 %v5099_v47, %v5098_v0 }
0x1cc5   :  { %v5102_v50 = vpop.permute.xlu0 %5101  ;;  %v7186_v23 = vpop.permute.xlu1 %5106 }
0x1cc6   :  { %4520 = vmatprep.subr.bf16.mxu0 %v3732_v2  ;;  %v5104_v7 = vunpack.i.h.bf16 %v5102_v50  ;;  %v5103_v18 = vunpack.i.l.bf16 %v5102_v50  ;;  %v5109_v63 = vunpack.i.h.bf16 %v7186_v23  ;;  %v5108_v21 = vunpack.i.l.bf16 %v7186_v23 }
0x1cc7   :  { %4521 = vmatpush3.bf16.msra.mxu0 %v3724_v13 }
0x1cc8   :  { %v3720_v24 = vpack.c.bf16 %v5104_v7, %v5103_v18  ;;  %v3736_v57 = vpack.c.bf16 %v5109_v63, %v5108_v21  ;;  %v5250_v7 = vld [vmem:[%s7356_s3 + $0x24] ss:$16 sps:$4 sm:$0xff]   ;;  %v5252_v18 = vld [vmem:[%s7356_s3 + $0x2c] ss:$16 sps:$4 sm:$0xff]   ;;  %v5285_v63 = vld [vmem:[%s7356_s3 + $0xc8] ss:$16 sps:$4 sm:$0xff]  }
0x1cc9   :  { %v5112_v44 = vpop.permute.xlu0 %5111  ;;  %v5117_v58 = vpop.permute.xlu1 %5116  ;;  %v5286_v21 = vld [vmem:[%s7356_s3 + $0xe4] ss:$16 sps:$4 sm:$0xff]  }
0x1cca   :  { %v5114_v5 = vunpack.i.h.bf16 %v5112_v44  ;;  %v5113_v3 = vunpack.i.l.bf16 %v5112_v44  ;;  %v5119_v59 = vunpack.i.h.bf16 %v5117_v58  ;;  %v5118_v22 = vunpack.i.l.bf16 %v5117_v58 }
0x1ccc   :  { %v3717_v19 = vpack.c.bf16 %v5114_v5, %v5113_v3  ;;  %v3733_v15 = vpack.c.bf16 %v5119_v59, %v5118_v22 }
0x1ccd   :  { %v5122_v10 = vpop.permute.xlu0 %5121  ;;  %v5127_v27 = vpop.permute.xlu1 %5126 }
0x1cce   :  { %v5124_v29 = vunpack.i.h.bf16 %v5122_v10  ;;  %v5123_v31 = vunpack.i.l.bf16 %v5122_v10  ;;  %v5129_v20 = vunpack.i.h.bf16 %v5127_v27  ;;  %v5128_v16 = vunpack.i.l.bf16 %v5127_v27  ;;  %4458 = vmatprep.subr.bf16.mxu1 %v3717_v19  ;;  %4522 = vmatprep.subr.bf16.mxu0 %v3733_v15 }
0x1ccf   :  { %4459 = vmatpush3.bf16.msra.mxu1 %v3709_v6  ;;  %v3711_v6 = vpack.c.bf16 %v5079_v55, %v5078_v49  ;;  %v5244_v55 = vld [vmem:[%s7356_s3] ss:$16 sps:$4 sm:$0xff]   ;;  %v5247_v49 = vld [vmem:[%s7356_s3 + $0x8] ss:$16 sps:$4 sm:$0xff]  }
0x1cd0   :  { %v3725_v54 = vpack.c.bf16 %v5124_v29, %v5123_v31  ;;  %v3718_v60 = vpack.c.bf16 %v5129_v20, %v5128_v16 }
0x1cd1   :  { %v5132_v38 = vpop.permute.xlu0 %5131  ;;  %v5142_v62 = vpop.permute.xlu1 %5141 }
0x1cd2   :  { %v5134_v39 = vunpack.i.h.bf16 %v5132_v38  ;;  %v5133_v35 = vunpack.i.l.bf16 %v5132_v38  ;;  %4460 = vmatprep.subr.bf16.mxu1 %v3718_v60  ;;  %4523 = vmatpush3.bf16.msra.mxu0 %v3725_v54  ;;  %v5144_v26 = vunpack.i.h.bf16 %v5142_v62  ;;  %v5143_v25 = vunpack.i.l.bf16 %v5142_v62  ;;  %v5254_v38 = vld [vmem:[%s7356_s3 + $0x20] ss:$16 sps:$4 sm:$0xff]   ;;  %v5255_v62 = vld [vmem:[%s7356_s3 + $0x28] ss:$16 sps:$4 sm:$0xff]  }
0x1cd3   :  { %4461 = vmatpush3.bf16.msra.mxu1 %v3710_v32 }
0x1cd4   :  { %v3734_v11 = vpack.c.bf16 %v5134_v39, %v5133_v35  ;;  %4462 = vmatprep.subr.bf16.mxu1 %v3719_v52  ;;  %v3728_v2 = vpack.c.bf16 %v5144_v26, %v5143_v25  ;;  %v5256_v52 = vld [vmem:[%s7356_s3 + $0x44] ss:$16 sps:$4 sm:$0xff]   ;;  %v5258_v39 = vld [vmem:[%s7356_s3 + $0x4c] ss:$16 sps:$4 sm:$0xff]   ;;  %v5260_v35 = vld [vmem:[%s7356_s3 + $0x40] ss:$16 sps:$4 sm:$0xff]  }
0x1cd5   :  { %v5137_v4 = vpop.permute.xlu0 %5136  ;;  %v5152_v51 = vpop.permute.xlu1 %5151 }
0x1cd6   :  { %v5139_v1 = vunpack.i.h.bf16 %v5137_v4  ;;  %v5138_v33 = vunpack.i.l.bf16 %v5137_v4  ;;  %v5154_v14 = vunpack.i.h.bf16 %v5152_v51  ;;  %v5153_v9 = vunpack.i.l.bf16 %v5152_v51  ;;  %4524 = vmatprep.subr.bf16.mxu0 %v3734_v11  ;;  %v5261_v11 = vld [vmem:[%s7356_s3 + $0x48] ss:$16 sps:$4 sm:$0xff]   ;;  %v5268_v4 = vld [vmem:[%s7356_s3 + $0x84] ss:$16 sps:$4 sm:$0xff]   ;;  %v5270_v51 = vld [vmem:[%s7356_s3 + $0x8c] ss:$16 sps:$4 sm:$0xff]  }
0x1cd7   :  { %4463 = vmatpush3.bf16.msra.mxu1 %v3711_v6  ;;  %v5266_v6 = vld [vmem:[%s7356_s3 + $0x60] ss:$16 sps:$4 sm:$0xff]  }
0x1cd8   :  { %v3712_v40 = vpack.c.bf16 %v5139_v1, %v5138_v33  ;;  %v3726_v32 = vpack.c.bf16 %v5154_v14, %v5153_v9  ;;  %4464 = vmatprep.subr.bf16.mxu1 %v3720_v24  ;;  %v5267_v24 = vld [vmem:[%s7356_s3 + $0x68] ss:$16 sps:$4 sm:$0xff]   ;;  %v5272_v1 = vld [vmem:[%s7356_s3 + $0x80] ss:$16 sps:$4 sm:$0xff]   ;;  %v5274_v14 = vld [vmem:[%s7356_s3 + $0xa4] ss:$16 sps:$4 sm:$0xff]  }
0x1cd9   :  { %v5147_v41 = vpop.permute.xlu0 %5146  ;;  %v5157_v37 = vpop.permute.xlu1 %5156  ;;  %v5273_v33 = vld [vmem:[%s7356_s3 + $0x88] ss:$16 sps:$4 sm:$0xff]   ;;  %v5276_v9 = vld [vmem:[%s7356_s3 + $0xac] ss:$16 sps:$4 sm:$0xff]  }
0x1cda   :  { %v5149_v56 = vunpack.i.h.bf16 %v5147_v41  ;;  %v5148_v8 = vunpack.i.l.bf16 %v5147_v41  ;;  %4525 = vmatpush3.bf16.msra.mxu0 %v3726_v32  ;;  %v5159_v45 = vunpack.i.h.bf16 %v5157_v37  ;;  %v5158_v30 = vunpack.i.l.bf16 %v5157_v37  ;;  %v5282_v32 = vld [vmem:[%s7356_s3 + $0xcc] ss:$16 sps:$4 sm:$0xff]   ;;  %v5290_v37 = vld [vmem:[%s7356_s3 + $0xe0] ss:$16 sps:$4 sm:$0xff]  }
0x1cdb   :  { %4465 = vmatpush3.bf16.msra.mxu1 %v3712_v40  ;;  %4526 = vmatprep.subr.bf16.mxu0 %v3735_v34  ;;  %v5280_v40 = vld [vmem:[%s7356_s3 + $0xc4] ss:$16 sps:$4 sm:$0xff]   ;;  %v5284_v34 = vld [vmem:[%s7356_s3 + $0xc0] ss:$16 sps:$4 sm:$0xff]   ;;  %v5288_v41 = vld [vmem:[%s7356_s3 + $0xec] ss:$16 sps:$4 sm:$0xff]  }
0x1cdc   :  { %v3721_v28 = vpack.c.bf16 %v5149_v56, %v5148_v8  ;;  %v3737_v44 = vpack.c.bf16 %v5159_v45, %v5158_v30  ;;  %v5291_v56 = vld [vmem:[%s7356_s3 + $0xe8] ss:$16 sps:$4 sm:$0xff]  }
0x1cdd   :  { %v5162_v48 = vpop.permute.xlu0 %5161  ;;  %v5167_v42 = vpop.permute.xlu1 %5166 }
0x1cde   :  { %v5164_v47 = vunpack.i.h.bf16 %v5162_v48  ;;  %v5163_v0 = vunpack.i.l.bf16 %v5162_v48  ;;  %4466 = vmatprep.subr.bf16.mxu1 %v3721_v28  ;;  %4527 = vmatpush3.bf16.msra.mxu0 %v3727_v36  ;;  %v5169_v50 = vunpack.i.h.bf16 %v5167_v42  ;;  %v5168_v23 = vunpack.i.l.bf16 %v5167_v42 }
0x1cdf   :  { %4528 = vmatprep.subr.bf16.mxu0 %v3736_v57 }
0x1ce0   :  { %v3713_v13 = vpack.c.bf16 %v5164_v47, %v5163_v0  ;;  %v3729_v15 = vpack.c.bf16 %v5169_v50, %v5168_v23 }
0x1ce1   :  { %v5172_v58 = vpop.permute.xlu0 %5171  ;;  %v5177_v5 = vpop.permute.xlu1 %5176 }
0x1ce2   :  { %v5174_v3 = vunpack.i.h.bf16 %v5172_v58  ;;  %v5173_v59 = vunpack.i.l.bf16 %v5172_v58  ;;  %v5179_v22 = vunpack.i.h.bf16 %v5177_v5  ;;  %v5178_v19 = vunpack.i.l.bf16 %v5177_v5  ;;  %4467 = vmatpush3.bf16.msra.mxu1 %v3713_v13  ;;  %4529 = vmatpush3.bf16.msra.mxu0 %v3728_v2 }
0x1ce3   :  { %4530 = vmatprep.subr.bf16.mxu0 %v3737_v44 }
0x1ce4   :  { %v3722_v61 = vpack.c.bf16 %v5174_v3, %v5173_v59  ;;  %v3738_v53 = vpack.c.bf16 %v5179_v22, %v5178_v19 }
0x1ce5   :  { %v5182_v10 = vpop.permute.xlu0 %5181  ;;  %v5187_v27 = vpop.permute.xlu1 %5186 }
0x1ce6   :  { %v5184_v29 = vunpack.i.h.bf16 %v5182_v10  ;;  %v5183_v31 = vunpack.i.l.bf16 %v5182_v10  ;;  %v5189_v20 = vunpack.i.h.bf16 %v5187_v27  ;;  %v5188_v16 = vunpack.i.l.bf16 %v5187_v27  ;;  %4468 = vmatprep.subr.bf16.mxu1 %v3722_v61  ;;  %4531 = vmatpush3.bf16.msra.mxu0 %v3729_v15 }
0x1ce7   :  { %4532 = vmatprep.subr.bf16.mxu0 %v3738_v53 }
0x1ce8   :  { %v3714_v54 = vpack.c.bf16 %v5184_v29, %v5183_v31  ;;  %v3730_v60 = vpack.c.bf16 %v5189_v20, %v5188_v16 }
0x1cea   :  { %4469 = vmatpush3.bf16.msra.mxu1 %v3714_v54  ;;  %4533 = vmatpush3.bf16.msra.mxu0 %v3730_v60 }
0x1ced   :  { %3932 = vmatmul.mubr.bf16.vlgmr.msra.gmra.mrb[44].mxu1 %v5244_v55  ;;  %4029 = vmatmul.mubr.bf16.vlgmr.msra.gmra.mrb[44].mxu0 %v5247_v49 }
0x1cee   :  { %3939 = vmatprep.mubr.bf16.mxu1 %v5250_v7  ;;  %4036 = vmatprep.mubr.bf16.mxu0 %v5252_v18 }
0x1cf5   :  { %3940 = vmatmul.mubr.bf16.gmra.mrb[48].mxu1 %v5254_v38  ;;  %4037 = vmatmul.mubr.bf16.gmra.mrb[48].mxu0 %v5255_v62 }
0x1cf6   :  { %3947 = vmatprep.mubr.bf16.mxu1 %v5256_v52  ;;  %4044 = vmatprep.mubr.bf16.mxu0 %v5258_v39 }
0x1cfd   :  { %3948 = vmatmul.mubr.bf16.gmra.mrb[52].mxu1 %v5260_v35  ;;  %4045 = vmatmul.mubr.bf16.gmra.mrb[52].mxu0 %v5261_v11 }
0x1cfe   :  { %3955 = vmatprep.mubr.bf16.mxu1 %v5262_v46  ;;  %4052 = vmatprep.mubr.bf16.mxu0 %v5264_v12 }
0x1d05   :  { %3956 = vmatmul.mubr.bf16.gmra.mrb[56].mxu1 %v5266_v6  ;;  %4053 = vmatmul.mubr.bf16.gmra.mrb[56].mxu0 %v5267_v24 }
0x1d06   :  { %3963 = vmatprep.mubr.bf16.mxu1 %v5268_v4  ;;  %4060 = vmatprep.mubr.bf16.mxu0 %v5270_v51 }
0x1d0d   :  { %3964 = vmatmul.mubr.bf16.gmra.mrb[60].mxu1 %v5272_v1  ;;  %4061 = vmatmul.mubr.bf16.gmra.mrb[60].mxu0 %v5273_v33 }
0x1d0e   :  { %3971 = vmatprep.mubr.bf16.mxu1 %v5274_v14  ;;  %4068 = vmatprep.mubr.bf16.mxu0 %v5276_v9 }
0x1d15   :  { %3972 = vmatmul.mubr.bf16.gmra.mrb[64].mxu1 %v5278_v17  ;;  %4069 = vmatmul.mubr.bf16.gmra.mrb[64].mxu0 %v5279_v43 }
0x1d16   :  { %3979 = vmatprep.mubr.bf16.mxu1 %v5280_v40  ;;  %4076 = vmatprep.mubr.bf16.mxu0 %v5282_v32 }
0x1d1d   :  { %3980 = vmatmul.mubr.bf16.gmra.mrb[68].mxu1 %v5284_v34  ;;  %4077 = vmatmul.mubr.bf16.gmra.mrb[68].mxu0 %v5285_v63 }
0x1d1e   :  { %3987 = vmatprep.mubr.bf16.mxu1 %v5286_v21  ;;  %4084 = vmatprep.mubr.bf16.mxu0 %v5288_v41 }
0x1d25   :  { %3988 = vmatmul.mubr.bf16.gmra.mrb[72].mxu1 %v5290_v37  ;;  %4085 = vmatmul.mubr.bf16.gmra.mrb[72].mxu0 %v5291_v56 }
0x1dc0   :  { %v4470_v8 = vpop.f32.mrb[44].mxu1  ;;  %v4534_v36 = vpop.f32.mrb[44].mxu0 }
0x1dc1   :  { %v4471_v26 = vpop.f32.mrb[45].mxu1  ;;  %v4535_v25 = vpop.f32.mrb[45].mxu0 }
0x1dc2   :  { %v4472_v28 = vadd.f32 %v4471_v26, %v4470_v8  ;;  %v4536_v57 = vadd.f32 %v4535_v25, %v4534_v36  ;;  %v4473_v45 = vpop.f32.mrb[46].mxu1  ;;  %v4537_v30 = vpop.f32.mrb[46].mxu0 }
0x1dc3   :  { %v4474_v48 = vpop.f32.mrb[47].mxu1  ;;  %v4538_v42 = vpop.f32.mrb[47].mxu0 }
0x1dc4   :  { %v4031_v47 = vadd.f32 %v4536_v57, %v4472_v28  ;;  %v4475_v0 = vadd.f32 %v4474_v48, %v4473_v45  ;;  %v4539_v2 = vadd.f32 %v4538_v42, %v4537_v30 }
0x1dc6   :  { %v4034_v13 = vadd.f32 %v4539_v2, %v4475_v0  ;;  %4157 = vrot.lane.b32.xlu1 %v4031_v47, %s5454_s29  ;;  %4109 = vrot.lane.b32.xlu0 %v4031_v47, %s5424_s24 }
0x1dc8   :  { %v4476_v50 = vpop.f32.mrb[48].mxu1  ;;  %v4540_v23 = vpop.f32.mrb[48].mxu0 }
0x1dc9   :  { %v4477_v44 = vpop.f32.mrb[49].mxu1  ;;  %v4541_v58 = vpop.f32.mrb[49].mxu0 }
0x1dca   :  { %v4478_v5 = vadd.f32 %v4477_v44, %v4476_v50  ;;  %v4542_v3 = vadd.f32 %v4541_v58, %v4540_v23  ;;  %v4479_v59 = vpop.f32.mrb[50].mxu1  ;;  %v4543_v22 = vpop.f32.mrb[50].mxu0  ;;  %4159 = vrot.lane.b32.xlu1 %v4034_v13, %s5454_s29  ;;  %4111 = vrot.lane.b32.xlu0 %v4034_v13, %s5424_s24 }
0x1dcb   :  { %v4480_v19 = vpop.f32.mrb[51].mxu1  ;;  %v4544_v15 = vpop.f32.mrb[51].mxu0 }
0x1dcc   :  { %v4039_v61 = vadd.f32 %v4542_v3, %v4478_v5  ;;  %v4481_v53 = vadd.f32 %v4480_v19, %v4479_v59  ;;  %v4545_v10 = vadd.f32 %v4544_v15, %v4543_v22 }
0x1dce   :  { %v4042_v27 = vadd.f32 %v4545_v10, %v4481_v53  ;;  %4161 = vrot.lane.b32.xlu1 %v4039_v61, %s5454_s29  ;;  %4113 = vrot.lane.b32.xlu0 %v4039_v61, %s5424_s24 }
0x1dd0   :  { %v4482_v29 = vpop.f32.mrb[52].mxu1  ;;  %v4546_v31 = vpop.f32.mrb[52].mxu0 }
0x1dd1   :  { %v4483_v20 = vpop.f32.mrb[53].mxu1  ;;  %v4547_v16 = vpop.f32.mrb[53].mxu0 }
0x1dd2   :  { %v4484_v54 = vadd.f32 %v4483_v20, %v4482_v29  ;;  %v4548_v60 = vadd.f32 %v4547_v16, %v4546_v31  ;;  %v4485_v55 = vpop.f32.mrb[54].mxu1  ;;  %v4549_v49 = vpop.f32.mrb[54].mxu0  ;;  %4163 = vrot.lane.b32.xlu1 %v4042_v27, %s5454_s29  ;;  %4115 = vrot.lane.b32.xlu0 %v4042_v27, %s5424_s24 }
0x1dd3   :  { %v4486_v7 = vpop.f32.mrb[55].mxu1  ;;  %v4550_v18 = vpop.f32.mrb[55].mxu0 }
0x1dd4   :  { %v4047_v38 = vadd.f32 %v4548_v60, %v4484_v54  ;;  %v4487_v62 = vadd.f32 %v4486_v7, %v4485_v55  ;;  %v4551_v52 = vadd.f32 %v4550_v18, %v4549_v49 }
0x1dd6   :  { %v4050_v39 = vadd.f32 %v4551_v52, %v4487_v62  ;;  %4165 = vrot.lane.b32.xlu1 %v4047_v38, %s5454_s29  ;;  %4117 = vrot.lane.b32.xlu0 %v4047_v38, %s5424_s24 }
0x1dd8   :  { %v4488_v35 = vpop.f32.mrb[56].mxu1  ;;  %v4552_v11 = vpop.f32.mrb[56].mxu0 }
0x1dd9   :  { %v4489_v46 = vpop.f32.mrb[57].mxu1  ;;  %v4553_v12 = vpop.f32.mrb[57].mxu0 }
0x1dda   :  { %v4490_v6 = vadd.f32 %v4489_v46, %v4488_v35  ;;  %v4554_v24 = vadd.f32 %v4553_v12, %v4552_v11  ;;  %v4491_v4 = vpop.f32.mrb[58].mxu1  ;;  %v4555_v51 = vpop.f32.mrb[58].mxu0  ;;  %4167 = vrot.lane.b32.xlu1 %v4050_v39, %s5454_s29  ;;  %4119 = vrot.lane.b32.xlu0 %v4050_v39, %s5424_s24 }
0x1ddb   :  { %v4492_v1 = vpop.f32.mrb[59].mxu1  ;;  %v4556_v33 = vpop.f32.mrb[59].mxu0 }
0x1ddc   :  { %v4055_v14 = vadd.f32 %v4554_v24, %v4490_v6  ;;  %v4493_v9 = vadd.f32 %v4492_v1, %v4491_v4  ;;  %v4557_v17 = vadd.f32 %v4556_v33, %v4555_v51 }
0x1dde   :  { %v4058_v43 = vadd.f32 %v4557_v17, %v4493_v9  ;;  %4169 = vrot.lane.b32.xlu1 %v4055_v14, %s5454_s29  ;;  %4121 = vrot.lane.b32.xlu0 %v4055_v14, %s5424_s24 }
0x1de0   :  { %v4494_v40 = vpop.f32.mrb[60].mxu1  ;;  %v4558_v32 = vpop.f32.mrb[60].mxu0 }
0x1de1   :  { %v4495_v34 = vpop.f32.mrb[61].mxu1  ;;  %v4559_v63 = vpop.f32.mrb[61].mxu0 }
0x1de2   :  { %v4496_v21 = vadd.f32 %v4495_v34, %v4494_v40  ;;  %v4560_v41 = vadd.f32 %v4559_v63, %v4558_v32  ;;  %v4497_v37 = vpop.f32.mrb[62].mxu1  ;;  %v4561_v56 = vpop.f32.mrb[62].mxu0  ;;  %4171 = vrot.lane.b32.xlu1 %v4058_v43, %s5454_s29  ;;  %4123 = vrot.lane.b32.xlu0 %v4058_v43, %s5424_s24 }
0x1de3   :  { %v4498_v8 = vpop.f32.mrb[63].mxu1  ;;  %v4562_v36 = vpop.f32.mrb[63].mxu0 }
0x1de4   :  { %v4063_v26 = vadd.f32 %v4560_v41, %v4496_v21  ;;  %v4499_v25 = vadd.f32 %v4498_v8, %v4497_v37  ;;  %v4563_v28 = vadd.f32 %v4562_v36, %v4561_v56 }
0x1de6   :  { %v4066_v57 = vadd.f32 %v4563_v28, %v4499_v25  ;;  %4173 = vrot.lane.b32.xlu1 %v4063_v26, %s5454_s29  ;;  %4125 = vrot.lane.b32.xlu0 %v4063_v26, %s5424_s24 }
0x1de8   :  { %v4500_v45 = vpop.f32.mrb[64].mxu1  ;;  %v4564_v30 = vpop.f32.mrb[64].mxu0 }
0x1de9   :  { %v4501_v48 = vpop.f32.mrb[65].mxu1  ;;  %v4565_v42 = vpop.f32.mrb[65].mxu0 }
0x1dea   :  { %v4502_v47 = vadd.f32 %v4501_v48, %v4500_v45  ;;  %v4566_v0 = vadd.f32 %v4565_v42, %v4564_v30  ;;  %v4503_v2 = vpop.f32.mrb[66].mxu1  ;;  %v4567_v13 = vpop.f32.mrb[66].mxu0  ;;  %4175 = vrot.lane.b32.xlu1 %v4066_v57, %s5454_s29  ;;  %4127 = vrot.lane.b32.xlu0 %v4066_v57, %s5424_s24 }
0x1deb   :  { %v4504_v50 = vpop.f32.mrb[67].mxu1  ;;  %v4568_v23 = vpop.f32.mrb[67].mxu0 }
0x1dec   :  { %v4071_v44 = vadd.f32 %v4566_v0, %v4502_v47  ;;  %v4505_v58 = vadd.f32 %v4504_v50, %v4503_v2  ;;  %v4569_v5 = vadd.f32 %v4568_v23, %v4567_v13 }
0x1dee   :  { %v4074_v3 = vadd.f32 %v4569_v5, %v4505_v58  ;;  %4177 = vrot.lane.b32.xlu1 %v4071_v44, %s5454_s29  ;;  %4129 = vrot.lane.b32.xlu0 %v4071_v44, %s5424_s24 }
0x1df0   :  { %v4506_v59 = vpop.f32.mrb[68].mxu1  ;;  %v4570_v22 = vpop.f32.mrb[68].mxu0 }
0x1df1   :  { %v4507_v19 = vpop.f32.mrb[69].mxu1  ;;  %v4571_v15 = vpop.f32.mrb[69].mxu0 }
0x1df2   :  { %v4508_v61 = vadd.f32 %v4507_v19, %v4506_v59  ;;  %v4572_v53 = vadd.f32 %v4571_v15, %v4570_v22  ;;  %v4509_v10 = vpop.f32.mrb[70].mxu1  ;;  %v4573_v27 = vpop.f32.mrb[70].mxu0  ;;  %4179 = vrot.lane.b32.xlu1 %v4074_v3, %s5454_s29  ;;  %4131 = vrot.lane.b32.xlu0 %v4074_v3, %s5424_s24 }
0x1df3   :  { %v4510_v29 = vpop.f32.mrb[71].mxu1  ;;  %v4574_v31 = vpop.f32.mrb[71].mxu0 }
0x1df4   :  { %v4079_v20 = vadd.f32 %v4572_v53, %v4508_v61  ;;  %v4511_v16 = vadd.f32 %v4510_v29, %v4509_v10  ;;  %v4575_v54 = vadd.f32 %v4574_v31, %v4573_v27 }
0x1df6   :  { %v4082_v60 = vadd.f32 %v4575_v54, %v4511_v16  ;;  %4181 = vrot.lane.b32.xlu1 %v4079_v20, %s5454_s29  ;;  %4133 = vrot.lane.b32.xlu0 %v4079_v20, %s5424_s24  ;;  %v4387_v54 = vld [vmem:[%s7357_s4] ss:$0 sm:$0xff] }
0x1df8   :  { %v4512_v55 = vpop.f32.mrb[72].mxu1  ;;  %v4576_v49 = vpop.f32.mrb[72].mxu0 }
0x1df9   :  { %v4513_v7 = vpop.f32.mrb[73].mxu1  ;;  %v4577_v18 = vpop.f32.mrb[73].mxu0 }
0x1dfa   :  { %v4514_v38 = vadd.f32 %v4513_v7, %v4512_v55  ;;  %v4578_v62 = vadd.f32 %v4577_v18, %v4576_v49  ;;  %v4515_v52 = vpop.f32.mrb[74].mxu1  ;;  %v4579_v39 = vpop.f32.mrb[74].mxu0  ;;  %4183 = vrot.lane.b32.xlu1 %v4082_v60, %s5454_s29  ;;  %4135 = vrot.lane.b32.xlu0 %v4082_v60, %s5424_s24 }
0x1dfb   :  { %v4516_v35 = vpop.f32.mrb[75].mxu1  ;;  %v4580_v11 = vpop.f32.mrb[75].mxu0 }
0x1dfc   :  { %v4087_v46 = vadd.f32 %v4578_v62, %v4514_v38  ;;  %v4517_v12 = vadd.f32 %v4516_v35, %v4515_v52  ;;  %v4581_v6 = vadd.f32 %v4580_v11, %v4579_v39 }
0x1dfe   :  { %v4090_v24 = vadd.f32 %v4581_v6, %v4517_v12  ;;  %4185 = vrot.lane.b32.xlu1 %v4087_v46, %s5454_s29  ;;  %4137 = vrot.lane.b32.xlu0 %v4087_v46, %s5424_s24 }
0x1e02   :  { %4187 = vrot.lane.b32.xlu1 %v4090_v24, %s5454_s29  ;;  %4139 = vrot.lane.b32.xlu0 %v4090_v24, %s5424_s24 }
0x1e38   :  { %v4158_v4 = vpop.permute.xlu1 %4157  ;;  %v4110_v51 = vpop.permute.xlu0 %4109 }
0x1e39   :  { %v4205_v1 = vsel %vm22_vm1, %v4110_v51, %v4158_v4 }
0x1e3a   :  { %4221 = vxpose.xlu0.b32.start [1/16] (narrow) %v4205_v1, 8 }
0x1e3c   :  { %v4160_v33 = vpop.permute.xlu1 %4159  ;;  %v4112_v14 = vpop.permute.xlu0 %4111 }
0x1e3d   :  { %v4206_v9 = vsel %vm22_vm1, %v4112_v14, %v4160_v33 }
0x1e3e   :  { %4222 = vxpose.xlu0.b32.cont [2/16] (narrow) %v4206_v9, 8 }
0x1e40   :  { %v4162_v17 = vpop.permute.xlu1 %4161  ;;  %v4114_v43 = vpop.permute.xlu0 %4113 }
0x1e41   :  { %v4207_v40 = vsel %vm22_vm1, %v4114_v43, %v4162_v17 }
0x1e42   :  { %4223 = vxpose.xlu0.b32.cont [3/16] (narrow) %v4207_v40, 8 }
0x1e44   :  { %v4164_v32 = vpop.permute.xlu1 %4163  ;;  %v4116_v34 = vpop.permute.xlu0 %4115 }
0x1e45   :  { %v4208_v63 = vsel %vm22_vm1, %v4116_v34, %v4164_v32 }
0x1e46   :  { %4224 = vxpose.xlu0.b32.cont [4/16] (narrow) %v4208_v63, 8 }
0x1e48   :  { %v4166_v21 = vpop.permute.xlu1 %4165  ;;  %v4118_v41 = vpop.permute.xlu0 %4117 }
0x1e49   :  { %v4209_v37 = vsel %vm22_vm1, %v4118_v41, %v4166_v21 }
0x1e4a   :  { %4225 = vxpose.xlu0.b32.cont [5/16] (narrow) %v4209_v37, 8 }
0x1e4c   :  { %v4168_v56 = vpop.permute.xlu1 %4167  ;;  %v4120_v8 = vpop.permute.xlu0 %4119 }
0x1e4d   :  { %v4210_v36 = vsel %vm22_vm1, %v4120_v8, %v4168_v56 }
0x1e4e   :  { %4226 = vxpose.xlu0.b32.cont [6/16] (narrow) %v4210_v36, 8 }
0x1e50   :  { %v4170_v26 = vpop.permute.xlu1 %4169  ;;  %v4122_v25 = vpop.permute.xlu0 %4121 }
0x1e51   :  { %v4211_v28 = vsel %vm22_vm1, %v4122_v25, %v4170_v26 }
0x1e52   :  { %4227 = vxpose.xlu0.b32.cont [7/16] (narrow) %v4211_v28, 8 }
0x1e54   :  { %v4172_v57 = vpop.permute.xlu1 %4171  ;;  %v4124_v45 = vpop.permute.xlu0 %4123 }
0x1e55   :  { %v4212_v30 = vsel %vm22_vm1, %v4124_v45, %v4172_v57 }
0x1e56   :  { %4228 = vxpose.xlu0.b32.cont [8/16] (narrow) %v4212_v30, 8 }
0x1e58   :  { %v4174_v48 = vpop.permute.xlu1 %4173  ;;  %v4126_v42 = vpop.permute.xlu0 %4125 }
0x1e59   :  { %v4213_v47 = vsel %vm22_vm1, %v4126_v42, %v4174_v48 }
0x1e5a   :  { %4229 = vxpose.xlu0.b32.cont [9/16] (narrow) %v4213_v47, 8 }
0x1e5c   :  { %v4176_v0 = vpop.permute.xlu1 %4175  ;;  %v4128_v2 = vpop.permute.xlu0 %4127 }
0x1e5d   :  { %v4214_v13 = vsel %vm22_vm1, %v4128_v2, %v4176_v0 }
0x1e5e   :  { %4230 = vxpose.xlu0.b32.cont [10/16] (narrow) %v4214_v13, 8 }
0x1e60   :  { %v4178_v50 = vpop.permute.xlu1 %4177  ;;  %v4130_v23 = vpop.permute.xlu0 %4129 }
0x1e61   :  { %v4215_v44 = vsel %vm22_vm1, %v4130_v23, %v4178_v50 }
0x1e62   :  { %4231 = vxpose.xlu0.b32.cont [11/16] (narrow) %v4215_v44, 8 }
0x1e64   :  { %v4180_v58 = vpop.permute.xlu1 %4179  ;;  %v4132_v5 = vpop.permute.xlu0 %4131 }
0x1e65   :  { %v4216_v3 = vsel %vm22_vm1, %v4132_v5, %v4180_v58 }
0x1e66   :  { %4232 = vxpose.xlu0.b32.cont [12/16] (narrow) %v4216_v3, 8 }
0x1e68   :  { %v4182_v59 = vpop.permute.xlu1 %4181  ;;  %v4134_v22 = vpop.permute.xlu0 %4133 }
0x1e69   :  { %v4217_v19 = vsel %vm22_vm1, %v4134_v22, %v4182_v59 }
0x1e6a   :  { %4233 = vxpose.xlu0.b32.cont [13/16] (narrow) %v4217_v19, 8 }
0x1e6c   :  { %v4184_v15 = vpop.permute.xlu1 %4183  ;;  %v4136_v61 = vpop.permute.xlu0 %4135 }
0x1e6d   :  { %v4218_v53 = vsel %vm22_vm1, %v4136_v61, %v4184_v15 }
0x1e6e   :  { %4234 = vxpose.xlu0.b32.cont [14/16] (narrow) %v4218_v53, 8 }
0x1e70   :  { %v4186_v10 = vpop.permute.xlu1 %4185  ;;  %v4138_v27 = vpop.permute.xlu0 %4137 }
0x1e71   :  { %v4219_v29 = vsel %vm22_vm1, %v4138_v27, %v4186_v10 }
0x1e72   :  { %4235 = vxpose.xlu0.b32.cont [15/16] (narrow) %v4219_v29, 8 }
0x1e74   :  { %v4188_v31 = vpop.permute.xlu1 %4187  ;;  %v4140_v20 = vpop.permute.xlu0 %4139 }
0x1e75   :  { %v4220_v16 = vsel %vm22_vm1, %v4140_v20, %v4188_v31 }
0x1e76   :  { %4236 = vxpose.xlu0.b32.end [16/16] (narrow) %v4220_v16, 8 }
0x1eba   :  { %v4237_v60 = vpop.trf.xlu0 }
0x1ebb   :  { %v4260_v55 = vadd.f32 %v4387_v54, %v4237_v60 }
0x1ebd   :  { %v4261_v49 = vmax.f32 %v4260_v55, 0.0 }
0x1ebf   :  { %4262 = vst [vmem:[#allocation2] sm:$0x3] %v4261_v49 }
0x1ec0   :  { %5411 = shalt.err (!%p5408_p4)
}
0x1ec1   :  { %s5412_s11 = scalar_lea.hbm %s7358_s5, 32 }
0x1ec2   :  { %p5413_p5 = scmp.ne.s32.totalorder %s7358_s5, %s5412_s11  ;;  %p5416_p6 = scmp.lt.u32.totalorder %s5412_s11, %s7358_s5 }
0x1ec4   :  { %p5418_p7 = pnand %p5416_p6, %p5413_p5 }
0x1ec6   :  { %5421 = shalt.err (!%p5418_p7)
}
0x1ec7   :  { %4272 = dma.vmem_to_hbm [thread:$0]  %s4270_s6, 32, %s7358_s5, [#allocation3]  }
0x1ec8   :  { %5422 = dma.done.wait [#allocation3], 32  }
0x1ec9   :  { %5423 = vsyncadd [#allocation3], 4294967264 }
0x1eca   :  { %4276 = vsyncpa [#allocation3], 1 }

</bundles_post_ra>
